<compile_context>
chip_gen: v7x
topology: tpu7x:2x2x1
jax: 0.10.0
libtpu: 0.0.40
codegen_flags: <defaults>
</compile_context>

<pallas_src>
import jax
import jax.numpy as jnp
from jax.experimental import pallas as pl
from jax.experimental.pallas import tpu as pltpu

# ----------------------------- model dimensions -----------------------------
B = 2         # batch_size
T = 8         # sequence_length
CIN = 4       # input channels per frame
IMG = 16      # frame height = width
CF = 64       # stand-in backbone feature dim (plays the role of resnet.fc.in_features)
LATENT = 32   # latent_dim
HID = 32      # lstm hidden_dim (bidirectional -> 2*HID features out of LSTM)
NCLS = 10     # num_classes
KC = 9 * CIN  # raw im2col patch width (3x3 taps * CIN) = 36
KCP = 64      # lane-padded patch width
HW = IMG * IMG


def vmem_spec():
    return pl.BlockSpec(memory_space=pltpu.MemorySpace.VMEM)


# ----------------------------- Pallas kernels -------------------------------

def encoder_kernel(patch_ref, convw_ref, convb_ref, pool_ref,
                   finw_ref, finb_ref, bns_ref, bnb_ref, out_ref):
    """Encoder for 8 frames at once: conv3x3 (as one im2col matmul) + ReLU +
    global-avg-pool (as an MXU matmul with a pooling matrix) + Linear(latent)
    + BatchNorm1d (eval-mode scale/shift)."""
    p = patch_ref[0]                                                       # (T*HW, KCP)
    conv = jnp.dot(p, convw_ref[...], preferred_element_type=jnp.float32)  # (T*HW, CF)
    conv = jnp.maximum(conv + convb_ref[...], 0.0)
    feat = jnp.dot(pool_ref[...], conv, preferred_element_type=jnp.float32)  # (T, CF)
    y = jnp.dot(feat, finw_ref[...], preferred_element_type=jnp.float32) + finb_ref[...]
    out_ref[0] = y * bns_ref[...] + bnb_ref[...]                           # (T, LATENT)


def fused_seq_kernel(feats_ref, a2w_ref, a2b_ref,
                     wihf_ref, whhf_ref, bf_ref,
                     wihb_ref, whhb_ref, bb_ref,
                     aw_ref, ab_ref,
                     w1_ref, b1_ref, bns_ref, bnb_ref,
                     w2_ref, b2_ref, out_ref):
    """Fused: Attention3 (softmax over T, scale) -> bidirectional LSTM
    (hoisted input projection, fully unrolled, fwd/bwd interleaved) ->
    attention pooling over T -> Linear + BN(eval) + ReLU + Linear + Softmax."""
    Bk, Tk, Dk = feats_ref.shape
    Hk = whhf_ref.shape[0]

    x = feats_ref[...]                                                     # (B, T, D)

    # ---- Attention3: per-sequence softmax attention over T, scale features.
    xf = x.reshape(Bk * Tk, Dk)                                            # (BT, D)
    l = jnp.dot(xf, a2w_ref[...], preferred_element_type=jnp.float32)      # (BT, 1)
    logits = l.reshape(Bk, Tk) + a2b_ref[...]                              # (B, T)
    m = jnp.max(logits, axis=-1, keepdims=True)
    e = jnp.exp(logits - m)
    w = e * pl.reciprocal(jnp.sum(e, axis=-1, keepdims=True), approx=True)
    xatt = (x * w[:, :, None]).reshape(Bk * Tk, Dk)                        # (BT, D)

    # ---- hoisted LSTM input projections (both directions), gate order i,f,g,o.
    gxf = jnp.dot(xatt, wihf_ref[...], preferred_element_type=jnp.float32) + bf_ref[...]
    gxb = jnp.dot(xatt, wihb_ref[...], preferred_element_type=jnp.float32) + bb_ref[...]
    gxf = gxf.reshape(Bk, Tk, 4 * Hk)                                      # (B, T, 4H)
    gxb = gxb.reshape(Bk, Tk, 4 * Hk)

    def cell(gx_t, h, c, whh_ref):
        g = gx_t + jnp.dot(h, whh_ref[...], preferred_element_type=jnp.float32)
        i = jax.nn.sigmoid(g[:, 0:Hk])
        f = jax.nn.sigmoid(g[:, Hk:2 * Hk])
        gg = jnp.tanh(g[:, 2 * Hk:3 * Hk])
        o = jax.nn.sigmoid(g[:, 3 * Hk:4 * Hk])
        c_new = f * c + i * gg
        h_new = o * jnp.tanh(c_new)
        return h_new, c_new

    hf = jnp.zeros((Bk, Hk), jnp.float32)
    cf = jnp.zeros((Bk, Hk), jnp.float32)
    hb = jnp.zeros((Bk, Hk), jnp.float32)
    cb = jnp.zeros((Bk, Hk), jnp.float32)
    hs_f = [None] * Tk
    hs_b = [None] * Tk
    # Fully unrolled (T is small & static). Forward step s and backward step
    # T-1-s are independent chains, interleaved so the scheduler overlaps them.
    for s in range(Tk):
        hf, cf = cell(gxf[:, s, :], hf, cf, whhf_ref)
        hs_f[s] = hf
        tb = Tk - 1 - s
        hb, cb = cell(gxb[:, tb, :], hb, cb, whhb_ref)
        hs_b[tb] = hb

    # ---- attention pooling over T on concat([h_fwd, h_bwd]).
    h_cat = [jnp.concatenate([hs_f[t], hs_b[t]], axis=-1) for t in range(Tk)]   # (B, 2H)
    att_logits = jnp.concatenate(
        [jnp.dot(h_cat[t], aw_ref[...], preferred_element_type=jnp.float32)
         for t in range(Tk)], axis=-1) + ab_ref[...]                            # (B, T)
    m2 = jnp.max(att_logits, axis=-1, keepdims=True)
    e2 = jnp.exp(att_logits - m2)
    w2 = e2 * pl.reciprocal(jnp.sum(e2, axis=-1, keepdims=True), approx=True)   # (B, T)
    pooled = jnp.zeros((Bk, 2 * Hk), jnp.float32)
    for t in range(Tk):
        pooled = pooled + w2[:, t:t + 1] * h_cat[t]                             # (B, 2H)

    # ---- head: Linear + BatchNorm1d(eval) + ReLU + Linear + Softmax (exact).
    h1 = jnp.dot(pooled, w1_ref[...], preferred_element_type=jnp.float32) + b1_ref[...]
    h1 = jnp.maximum(h1 * bns_ref[...] + bnb_ref[...], 0.0)                     # (B, H)
    lg = jnp.dot(h1, w2_ref[...], preferred_element_type=jnp.float32) + b2_ref[...]
    m3 = jnp.max(lg, axis=-1, keepdims=True)
    e3 = jnp.exp(lg - m3)
    out_ref[...] = e3 / jnp.sum(e3, axis=-1, keepdims=True)                     # (B, NCLS)


# ----------------------------- pallas_call wrappers --------------------------

def encoder_pallas(patches, convw, convb, pool, finw, finb, bns, bnb):
    """patches: (B, T*HW, KCP) -> latent features (B, T, LATENT)."""
    return pl.pallas_call(
        encoder_kernel,
        out_shape=jax.ShapeDtypeStruct((B, T, LATENT), jnp.float32),
        grid=(B,),
        in_specs=[
            pl.BlockSpec((1, T * HW, KCP), lambda i: (i, 0, 0)),
            pl.BlockSpec((KCP, CF), lambda i: (0, 0)),
            pl.BlockSpec((1, CF), lambda i: (0, 0)),
            pl.BlockSpec((T, T * HW), lambda i: (0, 0)),
            pl.BlockSpec((CF, LATENT), lambda i: (0, 0)),
            pl.BlockSpec((1, LATENT), lambda i: (0, 0)),
            pl.BlockSpec((1, LATENT), lambda i: (0, 0)),
            pl.BlockSpec((1, LATENT), lambda i: (0, 0)),
        ],
        out_specs=pl.BlockSpec((1, T, LATENT), lambda i: (i, 0, 0)),
        compiler_params=pltpu.CompilerParams(dimension_semantics=("parallel",)),
    )(patches, convw, convb, pool, finw, finb, bns, bnb)


def fused_seq_pallas(feats, p):
    """Attention3 + BiLSTM + attention pooling + output head in one launch."""
    return pl.pallas_call(
        fused_seq_kernel,
        out_shape=jax.ShapeDtypeStruct((B, NCLS), jnp.float32),
        in_specs=[vmem_spec() for _ in range(17)],
        out_specs=vmem_spec(),
    )(feats, p["att2_w"], p["att2_b"],
      p["wih_f"], p["whh_f"], p["b_f"],
      p["wih_b"], p["whh_b"], p["b_b"],
      p["att_w"], p["att_b"],
      p["out_w1"], p["out_b1"], p["head_bn_scale"], p["head_bn_shift"],
      p["out_w2"], p["out_b2"])


# ----------------------------- plain-JAX glue --------------------------------

def im2col3x3(frames_nhwc, pad_to):
    """3x3, stride 1, padding 1 im2col. (N, H, W, C) -> (N, H*W, pad_to)."""
    n, h, w, c = frames_nhwc.shape
    xp = jnp.pad(frames_nhwc, ((0, 0), (1, 1), (1, 1), (0, 0)))
    taps = []
    for dy in range(3):
        for dx in range(3):
            taps.append(xp[:, dy:dy + h, dx:dx + w, :])
    patches = jnp.concatenate(taps, axis=-1)                               # (N, H, W, 9C)
    patches = patches.reshape(n, h * w, 9 * c)
    if pad_to > 9 * c:
        patches = jnp.pad(patches, ((0, 0), (0, 0), (0, pad_to - 9 * c)))
    return patches


def make_params(key):
    ks = jax.random.split(key, 24)
    s = 0.05
    eps = 1e-5

    def bn_fold(gamma, beta):
        # eval-mode BatchNorm with default running stats (mean=0, var=1)
        scale = gamma / jnp.sqrt(1.0 + eps)
        shift = beta
        return scale[None, :], shift[None, :]

    p = {}
    # encoder backbone stand-in (conv3x3 as im2col matmul, zero-padded to KCP lanes)
    conv_w = s * jax.random.normal(ks[0], (KC, CF), jnp.float32)
    p["conv_w"] = jnp.pad(conv_w, ((0, KCP - KC), (0, 0)))
    p["conv_b"] = s * jax.random.normal(ks[1], (1, CF), jnp.float32)
    p["fin_w"] = s * jax.random.normal(ks[2], (CF, LATENT), jnp.float32)
    p["fin_b"] = s * jax.random.normal(ks[3], (1, LATENT), jnp.float32)
    g1 = 1.0 + s * jax.random.normal(ks[4], (LATENT,), jnp.float32)
    b1 = s * jax.random.normal(ks[5], (LATENT,), jnp.float32)
    p["enc_bn_scale"], p["enc_bn_shift"] = bn_fold(g1, b1)

    # global-avg-pool expressed as an MXU matmul: row t sums pixels of frame t / HW
    p["pool"] = jnp.repeat(jnp.eye(T, dtype=jnp.float32), HW, axis=1) / float(HW)

    # Attention3 (latent_dim -> 1), stored column-major for in-kernel matmul
    p["att2_w"] = s * jax.random.normal(ks[6], (LATENT, 1), jnp.float32)
    p["att2_b"] = s * jax.random.normal(ks[7], (1, 1), jnp.float32)

    # bidirectional LSTM (PyTorch layout (4H, in) -> transposed for matmul)
    def lstm_dir(k0, k1, k2, k3):
        wih = s * jax.random.normal(k0, (4 * HID, LATENT), jnp.float32)
        whh = s * jax.random.normal(k1, (4 * HID, HID), jnp.float32)
        bih = s * jax.random.normal(k2, (4 * HID,), jnp.float32)
        bhh = s * jax.random.normal(k3, (4 * HID,), jnp.float32)
        return wih.T, whh.T, (bih + bhh)[None, :]

    p["wih_f"], p["whh_f"], p["b_f"] = lstm_dir(ks[8], ks[9], ks[10], ks[11])
    p["wih_b"], p["whh_b"], p["b_b"] = lstm_dir(ks[12], ks[13], ks[14], ks[15])

    # attention over LSTM output (2H -> 1)
    p["att_w"] = s * jax.random.normal(ks[16], (2 * HID, 1), jnp.float32)
    p["att_b"] = s * jax.random.normal(ks[17], (1, 1), jnp.float32)

    # output head
    p["out_w1"] = s * jax.random.normal(ks[18], (2 * HID, HID), jnp.float32)
    p["out_b1"] = s * jax.random.normal(ks[19], (1, HID), jnp.float32)
    g2 = 1.0 + s * jax.random.normal(ks[20], (HID,), jnp.float32)
    b2 = s * jax.random.normal(ks[21], (HID,), jnp.float32)
    p["head_bn_scale"], p["head_bn_shift"] = bn_fold(g2, b2)
    p["out_w2"] = s * jax.random.normal(ks[22], (HID, NCLS), jnp.float32)
    p["out_b2"] = s * jax.random.normal(ks[23], (1, NCLS), jnp.float32)
    return p


@jax.jit
def conv_lstm3_forward(x, p):
    bs, sl, c, h, w = x.shape
    frames = x.reshape(bs * sl, c, h, w).transpose(0, 2, 3, 1)         # NCHW -> NHWC
    patches = im2col3x3(frames, KCP)                                   # (B*T, HW, KCP)
    patches = patches.reshape(bs, sl * h * w, KCP)                     # (B, T*HW, KCP)

    feats = encoder_pallas(patches, p["conv_w"], p["conv_b"], p["pool"],
                           p["fin_w"], p["fin_b"],
                           p["enc_bn_scale"], p["enc_bn_shift"])       # (B, T, LATENT)

    probs = fused_seq_pallas(feats, p)                                 # (B, NCLS)
    return probs


if __name__ == "__main__":
    key = jax.random.PRNGKey(0)
    kx, kp = jax.random.split(key)
    x = jax.random.normal(kx, (B, T, CIN, IMG, IMG), jnp.float32)
    params = make_params(kp)

    out = conv_lstm3_forward(x, params)
    out = jax.block_until_ready(out)

    assert out.shape == (B, NCLS)
    assert bool(jnp.all(jnp.isfinite(out)))
    # rows are softmax distributions (head softmax uses exact division)
    assert bool(jnp.allclose(jnp.sum(out, axis=-1), 1.0, atol=1e-4))
    print("KERNEL_OK")
</pallas_src>

<mosaic_0001>
module attributes {stable_mosaic.version = 11 : i64} {
  func.func @encoder_kernel(%arg0: i32, %arg1: memref<1x2048x64xf32, #tpu.memory_space<vmem>>, %arg2: memref<64x64xf32, #tpu.memory_space<vmem>>, %arg3: memref<1x64xf32, #tpu.memory_space<vmem>>, %arg4: memref<8x2048xf32, #tpu.memory_space<vmem>>, %arg5: memref<64x32xf32, #tpu.memory_space<vmem>>, %arg6: memref<1x32xf32, #tpu.memory_space<vmem>>, %arg7: memref<1x32xf32, #tpu.memory_space<vmem>>, %arg8: memref<1x32xf32, #tpu.memory_space<vmem>>, %arg9: memref<1x8x32xf32, #tpu.memory_space<vmem>>) attributes {dimension_semantics = [#tpu.dimension_semantics<parallel>], iteration_bounds = array<i64: 2>, scalar_prefetch = 0 : i64, scratch_operands = 0 : i64, tpu.core_type = #tpu.core_type<tc>, window_params = [{transform_indices = @transform_0, window_bounds = array<i64: 1, 2048, 64>}, {pipeline_mode = #tpu.pipeline_mode<synchronous>, transform_indices = @transform_1, window_bounds = array<i64: 64, 64>}, {pipeline_mode = #tpu.pipeline_mode<synchronous>, transform_indices = @transform_2, window_bounds = array<i64: 1, 64>}, {pipeline_mode = #tpu.pipeline_mode<synchronous>, transform_indices = @transform_3, window_bounds = array<i64: 8, 2048>}, {pipeline_mode = #tpu.pipeline_mode<synchronous>, transform_indices = @transform_4, window_bounds = array<i64: 64, 32>}, {pipeline_mode = #tpu.pipeline_mode<synchronous>, transform_indices = @transform_5, window_bounds = array<i64: 1, 32>}, {pipeline_mode = #tpu.pipeline_mode<synchronous>, transform_indices = @transform_6, window_bounds = array<i64: 1, 32>}, {pipeline_mode = #tpu.pipeline_mode<synchronous>, transform_indices = @transform_7, window_bounds = array<i64: 1, 32>}, {transform_indices = @transform_8, window_bounds = array<i64: 1, 8, 32>}]} {
    %c0 = arith.constant 0 : index
    %c0_0 = arith.constant 0 : index
    %c0_1 = arith.constant 0 : index
    %0 = vector.load %arg1[%c0, %c0_0, %c0_1] : memref<1x2048x64xf32, #tpu.memory_space<vmem>>, vector<1x2048x64xf32>
    %1 = vector.shape_cast %0 : vector<1x2048x64xf32> to vector<2048x64xf32>
    %c0_2 = arith.constant 0 : index
    %c0_3 = arith.constant 0 : index
    %2 = vector.load %arg2[%c0_2, %c0_3] : memref<64x64xf32, #tpu.memory_space<vmem>>, vector<64x64xf32>
    %cst = arith.constant dense<0.000000e+00> : vector<2048x64xf32>
    %3 = tpu.matmul %1, %2, %cst {dimension_numbers = #tpu.dot_dimension_numbers<[1], [0], [0], [1], [0, 0, 1, 1], [], []>} : vector<2048x64xf32>, vector<64x64xf32>, vector<2048x64xf32> -> vector<2048x64xf32>
    %c0_4 = arith.constant 0 : index
    %c0_5 = arith.constant 0 : index
    %4 = vector.load %arg3[%c0_4, %c0_5] : memref<1x64xf32, #tpu.memory_space<vmem>>, vector<1x64xf32>
    %5 = vector.broadcast %4 : vector<1x64xf32> to vector<2048x64xf32>
    %6 = arith.addf %3, %5 : vector<2048x64xf32>
    %cst_6 = arith.constant 0.000000e+00 : f32
    %7 = vector.broadcast %cst_6 : f32 to vector<2048x64xf32>
    %8 = arith.maximumf %6, %7 : vector<2048x64xf32>
    %c0_7 = arith.constant 0 : index
    %c0_8 = arith.constant 0 : index
    %9 = vector.load %arg4[%c0_7, %c0_8] : memref<8x2048xf32, #tpu.memory_space<vmem>>, vector<8x2048xf32>
    %cst_9 = arith.constant dense<0.000000e+00> : vector<8x64xf32>
    %10 = tpu.matmul %9, %8, %cst_9 {dimension_numbers = #tpu.dot_dimension_numbers<[1], [0], [0], [1], [0, 0, 1, 1], [], []>} : vector<8x2048xf32>, vector<2048x64xf32>, vector<8x64xf32> -> vector<8x64xf32>
    %c0_10 = arith.constant 0 : index
    %c0_11 = arith.constant 0 : index
    %11 = vector.load %arg5[%c0_10, %c0_11] : memref<64x32xf32, #tpu.memory_space<vmem>>, vector<64x32xf32>
    %cst_12 = arith.constant dense<0.000000e+00> : vector<8x32xf32>
    %12 = tpu.matmul %10, %11, %cst_12 {dimension_numbers = #tpu.dot_dimension_numbers<[1], [0], [0], [1], [0, 0, 1, 1], [], []>} : vector<8x64xf32>, vector<64x32xf32>, vector<8x32xf32> -> vector<8x32xf32>
    %c0_13 = arith.constant 0 : index
    %c0_14 = arith.constant 0 : index
    %13 = vector.load %arg6[%c0_13, %c0_14] : memref<1x32xf32, #tpu.memory_space<vmem>>, vector<1x32xf32>
    %14 = vector.broadcast %13 : vector<1x32xf32> to vector<8x32xf32>
    %15 = arith.addf %12, %14 : vector<8x32xf32>
    %c0_15 = arith.constant 0 : index
    %c0_16 = arith.constant 0 : index
    %16 = vector.load %arg7[%c0_15, %c0_16] : memref<1x32xf32, #tpu.memory_space<vmem>>, vector<1x32xf32>
    %17 = vector.broadcast %16 : vector<1x32xf32> to vector<8x32xf32>
    %18 = arith.mulf %15, %17 : vector<8x32xf32>
    %c0_17 = arith.constant 0 : index
    %c0_18 = arith.constant 0 : index
    %19 = vector.load %arg8[%c0_17, %c0_18] : memref<1x32xf32, #tpu.memory_space<vmem>>, vector<1x32xf32>
    %20 = vector.broadcast %19 : vector<1x32xf32> to vector<8x32xf32>
    %21 = arith.addf %18, %20 : vector<8x32xf32>
    %c0_19 = arith.constant 0 : index
    %c0_20 = arith.constant 0 : index
    %c0_21 = arith.constant 0 : index
    %22 = vector.load %arg9[%c0_19, %c0_20, %c0_21] : memref<1x8x32xf32, #tpu.memory_space<vmem>>, vector<1x8x32xf32>
    %23 = vector.shape_cast %22 : vector<1x8x32xf32> to vector<8x32xf32>
    %24 = vector.shape_cast %21 : vector<8x32xf32> to vector<1x8x32xf32>
    tpu.vector_store %arg9[%c0_19, %c0_20, %c0_21], %24 {strides = array<i32>} : memref<1x8x32xf32, #tpu.memory_space<vmem>>, vector<1x8x32xf32>,
    return
  }
  func.func @transform_0(%arg0: i32) -> (i32, i32, i32) {
    %c0_i32 = arith.constant 0 : i32
    %c0_i32_0 = arith.constant 0 : i32
    %c0_i32_1 = arith.constant 0 : i32
    return %arg0, %c0_i32, %c0_i32_0 : i32, i32, i32
  }
  func.func @transform_1(%arg0: i32) -> (i32, i32) {
    %c0_i32 = arith.constant 0 : i32
    %c0_i32_0 = arith.constant 0 : i32
    %c0_i32_1 = arith.constant 0 : i32
    return %c0_i32, %c0_i32_0 : i32, i32
  }
  func.func @transform_2(%arg0: i32) -> (i32, i32) {
    %c0_i32 = arith.constant 0 : i32
    %c0_i32_0 = arith.constant 0 : i32
    %c0_i32_1 = arith.constant 0 : i32
    return %c0_i32, %c0_i32_0 : i32, i32
  }
  func.func @transform_3(%arg0: i32) -> (i32, i32) {
    %c0_i32 = arith.constant 0 : i32
    %c0_i32_0 = arith.constant 0 : i32
    %c0_i32_1 = arith.constant 0 : i32
    return %c0_i32, %c0_i32_0 : i32, i32
  }
  func.func @transform_4(%arg0: i32) -> (i32, i32) {
    %c0_i32 = arith.constant 0 : i32
    %c0_i32_0 = arith.constant 0 : i32
    %c0_i32_1 = arith.constant 0 : i32
    return %c0_i32, %c0_i32_0 : i32, i32
  }
  func.func @transform_5(%arg0: i32) -> (i32, i32) {
    %c0_i32 = arith.constant 0 : i32
    %c0_i32_0 = arith.constant 0 : i32
    %c0_i32_1 = arith.constant 0 : i32
    return %c0_i32, %c0_i32_0 : i32, i32
  }
  func.func @transform_6(%arg0: i32) -> (i32, i32) {
    %c0_i32 = arith.constant 0 : i32
    %c0_i32_0 = arith.constant 0 : i32
    %c0_i32_1 = arith.constant 0 : i32
    return %c0_i32, %c0_i32_0 : i32, i32
  }
  func.func @transform_7(%arg0: i32) -> (i32, i32) {
    %c0_i32 = arith.constant 0 : i32
    %c0_i32_0 = arith.constant 0 : i32
    %c0_i32_1 = arith.constant 0 : i32
    return %c0_i32, %c0_i32_0 : i32, i32
  }
  func.func @transform_8(%arg0: i32) -> (i32, i32, i32) {
    %c0_i32 = arith.constant 0 : i32
    %c0_i32_0 = arith.constant 0 : i32
    %c0_i32_1 = arith.constant 0 : i32
    return %arg0, %c0_i32, %c0_i32_0 : i32, i32, i32
  }
}

module attributes {stable_mosaic.version = 11 : i64} {
  func.func @fused_seq_kernel(%arg0: memref<2x8x32xf32, #tpu.memory_space<vmem>>, %arg1: memref<32x1xf32, #tpu.memory_space<vmem>>, %arg2: memref<1x1xf32, #tpu.memory_space<vmem>>, %arg3: memref<32x128xf32, #tpu.memory_space<vmem>>, %arg4: memref<32x128xf32, #tpu.memory_space<vmem>>, %arg5: memref<1x128xf32, #tpu.memory_space<vmem>>, %arg6: memref<32x128xf32, #tpu.memory_space<vmem>>, %arg7: memref<32x128xf32, #tpu.memory_space<vmem>>, %arg8: memref<1x128xf32, #tpu.memory_space<vmem>>, %arg9: memref<64x1xf32, #tpu.memory_space<vmem>>, %arg10: memref<1x1xf32, #tpu.memory_space<vmem>>, %arg11: memref<64x32xf32, #tpu.memory_space<vmem>>, %arg12: memref<1x32xf32, #tpu.memory_space<vmem>>, %arg13: memref<1x32xf32, #tpu.memory_space<vmem>>, %arg14: memref<1x32xf32, #tpu.memory_space<vmem>>, %arg15: memref<32x10xf32, #tpu.memory_space<vmem>>, %arg16: memref<1x10xf32, #tpu.memory_space<vmem>>, %arg17: memref<2x10xf32, #tpu.memory_space<vmem>>) attributes {dimension_semantics = [], scalar_prefetch = 0 : i64, scratch_operands = 0 : i64, tpu.core_type = #tpu.core_type<tc>} {
    %c0 = arith.constant 0 : index
    %c0_0 = arith.constant 0 : index
    %c0_1 = arith.constant 0 : index
    %0 = vector.load %arg0[%c0, %c0_0, %c0_1] : memref<2x8x32xf32, #tpu.memory_space<vmem>>, vector<2x8x32xf32>
    %1 = vector.shape_cast %0 : vector<2x8x32xf32> to vector<16x32xf32>
    %c0_2 = arith.constant 0 : index
    %c0_3 = arith.constant 0 : index
    %2 = vector.load %arg1[%c0_2, %c0_3] : memref<32x1xf32, #tpu.memory_space<vmem>>, vector<32x1xf32>
    %cst = arith.constant dense<0.000000e+00> : vector<16x1xf32>
    %3 = tpu.matmul %1, %2, %cst {dimension_numbers = #tpu.dot_dimension_numbers<[1], [0], [0], [1], [0, 0, 1, 1], [], []>} : vector<16x32xf32>, vector<32x1xf32>, vector<16x1xf32> -> vector<16x1xf32>
    %4 = vector.shape_cast %3 : vector<16x1xf32> to vector<2x8xf32>
    %c0_4 = arith.constant 0 : index
    %c0_5 = arith.constant 0 : index
    %5 = vector.load %arg2[%c0_4, %c0_5] : memref<1x1xf32, #tpu.memory_space<vmem>>, vector<1x1xf32>
    %6 = vector.broadcast %5 : vector<1x1xf32> to vector<2x8xf32>
    %7 = arith.addf %4, %6 : vector<2x8xf32>
    %cst_6 = arith.constant dense<0xFF800000> : vector<2xf32>
    %8 = vector.multi_reduction <maximumf>, %7, %cst_6 [1] : vector<2x8xf32> to vector<2xf32>
    %9 = vector.shape_cast %8 : vector<2xf32> to vector<2x1xf32>
    %10 = vector.broadcast %9 : vector<2x1xf32> to vector<2x8xf32>
    %11 = arith.subf %7, %10 : vector<2x8xf32>
    %12 = math.exp %11 : vector<2x8xf32>
    %cst_7 = arith.constant dense<0.000000e+00> : vector<2xf32>
    %13 = vector.multi_reduction <add>, %12, %cst_7 [1] : vector<2x8xf32> to vector<2xf32>
    %14 = vector.shape_cast %13 : vector<2xf32> to vector<2x1xf32>
    %15 = tpu.reciprocal %14 {approx = true} : vector<2x1xf32> -> vector<2x1xf32>
    %16 = vector.broadcast %15 : vector<2x1xf32> to vector<2x8xf32>
    %17 = arith.mulf %12, %16 : vector<2x8xf32>
    %18 = vector.shape_cast %17 : vector<2x8xf32> to vector<2x8x1xf32>
    %19 = vector.broadcast %18 : vector<2x8x1xf32> to vector<2x8x32xf32>
    %20 = arith.mulf %0, %19 : vector<2x8x32xf32>
    %21 = vector.shape_cast %20 : vector<2x8x32xf32> to vector<16x32xf32>
    %c0_8 = arith.constant 0 : index
    %c0_9 = arith.constant 0 : index
    %22 = vector.load %arg3[%c0_8, %c0_9] : memref<32x128xf32, #tpu.memory_space<vmem>>, vector<32x128xf32>
    %cst_10 = arith.constant dense<0.000000e+00> : vector<16x128xf32>
    %23 = tpu.matmul %21, %22, %cst_10 {dimension_numbers = #tpu.dot_dimension_numbers<[1], [0], [0], [1], [0, 0, 1, 1], [], []>} : vector<16x32xf32>, vector<32x128xf32>, vector<16x128xf32> -> vector<16x128xf32>
    %c0_11 = arith.constant 0 : index
    %c0_12 = arith.constant 0 : index
    %24 = vector.load %arg5[%c0_11, %c0_12] : memref<1x128xf32, #tpu.memory_space<vmem>>, vector<1x128xf32>
    %25 = vector.broadcast %24 : vector<1x128xf32> to vector<16x128xf32>
    %26 = arith.addf %23, %25 : vector<16x128xf32>
    %c0_13 = arith.constant 0 : index
    %c0_14 = arith.constant 0 : index
    %27 = vector.load %arg6[%c0_13, %c0_14] : memref<32x128xf32, #tpu.memory_space<vmem>>, vector<32x128xf32>
    %cst_15 = arith.constant dense<0.000000e+00> : vector<16x128xf32>
    %28 = tpu.matmul %21, %27, %cst_15 {dimension_numbers = #tpu.dot_dimension_numbers<[1], [0], [0], [1], [0, 0, 1, 1], [], []>} : vector<16x32xf32>, vector<32x128xf32>, vector<16x128xf32> -> vector<16x128xf32>
    %c0_16 = arith.constant 0 : index
    %c0_17 = arith.constant 0 : index
    %29 = vector.load %arg8[%c0_16, %c0_17] : memref<1x128xf32, #tpu.memory_space<vmem>>, vector<1x128xf32>
    %30 = vector.broadcast %29 : vector<1x128xf32> to vector<16x128xf32>
    %31 = arith.addf %28, %30 : vector<16x128xf32>
    %32 = vector.shape_cast %26 : vector<16x128xf32> to vector<2x8x128xf32>
    %33 = vector.shape_cast %31 : vector<16x128xf32> to vector<2x8x128xf32>
    %cst_18 = arith.constant 0.000000e+00 : f32
    %34 = vector.broadcast %cst_18 : f32 to vector<2x32xf32>
    %cst_19 = arith.constant 0.000000e+00 : f32
    %35 = vector.broadcast %cst_19 : f32 to vector<2x32xf32>
    %cst_20 = arith.constant 0.000000e+00 : f32
    %36 = vector.broadcast %cst_20 : f32 to vector<2x32xf32>
    %cst_21 = arith.constant 0.000000e+00 : f32
    %37 = vector.broadcast %cst_21 : f32 to vector<2x32xf32>
    %38 = vector.extract_strided_slice %32 {offsets = [0, 0, 0], sizes = [2, 1, 128], strides = [1, 1, 1]} : vector<2x8x128xf32> to vector<2x1x128xf32>
    %39 = vector.shape_cast %38 : vector<2x1x128xf32> to vector<2x128xf32>
    %c0_22 = arith.constant 0 : index
    %c0_23 = arith.constant 0 : index
    %40 = vector.load %arg4[%c0_22, %c0_23] : memref<32x128xf32, #tpu.memory_space<vmem>>, vector<32x128xf32>
    %cst_24 = arith.constant dense<0.000000e+00> : vector<2x128xf32>
    %41 = tpu.matmul %34, %40, %cst_24 {dimension_numbers = #tpu.dot_dimension_numbers<[1], [0], [0], [1], [0, 0, 1, 1], [], []>} : vector<2x32xf32>, vector<32x128xf32>, vector<2x128xf32> -> vector<2x128xf32>
    %42 = arith.addf %39, %41 : vector<2x128xf32>
    %43 = vector.extract_strided_slice %42 {offsets = [0, 0], sizes = [2, 32], strides = [1, 1]} : vector<2x128xf32> to vector<2x32xf32>
    %44 = arith.negf %43 : vector<2x32xf32>
    %45 = math.exp %44 : vector<2x32xf32>
    %cst_25 = arith.constant 1.000000e+00 : f32
    %46 = vector.broadcast %cst_25 : f32 to vector<2x32xf32>
    %47 = arith.addf %46, %45 : vector<2x32xf32>
    %48 = arith.divf %46, %47 : vector<2x32xf32>
    %49 = vector.extract_strided_slice %42 {offsets = [0, 32], sizes = [2, 32], strides = [1, 1]} : vector<2x128xf32> to vector<2x32xf32>
    %50 = arith.negf %49 : vector<2x32xf32>
    %51 = math.exp %50 : vector<2x32xf32>
    %cst_26 = arith.constant 1.000000e+00 : f32
    %52 = vector.broadcast %cst_26 : f32 to vector<2x32xf32>
    %53 = arith.addf %52, %51 : vector<2x32xf32>
    %54 = arith.divf %52, %53 : vector<2x32xf32>
    %55 = vector.extract_strided_slice %42 {offsets = [0, 64], sizes = [2, 32], strides = [1, 1]} : vector<2x128xf32> to vector<2x32xf32>
    %56 = math.tanh %55 : vector<2x32xf32>
    %57 = vector.extract_strided_slice %42 {offsets = [0, 96], sizes = [2, 32], strides = [1, 1]} : vector<2x128xf32> to vector<2x32xf32>
    %58 = arith.negf %57 : vector<2x32xf32>
    %59 = math.exp %58 : vector<2x32xf32>
    %cst_27 = arith.constant 1.000000e+00 : f32
    %60 = vector.broadcast %cst_27 : f32 to vector<2x32xf32>
    %61 = arith.addf %60, %59 : vector<2x32xf32>
    %62 = arith.divf %60, %61 : vector<2x32xf32>
    %63 = arith.mulf %54, %35 : vector<2x32xf32>
    %64 = arith.mulf %48, %56 : vector<2x32xf32>
    %65 = arith.addf %63, %64 : vector<2x32xf32>
    %66 = math.tanh %65 : vector<2x32xf32>
    %67 = arith.mulf %62, %66 : vector<2x32xf32>
    %68 = vector.extract_strided_slice %33 {offsets = [0, 7, 0], sizes = [2, 1, 128], strides = [1, 1, 1]} : vector<2x8x128xf32> to vector<2x1x128xf32>
    %69 = vector.shape_cast %68 : vector<2x1x128xf32> to vector<2x128xf32>
    %c0_28 = arith.constant 0 : index
    %c0_29 = arith.constant 0 : index
    %70 = vector.load %arg7[%c0_28, %c0_29] : memref<32x128xf32, #tpu.memory_space<vmem>>, vector<32x128xf32>
    %cst_30 = arith.constant dense<0.000000e+00> : vector<2x128xf32>
    %71 = tpu.matmul %36, %70, %cst_30 {dimension_numbers = #tpu.dot_dimension_numbers<[1], [0], [0], [1], [0, 0, 1, 1], [], []>} : vector<2x32xf32>, vector<32x128xf32>, vector<2x128xf32> -> vector<2x128xf32>
    %72 = arith.addf %69, %71 : vector<2x128xf32>
    %73 = vector.extract_strided_slice %72 {offsets = [0, 0], sizes = [2, 32], strides = [1, 1]} : vector<2x128xf32> to vector<2x32xf32>
    %74 = arith.negf %73 : vector<2x32xf32>
    %75 = math.exp %74 : vector<2x32xf32>
    %cst_31 = arith.constant 1.000000e+00 : f32
    %76 = vector.broadcast %cst_31 : f32 to vector<2x32xf32>
    %77 = arith.addf %76, %75 : vector<2x32xf32>
    %78 = arith.divf %76, %77 : vector<2x32xf32>
    %79 = vector.extract_strided_slice %72 {offsets = [0, 32], sizes = [2, 32], strides = [1, 1]} : vector<2x128xf32> to vector<2x32xf32>
    %80 = arith.negf %79 : vector<2x32xf32>
    %81 = math.exp %80 : vector<2x32xf32>
    %cst_32 = arith.constant 1.000000e+00 : f32
    %82 = vector.broadcast %cst_32 : f32 to vector<2x32xf32>
    %83 = arith.addf %82, %81 : vector<2x32xf32>
    %84 = arith.divf %82, %83 : vector<2x32xf32>
    %85 = vector.extract_strided_slice %72 {offsets = [0, 64], sizes = [2, 32], strides = [1, 1]} : vector<2x128xf32> to vector<2x32xf32>
    %86 = math.tanh %85 : vector<2x32xf32>
    %87 = vector.extract_strided_slice %72 {offsets = [0, 96], sizes = [2, 32], strides = [1, 1]} : vector<2x128xf32> to vector<2x32xf32>
    %88 = arith.negf %87 : vector<2x32xf32>
    %89 = math.exp %88 : vector<2x32xf32>
    %cst_33 = arith.constant 1.000000e+00 : f32
    %90 = vector.broadcast %cst_33 : f32 to vector<2x32xf32>
    %91 = arith.addf %90, %89 : vector<2x32xf32>
    %92 = arith.divf %90, %91 : vector<2x32xf32>
    %93 = arith.mulf %84, %37 : vector<2x32xf32>
    %94 = arith.mulf %78, %86 : vector<2x32xf32>
    %95 = arith.addf %93, %94 : vector<2x32xf32>
    %96 = math.tanh %95 : vector<2x32xf32>
    %97 = arith.mulf %92, %96 : vector<2x32xf32>
    %98 = vector.extract_strided_slice %32 {offsets = [0, 1, 0], sizes = [2, 1, 128], strides = [1, 1, 1]} : vector<2x8x128xf32> to vector<2x1x128xf32>
    %99 = vector.shape_cast %98 : vector<2x1x128xf32> to vector<2x128xf32>
    %c0_34 = arith.constant 0 : index
    %c0_35 = arith.constant 0 : index
    %100 = vector.load %arg4[%c0_34, %c0_35] : memref<32x128xf32, #tpu.memory_space<vmem>>, vector<32x128xf32>
    %cst_36 = arith.constant dense<0.000000e+00> : vector<2x128xf32>
    %101 = tpu.matmul %67, %100, %cst_36 {dimension_numbers = #tpu.dot_dimension_numbers<[1], [0], [0], [1], [0, 0, 1, 1], [], []>} : vector<2x32xf32>, vector<32x128xf32>, vector<2x128xf32> -> vector<2x128xf32>
    %102 = arith.addf %99, %101 : vector<2x128xf32>
    %103 = vector.extract_strided_slice %102 {offsets = [0, 0], sizes = [2, 32], strides = [1, 1]} : vector<2x128xf32> to vector<2x32xf32>
    %104 = arith.negf %103 : vector<2x32xf32>
    %105 = math.exp %104 : vector<2x32xf32>
    %cst_37 = arith.constant 1.000000e+00 : f32
    %106 = vector.broadcast %cst_37 : f32 to vector<2x32xf32>
    %107 = arith.addf %106, %105 : vector<2x32xf32>
    %108 = arith.divf %106, %107 : vector<2x32xf32>
    %109 = vector.extract_strided_slice %102 {offsets = [0, 32], sizes = [2, 32], strides = [1, 1]} : vector<2x128xf32> to vector<2x32xf32>
    %110 = arith.negf %109 : vector<2x32xf32>
    %111 = math.exp %110 : vector<2x32xf32>
    %cst_38 = arith.constant 1.000000e+00 : f32
    %112 = vector.broadcast %cst_38 : f32 to vector<2x32xf32>
    %113 = arith.addf %112, %111 : vector<2x32xf32>
    %114 = arith.divf %112, %113 : vector<2x32xf32>
    %115 = vector.extract_strided_slice %102 {offsets = [0, 64], sizes = [2, 32], strides = [1, 1]} : vector<2x128xf32> to vector<2x32xf32>
    %116 = math.tanh %115 : vector<2x32xf32>
    %117 = vector.extract_strided_slice %102 {offsets = [0, 96], sizes = [2, 32], strides = [1, 1]} : vector<2x128xf32> to vector<2x32xf32>
    %118 = arith.negf %117 : vector<2x32xf32>
    %119 = math.exp %118 : vector<2x32xf32>
    %cst_39 = arith.constant 1.000000e+00 : f32
    %120 = vector.broadcast %cst_39 : f32 to vector<2x32xf32>
    %121 = arith.addf %120, %119 : vector<2x32xf32>
    %122 = arith.divf %120, %121 : vector<2x32xf32>
    %123 = arith.mulf %114, %65 : vector<2x32xf32>
    %124 = arith.mulf %108, %116 : vector<2x32xf32>
    %125 = arith.addf %123, %124 : vector<2x32xf32>
    %126 = math.tanh %125 : vector<2x32xf32>
    %127 = arith.mulf %122, %126 : vector<2x32xf32>
    %128 = vector.extract_strided_slice %33 {offsets = [0, 6, 0], sizes = [2, 1, 128], strides = [1, 1, 1]} : vector<2x8x128xf32> to vector<2x1x128xf32>
    %129 = vector.shape_cast %128 : vector<2x1x128xf32> to vector<2x128xf32>
    %c0_40 = arith.constant 0 : index
    %c0_41 = arith.constant 0 : index
    %130 = vector.load %arg7[%c0_40, %c0_41] : memref<32x128xf32, #tpu.memory_space<vmem>>, vector<32x128xf32>
    %cst_42 = arith.constant dense<0.000000e+00> : vector<2x128xf32>
    %131 = tpu.matmul %97, %130, %cst_42 {dimension_numbers = #tpu.dot_dimension_numbers<[1], [0], [0], [1], [0, 0, 1, 1], [], []>} : vector<2x32xf32>, vector<32x128xf32>, vector<2x128xf32> -> vector<2x128xf32>
    %132 = arith.addf %129, %131 : vector<2x128xf32>
    %133 = vector.extract_strided_slice %132 {offsets = [0, 0], sizes = [2, 32], strides = [1, 1]} : vector<2x128xf32> to vector<2x32xf32>
    %134 = arith.negf %133 : vector<2x32xf32>
    %135 = math.exp %134 : vector<2x32xf32>
    %cst_43 = arith.constant 1.000000e+00 : f32
    %136 = vector.broadcast %cst_43 : f32 to vector<2x32xf32>
    %137 = arith.addf %136, %135 : vector<2x32xf32>
    %138 = arith.divf %136, %137 : vector<2x32xf32>
    %139 = vector.extract_strided_slice %132 {offsets = [0, 32], sizes = [2, 32], strides = [1, 1]} : vector<2x128xf32> to vector<2x32xf32>
    %140 = arith.negf %139 : vector<2x32xf32>
    %141 = math.exp %140 : vector<2x32xf32>
    %cst_44 = arith.constant 1.000000e+00 : f32
    %142 = vector.broadcast %cst_44 : f32 to vector<2x32xf32>
    %143 = arith.addf %142, %141 : vector<2x32xf32>
    %144 = arith.divf %142, %143 : vector<2x32xf32>
    %145 = vector.extract_strided_slice %132 {offsets = [0, 64], sizes = [2, 32], strides = [1, 1]} : vector<2x128xf32> to vector<2x32xf32>
    %146 = math.tanh %145 : vector<2x32xf32>
    %147 = vector.extract_strided_slice %132 {offsets = [0, 96], sizes = [2, 32], strides = [1, 1]} : vector<2x128xf32> to vector<2x32xf32>
    %148 = arith.negf %147 : vector<2x32xf32>
    %149 = math.exp %148 : vector<2x32xf32>
    %cst_45 = arith.constant 1.000000e+00 : f32
    %150 = vector.broadcast %cst_45 : f32 to vector<2x32xf32>
    %151 = arith.addf %150, %149 : vector<2x32xf32>
    %152 = arith.divf %150, %151 : vector<2x32xf32>
    %153 = arith.mulf %144, %95 : vector<2x32xf32>
    %154 = arith.mulf %138, %146 : vector<2x32xf32>
    %155 = arith.addf %153, %154 : vector<2x32xf32>
    %156 = math.tanh %155 : vector<2x32xf32>
    %157 = arith.mulf %152, %156 : vector<2x32xf32>
    %158 = vector.extract_strided_slice %32 {offsets = [0, 2, 0], sizes = [2, 1, 128], strides = [1, 1, 1]} : vector<2x8x128xf32> to vector<2x1x128xf32>
    %159 = vector.shape_cast %158 : vector<2x1x128xf32> to vector<2x128xf32>
    %c0_46 = arith.constant 0 : index
    %c0_47 = arith.constant 0 : index
    %160 = vector.load %arg4[%c0_46, %c0_47] : memref<32x128xf32, #tpu.memory_space<vmem>>, vector<32x128xf32>
    %cst_48 = arith.constant dense<0.000000e+00> : vector<2x128xf32>
    %161 = tpu.matmul %127, %160, %cst_48 {dimension_numbers = #tpu.dot_dimension_numbers<[1], [0], [0], [1], [0, 0, 1, 1], [], []>} : vector<2x32xf32>, vector<32x128xf32>, vector<2x128xf32> -> vector<2x128xf32>
    %162 = arith.addf %159, %161 : vector<2x128xf32>
    %163 = vector.extract_strided_slice %162 {offsets = [0, 0], sizes = [2, 32], strides = [1, 1]} : vector<2x128xf32> to vector<2x32xf32>
    %164 = arith.negf %163 : vector<2x32xf32>
    %165 = math.exp %164 : vector<2x32xf32>
    %cst_49 = arith.constant 1.000000e+00 : f32
    %166 = vector.broadcast %cst_49 : f32 to vector<2x32xf32>
    %167 = arith.addf %166, %165 : vector<2x32xf32>
    %168 = arith.divf %166, %167 : vector<2x32xf32>
    %169 = vector.extract_strided_slice %162 {offsets = [0, 32], sizes = [2, 32], strides = [1, 1]} : vector<2x128xf32> to vector<2x32xf32>
    %170 = arith.negf %169 : vector<2x32xf32>
    %171 = math.exp %170 : vector<2x32xf32>
    %cst_50 = arith.constant 1.000000e+00 : f32
    %172 = vector.broadcast %cst_50 : f32 to vector<2x32xf32>
    %173 = arith.addf %172, %171 : vector<2x32xf32>
    %174 = arith.divf %172, %173 : vector<2x32xf32>
    %175 = vector.extract_strided_slice %162 {offsets = [0, 64], sizes = [2, 32], strides = [1, 1]} : vector<2x128xf32> to vector<2x32xf32>
    %176 = math.tanh %175 : vector<2x32xf32>
    %177 = vector.extract_strided_slice %162 {offsets = [0, 96], sizes = [2, 32], strides = [1, 1]} : vector<2x128xf32> to vector<2x32xf32>
    %178 = arith.negf %177 : vector<2x32xf32>
    %179 = math.exp %178 : vector<2x32xf32>
    %cst_51 = arith.constant 1.000000e+00 : f32
    %180 = vector.broadcast %cst_51 : f32 to vector<2x32xf32>
    %181 = arith.addf %180, %179 : vector<2x32xf32>
    %182 = arith.divf %180, %181 : vector<2x32xf32>
    %183 = arith.mulf %174, %125 : vector<2x32xf32>
    %184 = arith.mulf %168, %176 : vector<2x32xf32>
    %185 = arith.addf %183, %184 : vector<2x32xf32>
    %186 = math.tanh %185 : vector<2x32xf32>
    %187 = arith.mulf %182, %186 : vector<2x32xf32>
    %188 = vector.extract_strided_slice %33 {offsets = [0, 5, 0], sizes = [2, 1, 128], strides = [1, 1, 1]} : vector<2x8x128xf32> to vector<2x1x128xf32>
    %189 = vector.shape_cast %188 : vector<2x1x128xf32> to vector<2x128xf32>
    %c0_52 = arith.constant 0 : index
    %c0_53 = arith.constant 0 : index
    %190 = vector.load %arg7[%c0_52, %c0_53] : memref<32x128xf32, #tpu.memory_space<vmem>>, vector<32x128xf32>
    %cst_54 = arith.constant dense<0.000000e+00> : vector<2x128xf32>
    %191 = tpu.matmul %157, %190, %cst_54 {dimension_numbers = #tpu.dot_dimension_numbers<[1], [0], [0], [1], [0, 0, 1, 1], [], []>} : vector<2x32xf32>, vector<32x128xf32>, vector<2x128xf32> -> vector<2x128xf32>
    %192 = arith.addf %189, %191 : vector<2x128xf32>
    %193 = vector.extract_strided_slice %192 {offsets = [0, 0], sizes = [2, 32], strides = [1, 1]} : vector<2x128xf32> to vector<2x32xf32>
    %194 = arith.negf %193 : vector<2x32xf32>
    %195 = math.exp %194 : vector<2x32xf32>
    %cst_55 = arith.constant 1.000000e+00 : f32
    %196 = vector.broadcast %cst_55 : f32 to vector<2x32xf32>
    %197 = arith.addf %196, %195 : vector<2x32xf32>
    %198 = arith.divf %196, %197 : vector<2x32xf32>
    %199 = vector.extract_strided_slice %192 {offsets = [0, 32], sizes = [2, 32], strides = [1, 1]} : vector<2x128xf32> to vector<2x32xf32>
    %200 = arith.negf %199 : vector<2x32xf32>
    %201 = math.exp %200 : vector<2x32xf32>
    %cst_56 = arith.constant 1.000000e+00 : f32
    %202 = vector.broadcast %cst_56 : f32 to vector<2x32xf32>
    %203 = arith.addf %202, %201 : vector<2x32xf32>
    %204 = arith.divf %202, %203 : vector<2x32xf32>
    %205 = vector.extract_strided_slice %192 {offsets = [0, 64], sizes = [2, 32], strides = [1, 1]} : vector<2x128xf32> to vector<2x32xf32>
    %206 = math.tanh %205 : vector<2x32xf32>
    %207 = vector.extract_strided_slice %192 {offsets = [0, 96], sizes = [2, 32], strides = [1, 1]} : vector<2x128xf32> to vector<2x32xf32>
    %208 = arith.negf %207 : vector<2x32xf32>
    %209 = math.exp %208 : vector<2x32xf32>
    %cst_57 = arith.constant 1.000000e+00 : f32
    %210 = vector.broadcast %cst_57 : f32 to vector<2x32xf32>
    %211 = arith.addf %210, %209 : vector<2x32xf32>
    %212 = arith.divf %210, %211 : vector<2x32xf32>
    %213 = arith.mulf %204, %155 : vector<2x32xf32>
    %214 = arith.mulf %198, %206 : vector<2x32xf32>
    %215 = arith.addf %213, %214 : vector<2x32xf32>
    %216 = math.tanh %215 : vector<2x32xf32>
    %217 = arith.mulf %212, %216 : vector<2x32xf32>
    %218 = vector.extract_strided_slice %32 {offsets = [0, 3, 0], sizes = [2, 1, 128], strides = [1, 1, 1]} : vector<2x8x128xf32> to vector<2x1x128xf32>
    %219 = vector.shape_cast %218 : vector<2x1x128xf32> to vector<2x128xf32>
    %c0_58 = arith.constant 0 : index
    %c0_59 = arith.constant 0 : index
    %220 = vector.load %arg4[%c0_58, %c0_59] : memref<32x128xf32, #tpu.memory_space<vmem>>, vector<32x128xf32>
    %cst_60 = arith.constant dense<0.000000e+00> : vector<2x128xf32>
    %221 = tpu.matmul %187, %220, %cst_60 {dimension_numbers = #tpu.dot_dimension_numbers<[1], [0], [0], [1], [0, 0, 1, 1], [], []>} : vector<2x32xf32>, vector<32x128xf32>, vector<2x128xf32> -> vector<2x128xf32>
    %222 = arith.addf %219, %221 : vector<2x128xf32>
    %223 = vector.extract_strided_slice %222 {offsets = [0, 0], sizes = [2, 32], strides = [1, 1]} : vector<2x128xf32> to vector<2x32xf32>
    %224 = arith.negf %223 : vector<2x32xf32>
    %225 = math.exp %224 : vector<2x32xf32>
    %cst_61 = arith.constant 1.000000e+00 : f32
    %226 = vector.broadcast %cst_61 : f32 to vector<2x32xf32>
    %227 = arith.addf %226, %225 : vector<2x32xf32>
    %228 = arith.divf %226, %227 : vector<2x32xf32>
    %229 = vector.extract_strided_slice %222 {offsets = [0, 32], sizes = [2, 32], strides = [1, 1]} : vector<2x128xf32> to vector<2x32xf32>
    %230 = arith.negf %229 : vector<2x32xf32>
    %231 = math.exp %230 : vector<2x32xf32>
    %cst_62 = arith.constant 1.000000e+00 : f32
    %232 = vector.broadcast %cst_62 : f32 to vector<2x32xf32>
    %233 = arith.addf %232, %231 : vector<2x32xf32>
    %234 = arith.divf %232, %233 : vector<2x32xf32>
    %235 = vector.extract_strided_slice %222 {offsets = [0, 64], sizes = [2, 32], strides = [1, 1]} : vector<2x128xf32> to vector<2x32xf32>
    %236 = math.tanh %235 : vector<2x32xf32>
    %237 = vector.extract_strided_slice %222 {offsets = [0, 96], sizes = [2, 32], strides = [1, 1]} : vector<2x128xf32> to vector<2x32xf32>
    %238 = arith.negf %237 : vector<2x32xf32>
    %239 = math.exp %238 : vector<2x32xf32>
    %cst_63 = arith.constant 1.000000e+00 : f32
    %240 = vector.broadcast %cst_63 : f32 to vector<2x32xf32>
    %241 = arith.addf %240, %239 : vector<2x32xf32>
    %242 = arith.divf %240, %241 : vector<2x32xf32>
    %243 = arith.mulf %234, %185 : vector<2x32xf32>
    %244 = arith.mulf %228, %236 : vector<2x32xf32>
    %245 = arith.addf %243, %244 : vector<2x32xf32>
    %246 = math.tanh %245 : vector<2x32xf32>
    %247 = arith.mulf %242, %246 : vector<2x32xf32>
    %248 = vector.extract_strided_slice %33 {offsets = [0, 4, 0], sizes = [2, 1, 128], strides = [1, 1, 1]} : vector<2x8x128xf32> to vector<2x1x128xf32>
    %249 = vector.shape_cast %248 : vector<2x1x128xf32> to vector<2x128xf32>
    %c0_64 = arith.constant 0 : index
    %c0_65 = arith.constant 0 : index
    %250 = vector.load %arg7[%c0_64, %c0_65] : memref<32x128xf32, #tpu.memory_space<vmem>>, vector<32x128xf32>
    %cst_66 = arith.constant dense<0.000000e+00> : vector<2x128xf32>
    %251 = tpu.matmul %217, %250, %cst_66 {dimension_numbers = #tpu.dot_dimension_numbers<[1], [0], [0], [1], [0, 0, 1, 1], [], []>} : vector<2x32xf32>, vector<32x128xf32>, vector<2x128xf32> -> vector<2x128xf32>
    %252 = arith.addf %249, %251 : vector<2x128xf32>
    %253 = vector.extract_strided_slice %252 {offsets = [0, 0], sizes = [2, 32], strides = [1, 1]} : vector<2x128xf32> to vector<2x32xf32>
    %254 = arith.negf %253 : vector<2x32xf32>
    %255 = math.exp %254 : vector<2x32xf32>
    %cst_67 = arith.constant 1.000000e+00 : f32
    %256 = vector.broadcast %cst_67 : f32 to vector<2x32xf32>
    %257 = arith.addf %256, %255 : vector<2x32xf32>
    %258 = arith.divf %256, %257 : vector<2x32xf32>
    %259 = vector.extract_strided_slice %252 {offsets = [0, 32], sizes = [2, 32], strides = [1, 1]} : vector<2x128xf32> to vector<2x32xf32>
    %260 = arith.negf %259 : vector<2x32xf32>
    %261 = math.exp %260 : vector<2x32xf32>
    %cst_68 = arith.constant 1.000000e+00 : f32
    %262 = vector.broadcast %cst_68 : f32 to vector<2x32xf32>
    %263 = arith.addf %262, %261 : vector<2x32xf32>
    %264 = arith.divf %262, %263 : vector<2x32xf32>
    %265 = vector.extract_strided_slice %252 {offsets = [0, 64], sizes = [2, 32], strides = [1, 1]} : vector<2x128xf32> to vector<2x32xf32>
    %266 = math.tanh %265 : vector<2x32xf32>
    %267 = vector.extract_strided_slice %252 {offsets = [0, 96], sizes = [2, 32], strides = [1, 1]} : vector<2x128xf32> to vector<2x32xf32>
    %268 = arith.negf %267 : vector<2x32xf32>
    %269 = math.exp %268 : vector<2x32xf32>
    %cst_69 = arith.constant 1.000000e+00 : f32
    %270 = vector.broadcast %cst_69 : f32 to vector<2x32xf32>
    %271 = arith.addf %270, %269 : vector<2x32xf32>
    %272 = arith.divf %270, %271 : vector<2x32xf32>
    %273 = arith.mulf %264, %215 : vector<2x32xf32>
    %274 = arith.mulf %258, %266 : vector<2x32xf32>
    %275 = arith.addf %273, %274 : vector<2x32xf32>
    %276 = math.tanh %275 : vector<2x32xf32>
    %277 = arith.mulf %272, %276 : vector<2x32xf32>
    %278 = vector.extract_strided_slice %32 {offsets = [0, 4, 0], sizes = [2, 1, 128], strides = [1, 1, 1]} : vector<2x8x128xf32> to vector<2x1x128xf32>
    %279 = vector.shape_cast %278 : vector<2x1x128xf32> to vector<2x128xf32>
    %c0_70 = arith.constant 0 : index
    %c0_71 = arith.constant 0 : index
    %280 = vector.load %arg4[%c0_70, %c0_71] : memref<32x128xf32, #tpu.memory_space<vmem>>, vector<32x128xf32>
    %cst_72 = arith.constant dense<0.000000e+00> : vector<2x128xf32>
    %281 = tpu.matmul %247, %280, %cst_72 {dimension_numbers = #tpu.dot_dimension_numbers<[1], [0], [0], [1], [0, 0, 1, 1], [], []>} : vector<2x32xf32>, vector<32x128xf32>, vector<2x128xf32> -> vector<2x128xf32>
    %282 = arith.addf %279, %281 : vector<2x128xf32>
    %283 = vector.extract_strided_slice %282 {offsets = [0, 0], sizes = [2, 32], strides = [1, 1]} : vector<2x128xf32> to vector<2x32xf32>
    %284 = arith.negf %283 : vector<2x32xf32>
    %285 = math.exp %284 : vector<2x32xf32>
    %cst_73 = arith.constant 1.000000e+00 : f32
    %286 = vector.broadcast %cst_73 : f32 to vector<2x32xf32>
    %287 = arith.addf %286, %285 : vector<2x32xf32>
    %288 = arith.divf %286, %287 : vector<2x32xf32>
    %289 = vector.extract_strided_slice %282 {offsets = [0, 32], sizes = [2, 32], strides = [1, 1]} : vector<2x128xf32> to vector<2x32xf32>
    %290 = arith.negf %289 : vector<2x32xf32>
    %291 = math.exp %290 : vector<2x32xf32>
    %cst_74 = arith.constant 1.000000e+00 : f32
    %292 = vector.broadcast %cst_74 : f32 to vector<2x32xf32>
    %293 = arith.addf %292, %291 : vector<2x32xf32>
    %294 = arith.divf %292, %293 : vector<2x32xf32>
    %295 = vector.extract_strided_slice %282 {offsets = [0, 64], sizes = [2, 32], strides = [1, 1]} : vector<2x128xf32> to vector<2x32xf32>
    %296 = math.tanh %295 : vector<2x32xf32>
    %297 = vector.extract_strided_slice %282 {offsets = [0, 96], sizes = [2, 32], strides = [1, 1]} : vector<2x128xf32> to vector<2x32xf32>
    %298 = arith.negf %297 : vector<2x32xf32>
    %299 = math.exp %298 : vector<2x32xf32>
    %cst_75 = arith.constant 1.000000e+00 : f32
    %300 = vector.broadcast %cst_75 : f32 to vector<2x32xf32>
    %301 = arith.addf %300, %299 : vector<2x32xf32>
    %302 = arith.divf %300, %301 : vector<2x32xf32>
    %303 = arith.mulf %294, %245 : vector<2x32xf32>
    %304 = arith.mulf %288, %296 : vector<2x32xf32>
    %305 = arith.addf %303, %304 : vector<2x32xf32>
    %306 = math.tanh %305 : vector<2x32xf32>
    %307 = arith.mulf %302, %306 : vector<2x32xf32>
    %308 = vector.extract_strided_slice %33 {offsets = [0, 3, 0], sizes = [2, 1, 128], strides = [1, 1, 1]} : vector<2x8x128xf32> to vector<2x1x128xf32>
    %309 = vector.shape_cast %308 : vector<2x1x128xf32> to vector<2x128xf32>
    %c0_76 = arith.constant 0 : index
    %c0_77 = arith.constant 0 : index
    %310 = vector.load %arg7[%c0_76, %c0_77] : memref<32x128xf32, #tpu.memory_space<vmem>>, vector<32x128xf32>
    %cst_78 = arith.constant dense<0.000000e+00> : vector<2x128xf32>
    %311 = tpu.matmul %277, %310, %cst_78 {dimension_numbers = #tpu.dot_dimension_numbers<[1], [0], [0], [1], [0, 0, 1, 1], [], []>} : vector<2x32xf32>, vector<32x128xf32>, vector<2x128xf32> -> vector<2x128xf32>
    %312 = arith.addf %309, %311 : vector<2x128xf32>
    %313 = vector.extract_strided_slice %312 {offsets = [0, 0], sizes = [2, 32], strides = [1, 1]} : vector<2x128xf32> to vector<2x32xf32>
    %314 = arith.negf %313 : vector<2x32xf32>
    %315 = math.exp %314 : vector<2x32xf32>
    %cst_79 = arith.constant 1.000000e+00 : f32
    %316 = vector.broadcast %cst_79 : f32 to vector<2x32xf32>
    %317 = arith.addf %316, %315 : vector<2x32xf32>
    %318 = arith.divf %316, %317 : vector<2x32xf32>
    %319 = vector.extract_strided_slice %312 {offsets = [0, 32], sizes = [2, 32], strides = [1, 1]} : vector<2x128xf32> to vector<2x32xf32>
    %320 = arith.negf %319 : vector<2x32xf32>
    %321 = math.exp %320 : vector<2x32xf32>
    %cst_80 = arith.constant 1.000000e+00 : f32
    %322 = vector.broadcast %cst_80 : f32 to vector<2x32xf32>
    %323 = arith.addf %322, %321 : vector<2x32xf32>
    %324 = arith.divf %322, %323 : vector<2x32xf32>
    %325 = vector.extract_strided_slice %312 {offsets = [0, 64], sizes = [2, 32], strides = [1, 1]} : vector<2x128xf32> to vector<2x32xf32>
    %326 = math.tanh %325 : vector<2x32xf32>
    %327 = vector.extract_strided_slice %312 {offsets = [0, 96], sizes = [2, 32], strides = [1, 1]} : vector<2x128xf32> to vector<2x32xf32>
    %328 = arith.negf %327 : vector<2x32xf32>
    %329 = math.exp %328 : vector<2x32xf32>
    %cst_81 = arith.constant 1.000000e+00 : f32
    %330 = vector.broadcast %cst_81 : f32 to vector<2x32xf32>
    %331 = arith.addf %330, %329 : vector<2x32xf32>
    %332 = arith.divf %330, %331 : vector<2x32xf32>
    %333 = arith.mulf %324, %275 : vector<2x32xf32>
    %334 = arith.mulf %318, %326 : vector<2x32xf32>
    %335 = arith.addf %333, %334 : vector<2x32xf32>
    %336 = math.tanh %335 : vector<2x32xf32>
    %337 = arith.mulf %332, %336 : vector<2x32xf32>
    %338 = vector.extract_strided_slice %32 {offsets = [0, 5, 0], sizes = [2, 1, 128], strides = [1, 1, 1]} : vector<2x8x128xf32> to vector<2x1x128xf32>
    %339 = vector.shape_cast %338 : vector<2x1x128xf32> to vector<2x128xf32>
    %c0_82 = arith.constant 0 : index
    %c0_83 = arith.constant 0 : index
    %340 = vector.load %arg4[%c0_82, %c0_83] : memref<32x128xf32, #tpu.memory_space<vmem>>, vector<32x128xf32>
    %cst_84 = arith.constant dense<0.000000e+00> : vector<2x128xf32>
    %341 = tpu.matmul %307, %340, %cst_84 {dimension_numbers = #tpu.dot_dimension_numbers<[1], [0], [0], [1], [0, 0, 1, 1], [], []>} : vector<2x32xf32>, vector<32x128xf32>, vector<2x128xf32> -> vector<2x128xf32>
    %342 = arith.addf %339, %341 : vector<2x128xf32>
    %343 = vector.extract_strided_slice %342 {offsets = [0, 0], sizes = [2, 32], strides = [1, 1]} : vector<2x128xf32> to vector<2x32xf32>
    %344 = arith.negf %343 : vector<2x32xf32>
    %345 = math.exp %344 : vector<2x32xf32>
    %cst_85 = arith.constant 1.000000e+00 : f32
    %346 = vector.broadcast %cst_85 : f32 to vector<2x32xf32>
    %347 = arith.addf %346, %345 : vector<2x32xf32>
    %348 = arith.divf %346, %347 : vector<2x32xf32>
    %349 = vector.extract_strided_slice %342 {offsets = [0, 32], sizes = [2, 32], strides = [1, 1]} : vector<2x128xf32> to vector<2x32xf32>
    %350 = arith.negf %349 : vector<2x32xf32>
    %351 = math.exp %350 : vector<2x32xf32>
    %cst_86 = arith.constant 1.000000e+00 : f32
    %352 = vector.broadcast %cst_86 : f32 to vector<2x32xf32>
    %353 = arith.addf %352, %351 : vector<2x32xf32>
    %354 = arith.divf %352, %353 : vector<2x32xf32>
    %355 = vector.extract_strided_slice %342 {offsets = [0, 64], sizes = [2, 32], strides = [1, 1]} : vector<2x128xf32> to vector<2x32xf32>
    %356 = math.tanh %355 : vector<2x32xf32>
    %357 = vector.extract_strided_slice %342 {offsets = [0, 96], sizes = [2, 32], strides = [1, 1]} : vector<2x128xf32> to vector<2x32xf32>
    %358 = arith.negf %357 : vector<2x32xf32>
    %359 = math.exp %358 : vector<2x32xf32>
    %cst_87 = arith.constant 1.000000e+00 : f32
    %360 = vector.broadcast %cst_87 : f32 to vector<2x32xf32>
    %361 = arith.addf %360, %359 : vector<2x32xf32>
    %362 = arith.divf %360, %361 : vector<2x32xf32>
    %363 = arith.mulf %354, %305 : vector<2x32xf32>
    %364 = arith.mulf %348, %356 : vector<2x32xf32>
    %365 = arith.addf %363, %364 : vector<2x32xf32>
    %366 = math.tanh %365 : vector<2x32xf32>
    %367 = arith.mulf %362, %366 : vector<2x32xf32>
    %368 = vector.extract_strided_slice %33 {offsets = [0, 2, 0], sizes = [2, 1, 128], strides = [1, 1, 1]} : vector<2x8x128xf32> to vector<2x1x128xf32>
    %369 = vector.shape_cast %368 : vector<2x1x128xf32> to vector<2x128xf32>
    %c0_88 = arith.constant 0 : index
    %c0_89 = arith.constant 0 : index
    %370 = vector.load %arg7[%c0_88, %c0_89] : memref<32x128xf32, #tpu.memory_space<vmem>>, vector<32x128xf32>
    %cst_90 = arith.constant dense<0.000000e+00> : vector<2x128xf32>
    %371 = tpu.matmul %337, %370, %cst_90 {dimension_numbers = #tpu.dot_dimension_numbers<[1], [0], [0], [1], [0, 0, 1, 1], [], []>} : vector<2x32xf32>, vector<32x128xf32>, vector<2x128xf32> -> vector<2x128xf32>
    %372 = arith.addf %369, %371 : vector<2x128xf32>
    %373 = vector.extract_strided_slice %372 {offsets = [0, 0], sizes = [2, 32], strides = [1, 1]} : vector<2x128xf32> to vector<2x32xf32>
    %374 = arith.negf %373 : vector<2x32xf32>
    %375 = math.exp %374 : vector<2x32xf32>
    %cst_91 = arith.constant 1.000000e+00 : f32
    %376 = vector.broadcast %cst_91 : f32 to vector<2x32xf32>
    %377 = arith.addf %376, %375 : vector<2x32xf32>
    %378 = arith.divf %376, %377 : vector<2x32xf32>
    %379 = vector.extract_strided_slice %372 {offsets = [0, 32], sizes = [2, 32], strides = [1, 1]} : vector<2x128xf32> to vector<2x32xf32>
    %380 = arith.negf %379 : vector<2x32xf32>
    %381 = math.exp %380 : vector<2x32xf32>
    %cst_92 = arith.constant 1.000000e+00 : f32
    %382 = vector.broadcast %cst_92 : f32 to vector<2x32xf32>
    %383 = arith.addf %382, %381 : vector<2x32xf32>
    %384 = arith.divf %382, %383 : vector<2x32xf32>
    %385 = vector.extract_strided_slice %372 {offsets = [0, 64], sizes = [2, 32], strides = [1, 1]} : vector<2x128xf32> to vector<2x32xf32>
    %386 = math.tanh %385 : vector<2x32xf32>
    %387 = vector.extract_strided_slice %372 {offsets = [0, 96], sizes = [2, 32], strides = [1, 1]} : vector<2x128xf32> to vector<2x32xf32>
    %388 = arith.negf %387 : vector<2x32xf32>
    %389 = math.exp %388 : vector<2x32xf32>
    %cst_93 = arith.constant 1.000000e+00 : f32
    %390 = vector.broadcast %cst_93 : f32 to vector<2x32xf32>
    %391 = arith.addf %390, %389 : vector<2x32xf32>
    %392 = arith.divf %390, %391 : vector<2x32xf32>
    %393 = arith.mulf %384, %335 : vector<2x32xf32>
    %394 = arith.mulf %378, %386 : vector<2x32xf32>
    %395 = arith.addf %393, %394 : vector<2x32xf32>
    %396 = math.tanh %395 : vector<2x32xf32>
    %397 = arith.mulf %392, %396 : vector<2x32xf32>
    %398 = vector.extract_strided_slice %32 {offsets = [0, 6, 0], sizes = [2, 1, 128], strides = [1, 1, 1]} : vector<2x8x128xf32> to vector<2x1x128xf32>
    %399 = vector.shape_cast %398 : vector<2x1x128xf32> to vector<2x128xf32>
    %c0_94 = arith.constant 0 : index
    %c0_95 = arith.constant 0 : index
    %400 = vector.load %arg4[%c0_94, %c0_95] : memref<32x128xf32, #tpu.memory_space<vmem>>, vector<32x128xf32>
    %cst_96 = arith.constant dense<0.000000e+00> : vector<2x128xf32>
    %401 = tpu.matmul %367, %400, %cst_96 {dimension_numbers = #tpu.dot_dimension_numbers<[1], [0], [0], [1], [0, 0, 1, 1], [], []>} : vector<2x32xf32>, vector<32x128xf32>, vector<2x128xf32> -> vector<2x128xf32>
    %402 = arith.addf %399, %401 : vector<2x128xf32>
    %403 = vector.extract_strided_slice %402 {offsets = [0, 0], sizes = [2, 32], strides = [1, 1]} : vector<2x128xf32> to vector<2x32xf32>
    %404 = arith.negf %403 : vector<2x32xf32>
    %405 = math.exp %404 : vector<2x32xf32>
    %cst_97 = arith.constant 1.000000e+00 : f32
    %406 = vector.broadcast %cst_97 : f32 to vector<2x32xf32>
    %407 = arith.addf %406, %405 : vector<2x32xf32>
    %408 = arith.divf %406, %407 : vector<2x32xf32>
    %409 = vector.extract_strided_slice %402 {offsets = [0, 32], sizes = [2, 32], strides = [1, 1]} : vector<2x128xf32> to vector<2x32xf32>
    %410 = arith.negf %409 : vector<2x32xf32>
    %411 = math.exp %410 : vector<2x32xf32>
    %cst_98 = arith.constant 1.000000e+00 : f32
    %412 = vector.broadcast %cst_98 : f32 to vector<2x32xf32>
    %413 = arith.addf %412, %411 : vector<2x32xf32>
    %414 = arith.divf %412, %413 : vector<2x32xf32>
    %415 = vector.extract_strided_slice %402 {offsets = [0, 64], sizes = [2, 32], strides = [1, 1]} : vector<2x128xf32> to vector<2x32xf32>
    %416 = math.tanh %415 : vector<2x32xf32>
    %417 = vector.extract_strided_slice %402 {offsets = [0, 96], sizes = [2, 32], strides = [1, 1]} : vector<2x128xf32> to vector<2x32xf32>
    %418 = arith.negf %417 : vector<2x32xf32>
    %419 = math.exp %418 : vector<2x32xf32>
    %cst_99 = arith.constant 1.000000e+00 : f32
    %420 = vector.broadcast %cst_99 : f32 to vector<2x32xf32>
    %421 = arith.addf %420, %419 : vector<2x32xf32>
    %422 = arith.divf %420, %421 : vector<2x32xf32>
    %423 = arith.mulf %414, %365 : vector<2x32xf32>
    %424 = arith.mulf %408, %416 : vector<2x32xf32>
    %425 = arith.addf %423, %424 : vector<2x32xf32>
    %426 = math.tanh %425 : vector<2x32xf32>
    %427 = arith.mulf %422, %426 : vector<2x32xf32>
    %428 = vector.extract_strided_slice %33 {offsets = [0, 1, 0], sizes = [2, 1, 128], strides = [1, 1, 1]} : vector<2x8x128xf32> to vector<2x1x128xf32>
    %429 = vector.shape_cast %428 : vector<2x1x128xf32> to vector<2x128xf32>
    %c0_100 = arith.constant 0 : index
    %c0_101 = arith.constant 0 : index
    %430 = vector.load %arg7[%c0_100, %c0_101] : memref<32x128xf32, #tpu.memory_space<vmem>>, vector<32x128xf32>
    %cst_102 = arith.constant dense<0.000000e+00> : vector<2x128xf32>
    %431 = tpu.matmul %397, %430, %cst_102 {dimension_numbers = #tpu.dot_dimension_numbers<[1], [0], [0], [1], [0, 0, 1, 1], [], []>} : vector<2x32xf32>, vector<32x128xf32>, vector<2x128xf32> -> vector<2x128xf32>
    %432 = arith.addf %429, %431 : vector<2x128xf32>
    %433 = vector.extract_strided_slice %432 {offsets = [0, 0], sizes = [2, 32], strides = [1, 1]} : vector<2x128xf32> to vector<2x32xf32>
    %434 = arith.negf %433 : vector<2x32xf32>
    %435 = math.exp %434 : vector<2x32xf32>
    %cst_103 = arith.constant 1.000000e+00 : f32
    %436 = vector.broadcast %cst_103 : f32 to vector<2x32xf32>
    %437 = arith.addf %436, %435 : vector<2x32xf32>
    %438 = arith.divf %436, %437 : vector<2x32xf32>
    %439 = vector.extract_strided_slice %432 {offsets = [0, 32], sizes = [2, 32], strides = [1, 1]} : vector<2x128xf32> to vector<2x32xf32>
    %440 = arith.negf %439 : vector<2x32xf32>
    %441 = math.exp %440 : vector<2x32xf32>
    %cst_104 = arith.constant 1.000000e+00 : f32
    %442 = vector.broadcast %cst_104 : f32 to vector<2x32xf32>
    %443 = arith.addf %442, %441 : vector<2x32xf32>
    %444 = arith.divf %442, %443 : vector<2x32xf32>
    %445 = vector.extract_strided_slice %432 {offsets = [0, 64], sizes = [2, 32], strides = [1, 1]} : vector<2x128xf32> to vector<2x32xf32>
    %446 = math.tanh %445 : vector<2x32xf32>
    %447 = vector.extract_strided_slice %432 {offsets = [0, 96], sizes = [2, 32], strides = [1, 1]} : vector<2x128xf32> to vector<2x32xf32>
    %448 = arith.negf %447 : vector<2x32xf32>
    %449 = math.exp %448 : vector<2x32xf32>
    %cst_105 = arith.constant 1.000000e+00 : f32
    %450 = vector.broadcast %cst_105 : f32 to vector<2x32xf32>
    %451 = arith.addf %450, %449 : vector<2x32xf32>
    %452 = arith.divf %450, %451 : vector<2x32xf32>
    %453 = arith.mulf %444, %395 : vector<2x32xf32>
    %454 = arith.mulf %438, %446 : vector<2x32xf32>
    %455 = arith.addf %453, %454 : vector<2x32xf32>
    %456 = math.tanh %455 : vector<2x32xf32>
    %457 = arith.mulf %452, %456 : vector<2x32xf32>
    %458 = vector.extract_strided_slice %32 {offsets = [0, 7, 0], sizes = [2, 1, 128], strides = [1, 1, 1]} : vector<2x8x128xf32> to vector<2x1x128xf32>
    %459 = vector.shape_cast %458 : vector<2x1x128xf32> to vector<2x128xf32>
    %c0_106 = arith.constant 0 : index
    %c0_107 = arith.constant 0 : index
    %460 = vector.load %arg4[%c0_106, %c0_107] : memref<32x128xf32, #tpu.memory_space<vmem>>, vector<32x128xf32>
    %cst_108 = arith.constant dense<0.000000e+00> : vector<2x128xf32>
    %461 = tpu.matmul %427, %460, %cst_108 {dimension_numbers = #tpu.dot_dimension_numbers<[1], [0], [0], [1], [0, 0, 1, 1], [], []>} : vector<2x32xf32>, vector<32x128xf32>, vector<2x128xf32> -> vector<2x128xf32>
    %462 = arith.addf %459, %461 : vector<2x128xf32>
    %463 = vector.extract_strided_slice %462 {offsets = [0, 0], sizes = [2, 32], strides = [1, 1]} : vector<2x128xf32> to vector<2x32xf32>
    %464 = arith.negf %463 : vector<2x32xf32>
    %465 = math.exp %464 : vector<2x32xf32>
    %cst_109 = arith.constant 1.000000e+00 : f32
    %466 = vector.broadcast %cst_109 : f32 to vector<2x32xf32>
    %467 = arith.addf %466, %465 : vector<2x32xf32>
    %468 = arith.divf %466, %467 : vector<2x32xf32>
    %469 = vector.extract_strided_slice %462 {offsets = [0, 32], sizes = [2, 32], strides = [1, 1]} : vector<2x128xf32> to vector<2x32xf32>
    %470 = arith.negf %469 : vector<2x32xf32>
    %471 = math.exp %470 : vector<2x32xf32>
    %cst_110 = arith.constant 1.000000e+00 : f32
    %472 = vector.broadcast %cst_110 : f32 to vector<2x32xf32>
    %473 = arith.addf %472, %471 : vector<2x32xf32>
    %474 = arith.divf %472, %473 : vector<2x32xf32>
    %475 = vector.extract_strided_slice %462 {offsets = [0, 64], sizes = [2, 32], strides = [1, 1]} : vector<2x128xf32> to vector<2x32xf32>
    %476 = math.tanh %475 : vector<2x32xf32>
    %477 = vector.extract_strided_slice %462 {offsets = [0, 96], sizes = [2, 32], strides = [1, 1]} : vector<2x128xf32> to vector<2x32xf32>
    %478 = arith.negf %477 : vector<2x32xf32>
    %479 = math.exp %478 : vector<2x32xf32>
    %cst_111 = arith.constant 1.000000e+00 : f32
    %480 = vector.broadcast %cst_111 : f32 to vector<2x32xf32>
    %481 = arith.addf %480, %479 : vector<2x32xf32>
    %482 = arith.divf %480, %481 : vector<2x32xf32>
    %483 = arith.mulf %474, %425 : vector<2x32xf32>
    %484 = arith.mulf %468, %476 : vector<2x32xf32>
    %485 = arith.addf %483, %484 : vector<2x32xf32>
    %486 = math.tanh %485 : vector<2x32xf32>
    %487 = arith.mulf %482, %486 : vector<2x32xf32>
    %488 = vector.extract_strided_slice %33 {offsets = [0, 0, 0], sizes = [2, 1, 128], strides = [1, 1, 1]} : vector<2x8x128xf32> to vector<2x1x128xf32>
    %489 = vector.shape_cast %488 : vector<2x1x128xf32> to vector<2x128xf32>
    %c0_112 = arith.constant 0 : index
    %c0_113 = arith.constant 0 : index
    %490 = vector.load %arg7[%c0_112, %c0_113] : memref<32x128xf32, #tpu.memory_space<vmem>>, vector<32x128xf32>
    %cst_114 = arith.constant dense<0.000000e+00> : vector<2x128xf32>
    %491 = tpu.matmul %457, %490, %cst_114 {dimension_numbers = #tpu.dot_dimension_numbers<[1], [0], [0], [1], [0, 0, 1, 1], [], []>} : vector<2x32xf32>, vector<32x128xf32>, vector<2x128xf32> -> vector<2x128xf32>
    %492 = arith.addf %489, %491 : vector<2x128xf32>
    %493 = vector.extract_strided_slice %492 {offsets = [0, 0], sizes = [2, 32], strides = [1, 1]} : vector<2x128xf32> to vector<2x32xf32>
    %494 = arith.negf %493 : vector<2x32xf32>
    %495 = math.exp %494 : vector<2x32xf32>
    %cst_115 = arith.constant 1.000000e+00 : f32
    %496 = vector.broadcast %cst_115 : f32 to vector<2x32xf32>
    %497 = arith.addf %496, %495 : vector<2x32xf32>
    %498 = arith.divf %496, %497 : vector<2x32xf32>
    %499 = vector.extract_strided_slice %492 {offsets = [0, 32], sizes = [2, 32], strides = [1, 1]} : vector<2x128xf32> to vector<2x32xf32>
    %500 = arith.negf %499 : vector<2x32xf32>
    %501 = math.exp %500 : vector<2x32xf32>
    %cst_116 = arith.constant 1.000000e+00 : f32
    %502 = vector.broadcast %cst_116 : f32 to vector<2x32xf32>
    %503 = arith.addf %502, %501 : vector<2x32xf32>
    %504 = arith.divf %502, %503 : vector<2x32xf32>
    %505 = vector.extract_strided_slice %492 {offsets = [0, 64], sizes = [2, 32], strides = [1, 1]} : vector<2x128xf32> to vector<2x32xf32>
    %506 = math.tanh %505 : vector<2x32xf32>
    %507 = vector.extract_strided_slice %492 {offsets = [0, 96], sizes = [2, 32], strides = [1, 1]} : vector<2x128xf32> to vector<2x32xf32>
    %508 = arith.negf %507 : vector<2x32xf32>
    %509 = math.exp %508 : vector<2x32xf32>
    %cst_117 = arith.constant 1.000000e+00 : f32
    %510 = vector.broadcast %cst_117 : f32 to vector<2x32xf32>
    %511 = arith.addf %510, %509 : vector<2x32xf32>
    %512 = arith.divf %510, %511 : vector<2x32xf32>
    %513 = arith.mulf %504, %455 : vector<2x32xf32>
    %514 = arith.mulf %498, %506 : vector<2x32xf32>
    %515 = arith.addf %513, %514 : vector<2x32xf32>
    %516 = math.tanh %515 : vector<2x32xf32>
    %517 = arith.mulf %512, %516 : vector<2x32xf32>
    %518 = tpu.concatenate %67, %517 in 1 : vector<2x32xf32>, vector<2x32xf32> -> vector<2x64xf32>
    %519 = tpu.concatenate %127, %457 in 1 : vector<2x32xf32>, vector<2x32xf32> -> vector<2x64xf32>
    %520 = tpu.concatenate %187, %397 in 1 : vector<2x32xf32>, vector<2x32xf32> -> vector<2x64xf32>
    %521 = tpu.concatenate %247, %337 in 1 : vector<2x32xf32>, vector<2x32xf32> -> vector<2x64xf32>
    %522 = tpu.concatenate %307, %277 in 1 : vector<2x32xf32>, vector<2x32xf32> -> vector<2x64xf32>
    %523 = tpu.concatenate %367, %217 in 1 : vector<2x32xf32>, vector<2x32xf32> -> vector<2x64xf32>
    %524 = tpu.concatenate %427, %157 in 1 : vector<2x32xf32>, vector<2x32xf32> -> vector<2x64xf32>
    %525 = tpu.concatenate %487, %97 in 1 : vector<2x32xf32>, vector<2x32xf32> -> vector<2x64xf32>
    %c0_118 = arith.constant 0 : index
    %c0_119 = arith.constant 0 : index
    %526 = vector.load %arg9[%c0_118, %c0_119] : memref<64x1xf32, #tpu.memory_space<vmem>>, vector<64x1xf32>
    %cst_120 = arith.constant dense<0.000000e+00> : vector<2x1xf32>
    %527 = tpu.matmul %518, %526, %cst_120 {dimension_numbers = #tpu.dot_dimension_numbers<[1], [0], [0], [1], [0, 0, 1, 1], [], []>} : vector<2x64xf32>, vector<64x1xf32>, vector<2x1xf32> -> vector<2x1xf32>
    %c0_121 = arith.constant 0 : index
    %c0_122 = arith.constant 0 : index
    %528 = vector.load %arg9[%c0_121, %c0_122] : memref<64x1xf32, #tpu.memory_space<vmem>>, vector<64x1xf32>
    %cst_123 = arith.constant dense<0.000000e+00> : vector<2x1xf32>
    %529 = tpu.matmul %519, %528, %cst_123 {dimension_numbers = #tpu.dot_dimension_numbers<[1], [0], [0], [1], [0, 0, 1, 1], [], []>} : vector<2x64xf32>, vector<64x1xf32>, vector<2x1xf32> -> vector<2x1xf32>
    %c0_124 = arith.constant 0 : index
    %c0_125 = arith.constant 0 : index
    %530 = vector.load %arg9[%c0_124, %c0_125] : memref<64x1xf32, #tpu.memory_space<vmem>>, vector<64x1xf32>
    %cst_126 = arith.constant dense<0.000000e+00> : vector<2x1xf32>
    %531 = tpu.matmul %520, %530, %cst_126 {dimension_numbers = #tpu.dot_dimension_numbers<[1], [0], [0], [1], [0, 0, 1, 1], [], []>} : vector<2x64xf32>, vector<64x1xf32>, vector<2x1xf32> -> vector<2x1xf32>
    %c0_127 = arith.constant 0 : index
    %c0_128 = arith.constant 0 : index
    %532 = vector.load %arg9[%c0_127, %c0_128] : memref<64x1xf32, #tpu.memory_space<vmem>>, vector<64x1xf32>
    %cst_129 = arith.constant dense<0.000000e+00> : vector<2x1xf32>
    %533 = tpu.matmul %521, %532, %cst_129 {dimension_numbers = #tpu.dot_dimension_numbers<[1], [0], [0], [1], [0, 0, 1, 1], [], []>} : vector<2x64xf32>, vector<64x1xf32>, vector<2x1xf32> -> vector<2x1xf32>
    %c0_130 = arith.constant 0 : index
    %c0_131 = arith.constant 0 : index
    %534 = vector.load %arg9[%c0_130, %c0_131] : memref<64x1xf32, #tpu.memory_space<vmem>>, vector<64x1xf32>
    %cst_132 = arith.constant dense<0.000000e+00> : vector<2x1xf32>
    %535 = tpu.matmul %522, %534, %cst_132 {dimension_numbers = #tpu.dot_dimension_numbers<[1], [0], [0], [1], [0, 0, 1, 1], [], []>} : vector<2x64xf32>, vector<64x1xf32>, vector<2x1xf32> -> vector<2x1xf32>
    %c0_133 = arith.constant 0 : index
    %c0_134 = arith.constant 0 : index
    %536 = vector.load %arg9[%c0_133, %c0_134] : memref<64x1xf32, #tpu.memory_space<vmem>>, vector<64x1xf32>
    %cst_135 = arith.constant dense<0.000000e+00> : vector<2x1xf32>
    %537 = tpu.matmul %523, %536, %cst_135 {dimension_numbers = #tpu.dot_dimension_numbers<[1], [0], [0], [1], [0, 0, 1, 1], [], []>} : vector<2x64xf32>, vector<64x1xf32>, vector<2x1xf32> -> vector<2x1xf32>
    %c0_136 = arith.constant 0 : index
    %c0_137 = arith.constant 0 : index
    %538 = vector.load %arg9[%c0_136, %c0_137] : memref<64x1xf32, #tpu.memory_space<vmem>>, vector<64x1xf32>
    %cst_138 = arith.constant dense<0.000000e+00> : vector<2x1xf32>
    %539 = tpu.matmul %524, %538, %cst_138 {dimension_numbers = #tpu.dot_dimension_numbers<[1], [0], [0], [1], [0, 0, 1, 1], [], []>} : vector<2x64xf32>, vector<64x1xf32>, vector<2x1xf32> -> vector<2x1xf32>
    %c0_139 = arith.constant 0 : index
    %c0_140 = arith.constant 0 : index
    %540 = vector.load %arg9[%c0_139, %c0_140] : memref<64x1xf32, #tpu.memory_space<vmem>>, vector<64x1xf32>
    %cst_141 = arith.constant dense<0.000000e+00> : vector<2x1xf32>
    %541 = tpu.matmul %525, %540, %cst_141 {dimension_numbers = #tpu.dot_dimension_numbers<[1], [0], [0], [1], [0, 0, 1, 1], [], []>} : vector<2x64xf32>, vector<64x1xf32>, vector<2x1xf32> -> vector<2x1xf32>
    %542 = tpu.concatenate %527, %529, %531, %533, %535, %537, %539, %541 in 1 : vector<2x1xf32>, vector<2x1xf32>, vector<2x1xf32>, vector<2x1xf32>, vector<2x1xf32>, vector<2x1xf32>, vector<2x1xf32>, vector<2x1xf32> -> vector<2x8xf32>
    %c0_142 = arith.constant 0 : index
    %c0_143 = arith.constant 0 : index
    %543 = vector.load %arg10[%c0_142, %c0_143] : memref<1x1xf32, #tpu.memory_space<vmem>>, vector<1x1xf32>
    %544 = vector.broadcast %543 : vector<1x1xf32> to vector<2x8xf32>
    %545 = arith.addf %542, %544 : vector<2x8xf32>
    %cst_144 = arith.constant dense<0xFF800000> : vector<2xf32>
    %546 = vector.multi_reduction <maximumf>, %545, %cst_144 [1] : vector<2x8xf32> to vector<2xf32>
    %547 = vector.shape_cast %546 : vector<2xf32> to vector<2x1xf32>
    %548 = vector.broadcast %547 : vector<2x1xf32> to vector<2x8xf32>
    %549 = arith.subf %545, %548 : vector<2x8xf32>
    %550 = math.exp %549 : vector<2x8xf32>
    %cst_145 = arith.constant dense<0.000000e+00> : vector<2xf32>
    %551 = vector.multi_reduction <add>, %550, %cst_145 [1] : vector<2x8xf32> to vector<2xf32>
    %552 = vector.shape_cast %551 : vector<2xf32> to vector<2x1xf32>
    %553 = tpu.reciprocal %552 {approx = true} : vector<2x1xf32> -> vector<2x1xf32>
    %554 = vector.broadcast %553 : vector<2x1xf32> to vector<2x8xf32>
    %555 = arith.mulf %550, %554 : vector<2x8xf32>
    %cst_146 = arith.constant 0.000000e+00 : f32
    %556 = vector.broadcast %cst_146 : f32 to vector<2x64xf32>
    %557 = vector.extract_strided_slice %555 {offsets = [0, 0], sizes = [2, 1], strides = [1, 1]} : vector<2x8xf32> to vector<2x1xf32>
    %558 = vector.broadcast %557 : vector<2x1xf32> to vector<2x64xf32>
    %559 = arith.mulf %558, %518 : vector<2x64xf32>
    %560 = arith.addf %556, %559 : vector<2x64xf32>
    %561 = vector.extract_strided_slice %555 {offsets = [0, 1], sizes = [2, 1], strides = [1, 1]} : vector<2x8xf32> to vector<2x1xf32>
    %562 = vector.broadcast %561 : vector<2x1xf32> to vector<2x64xf32>
    %563 = arith.mulf %562, %519 : vector<2x64xf32>
    %564 = arith.addf %560, %563 : vector<2x64xf32>
    %565 = vector.extract_strided_slice %555 {offsets = [0, 2], sizes = [2, 1], strides = [1, 1]} : vector<2x8xf32> to vector<2x1xf32>
    %566 = vector.broadcast %565 : vector<2x1xf32> to vector<2x64xf32>
    %567 = arith.mulf %566, %520 : vector<2x64xf32>
    %568 = arith.addf %564, %567 : vector<2x64xf32>
    %569 = vector.extract_strided_slice %555 {offsets = [0, 3], sizes = [2, 1], strides = [1, 1]} : vector<2x8xf32> to vector<2x1xf32>
    %570 = vector.broadcast %569 : vector<2x1xf32> to vector<2x64xf32>
    %571 = arith.mulf %570, %521 : vector<2x64xf32>
    %572 = arith.addf %568, %571 : vector<2x64xf32>
    %573 = vector.extract_strided_slice %555 {offsets = [0, 4], sizes = [2, 1], strides = [1, 1]} : vector<2x8xf32> to vector<2x1xf32>
    %574 = vector.broadcast %573 : vector<2x1xf32> to vector<2x64xf32>
    %575 = arith.mulf %574, %522 : vector<2x64xf32>
    %576 = arith.addf %572, %575 : vector<2x64xf32>
    %577 = vector.extract_strided_slice %555 {offsets = [0, 5], sizes = [2, 1], strides = [1, 1]} : vector<2x8xf32> to vector<2x1xf32>
    %578 = vector.broadcast %577 : vector<2x1xf32> to vector<2x64xf32>
    %579 = arith.mulf %578, %523 : vector<2x64xf32>
    %580 = arith.addf %576, %579 : vector<2x64xf32>
    %581 = vector.extract_strided_slice %555 {offsets = [0, 6], sizes = [2, 1], strides = [1, 1]} : vector<2x8xf32> to vector<2x1xf32>
    %582 = vector.broadcast %581 : vector<2x1xf32> to vector<2x64xf32>
    %583 = arith.mulf %582, %524 : vector<2x64xf32>
    %584 = arith.addf %580, %583 : vector<2x64xf32>
    %585 = vector.extract_strided_slice %555 {offsets = [0, 7], sizes = [2, 1], strides = [1, 1]} : vector<2x8xf32> to vector<2x1xf32>
    %586 = vector.broadcast %585 : vector<2x1xf32> to vector<2x64xf32>
    %587 = arith.mulf %586, %525 : vector<2x64xf32>
    %588 = arith.addf %584, %587 : vector<2x64xf32>
    %c0_147 = arith.constant 0 : index
    %c0_148 = arith.constant 0 : index
    %589 = vector.load %arg11[%c0_147, %c0_148] : memref<64x32xf32, #tpu.memory_space<vmem>>, vector<64x32xf32>
    %cst_149 = arith.constant dense<0.000000e+00> : vector<2x32xf32>
    %590 = tpu.matmul %588, %589, %cst_149 {dimension_numbers = #tpu.dot_dimension_numbers<[1], [0], [0], [1], [0, 0, 1, 1], [], []>} : vector<2x64xf32>, vector<64x32xf32>, vector<2x32xf32> -> vector<2x32xf32>
    %c0_150 = arith.constant 0 : index
    %c0_151 = arith.constant 0 : index
    %591 = vector.load %arg12[%c0_150, %c0_151] : memref<1x32xf32, #tpu.memory_space<vmem>>, vector<1x32xf32>
    %592 = vector.broadcast %591 : vector<1x32xf32> to vector<2x32xf32>
    %593 = arith.addf %590, %592 : vector<2x32xf32>
    %c0_152 = arith.constant 0 : index
    %c0_153 = arith.constant 0 : index
    %594 = vector.load %arg13[%c0_152, %c0_153] : memref<1x32xf32, #tpu.memory_space<vmem>>, vector<1x32xf32>
    %595 = vector.broadcast %594 : vector<1x32xf32> to vector<2x32xf32>
    %596 = arith.mulf %593, %595 : vector<2x32xf32>
    %c0_154 = arith.constant 0 : index
    %c0_155 = arith.constant 0 : index
    %597 = vector.load %arg14[%c0_154, %c0_155] : memref<1x32xf32, #tpu.memory_space<vmem>>, vector<1x32xf32>
    %598 = vector.broadcast %597 : vector<1x32xf32> to vector<2x32xf32>
    %599 = arith.addf %596, %598 : vector<2x32xf32>
    %cst_156 = arith.constant 0.000000e+00 : f32
    %600 = vector.broadcast %cst_156 : f32 to vector<2x32xf32>
    %601 = arith.maximumf %599, %600 : vector<2x32xf32>
    %c0_157 = arith.constant 0 : index
    %c0_158 = arith.constant 0 : index
    %602 = vector.load %arg15[%c0_157, %c0_158] : memref<32x10xf32, #tpu.memory_space<vmem>>, vector<32x10xf32>
    %cst_159 = arith.constant dense<0.000000e+00> : vector<2x10xf32>
    %603 = tpu.matmul %601, %602, %cst_159 {dimension_numbers = #tpu.dot_dimension_numbers<[1], [0], [0], [1], [0, 0, 1, 1], [], []>} : vector<2x32xf32>, vector<32x10xf32>, vector<2x10xf32> -> vector<2x10xf32>
    %c0_160 = arith.constant 0 : index
    %c0_161 = arith.constant 0 : index
    %604 = vector.load %arg16[%c0_160, %c0_161] : memref<1x10xf32, #tpu.memory_space<vmem>>, vector<1x10xf32>
    %605 = vector.broadcast %604 : vector<1x10xf32> to vector<2x10xf32>
    %606 = arith.addf %603, %605 : vector<2x10xf32>
    %cst_162 = arith.constant dense<0xFF800000> : vector<2xf32>
    %607 = vector.multi_reduction <maximumf>, %606, %cst_162 [1] : vector<2x10xf32> to vector<2xf32>
    %608 = vector.shape_cast %607 : vector<2xf32> to vector<2x1xf32>
    %609 = vector.broadcast %608 : vector<2x1xf32> to vector<2x10xf32>
    %610 = arith.subf %606, %609 : vector<2x10xf32>
    %611 = math.exp %610 : vector<2x10xf32>
    %cst_163 = arith.constant dense<0.000000e+00> : vector<2xf32>
    %612 = vector.multi_reduction <add>, %611, %cst_163 [1] : vector<2x10xf32> to vector<2xf32>
    %613 = vector.shape_cast %612 : vector<2xf32> to vector<2x1xf32>
    %614 = vector.broadcast %613 : vector<2x1xf32> to vector<2x10xf32>
    %615 = arith.divf %611, %614 : vector<2x10xf32>
    %c0_164 = arith.constant 0 : index
    %c0_165 = arith.constant 0 : index
    %616 = vector.load %arg17[%c0_164, %c0_165] : memref<2x10xf32, #tpu.memory_space<vmem>>, vector<2x10xf32>
    tpu.vector_store %arg17[%c0_164, %c0_165], %615 {strides = array<i32>} : memref<2x10xf32, #tpu.memory_space<vmem>>, vector<2x10xf32>,
    return
  }
}

</mosaic_0001>

<bundles_post_ra>
// kernel: conv_lstm3_forward.2
= control target key start
LH: loop header
LB: loop body
LE: loop exit
PB: predicated region body
PF: predicated region fallthrough
CT: control target
= control target key end

     0   :  { %s5285_s27 = smov 0   ;;  %s6443_s0 = inlined_call_operand.vmem [shape: f32[2,2048,64], index: 0, kind: input, shape index: {}]   ;;  %s6444_s1 = inlined_call_operand.vmem [shape: f32[64,64], index: 1, kind: input, shape index: {}]   ;;  %s6445_s2 = inlined_call_operand.vmem [shape: f32[1,64], index: 2, kind: input, shape index: {}]   ;;  %s6446_s3 = inlined_call_operand.vmem [shape: f32[8,2048], index: 3, kind: input, shape index: {}]   ;;  %s6447_s4 = inlined_call_operand.vmem [shape: f32[64,32], index: 4, kind: input, shape index: {}]   ;;  %s6448_s5 = inlined_call_operand.vmem [shape: f32[1,32], index: 5, kind: input, shape index: {}]   ;;  %s6449_s6 = inlined_call_operand.vmem [shape: f32[1,32], index: 6, kind: input, shape index: {}]   ;;  %s6450_s7 = inlined_call_operand.vmem [shape: f32[1,32], index: 7, kind: input, shape index: {}]   ;;  %s6451_s8 = inlined_call_operand.vmem [shape: f32[2,8,32], index: 8, kind: output, shape index: {}]  }
   0x1 LB: > { %s3680_s28 = sadd.s32 4294967295, %s5235_s27   ;;  %p3684_p0 = scmp.ge.s32.totalorder %s5235_s27, 1  ;;  %s5235_s27 = sphi %s5285_s27, %s18_s27  }
   0x2   : > { %p262_p1 = scmp.lt.s32.totalorder %s5235_s27, 3 }
   0x4   : > { %p263_p2 = pnand %p3684_p0, %p262_p1 }
   0x5   : > { %v560_v0 = vld [vmem:[%s6444_s1] sm:$0xff] (!%p263_p2)  ;;  %v561_v1 = vld [vmem:[%s6444_s1 + $0x8] sm:$0xff] (!%p263_p2)  ;;  %v562_v2 = vld [vmem:[%s6444_s1 + $0x10] sm:$0xff] (!%p263_p2)  ;;  %p295_p3 = scmp.lt.s32.totalorder (!%p263_p2), %s3680_s28, 1  ;;  %vm575_vm0 = vcmask (!%p263_p2), 523264   ;;  %vm5238_vm1 = vmmov (!%p263_p2), 0  }
   0x6   : > { %266 = sbr.rel (%p263_p2) target bundleno = 1127 (0x467), region = 52  ;;  %v4924_v3 = vpack.c.bf16 (!%p263_p2), %v561_v1, %v560_v0  ;;  %v563_v4 = vld [vmem:[%s6444_s1 + $0x18] sm:$0xff] (!%p263_p2)  ;;  %v564_v6 = vld [vmem:[%s6444_s1 + $0x20] sm:$0xff] (!%p263_p2)  ;;  %v565_v7 = vld [vmem:[%s6444_s1 + $0x28] sm:$0xff] (!%p263_p2)  ;;  %vm3625_vm2 = vcmask (!%p263_p2), 261120  }
   0x7   : > { %v4928_v5 = vpack.c.bf16 (!%p263_p2), %v563_v4, %v562_v2  ;;  %v4932_v8 = vpack.c.bf16 (!%p263_p2), %v565_v7, %v564_v6  ;;  %v566_v9 = vld [vmem:[%s6444_s1 + $0x30] sm:$0xff] (!%p263_p2)  ;;  %v567_v10 = vld [vmem:[%s6444_s1 + $0x38] sm:$0xff] (!%p263_p2) }
   0x8   : > { %4925 = vmatprep.subr.bf16.mxu0 (!%p263_p2), %v4924_v3  ;;  %5208 = vmatprep.subr.bf16.mxu1 (!%p263_p2), %v4924_v3  ;;  %v4936_v12 = vpack.c.bf16 (!%p263_p2), %v567_v10, %v566_v9 }
   0x9   : > { %4927 = vmatpush3.bf16.msra.mxu0 (!%p263_p2), %v4924_v3  ;;  %5212 = vmatpush3.bf16.msra.mxu1 (!%p263_p2), %v4924_v3 }
   0xa   : > { %4929 = vmatprep.subr.bf16.mxu0 (!%p263_p2), %v4928_v5  ;;  %5209 = vmatprep.subr.bf16.mxu1 (!%p263_p2), %v4928_v5 }
   0xd   : > { %s6453_s28 = smov (!%p295_p3, %s3680_s28), 1  ;;  %4931 = vmatpush3.bf16.msra.mxu0 %v4928_v5  ;;  %5213 = vmatpush3.bf16.msra.mxu1 %v4928_v5 }
   0xe   : > { %s3951_s19 = sshll.u32 %s6453_s28, 11  ;;  %4933 = vmatprep.subr.bf16.mxu0 %v4932_v8  ;;  %5210 = vmatprep.subr.bf16.mxu1 %v4932_v8  ;;  %s3687_s25 = sshll.u32 %s6453_s28, 3 }
   0xf   : > { %s5317_s22 = scalar_lea.vmem %s6443_s0, %s3951_s19  ;;  %s303_s10 = scalar_lea.vmem %s6451_s8, %s3687_s25 }
  0x10   : > { %v304_v11 = vld [vmem:[%s5317_s22] sm:$0xff]  ;;  %v305_v13 = vld [vmem:[%s5317_s22 + $0x8] sm:$0xff]  ;;  %v306_v14 = vld [vmem:[%s5317_s22 + $0x10] sm:$0xff] }
  0x11   : > { %4521 = vmatprep.mubr.msk.f32.mxu0 %vm575_vm0, %v304_v11  ;;  %4935 = vmatpush3.bf16.msra.mxu0 %v4932_v8  ;;  %v307_v15 = vld [vmem:[%s5317_s22 + $0x18] sm:$0xff]  ;;  %v308_v16 = vld [vmem:[%s5317_s22 + $0x20] sm:$0xff]  ;;  %v309_v17 = vld [vmem:[%s5317_s22 + $0x28] sm:$0xff] }
  0x12   : > { %5214 = vmatpush3.bf16.msra.mxu1 %v4932_v8  ;;  %4937 = vmatprep.subr.bf16.mxu0 %v4936_v12  ;;  %v310_v18 = vld [vmem:[%s5317_s22 + $0x30] sm:$0xff]  ;;  %v311_v19 = vld [vmem:[%s5317_s22 + $0x38] sm:$0xff]  ;;  %v312_v20 = vld [vmem:[%s5317_s22 + $0x40] sm:$0xff] }
  0x13   : > { %5211 = vmatprep.subr.bf16.mxu1 %v4936_v12  ;;  %v313_v21 = vld [vmem:[%s5317_s22 + $0x48] sm:$0xff]  ;;  %v314_v22 = vld [vmem:[%s5317_s22 + $0x50] sm:$0xff]  ;;  %v315_v23 = vld [vmem:[%s5317_s22 + $0x58] sm:$0xff] }
  0x14   : > { %v316_v24 = vld [vmem:[%s5317_s22 + $0x60] sm:$0xff]  ;;  %v317_v25 = vld [vmem:[%s5317_s22 + $0x68] sm:$0xff]  ;;  %v318_v26 = vld [vmem:[%s5317_s22 + $0x70] sm:$0xff] }
  0x15   : > { %4939 = vmatpush3.bf16.msra.mxu0 %v4936_v12  ;;  %v319_v27 = vld [vmem:[%s5317_s22 + $0x78] sm:$0xff]  ;;  %v320_v28 = vld [vmem:[%s5317_s22 + $0x80] sm:$0xff]  ;;  %v321_v29 = vld [vmem:[%s5317_s22 + $0x88] sm:$0xff] }
  0x16   : > { %5215 = vmatpush3.bf16.msra.mxu1 %v4936_v12  ;;  %v322_v30 = vld [vmem:[%s5317_s22 + $0x90] sm:$0xff]  ;;  %v323_v31 = vld [vmem:[%s5317_s22 + $0x98] sm:$0xff]  ;;  %v324_v32 = vld [vmem:[%s5317_s22 + $0xa0] sm:$0xff] }
  0x17   : > { %v325_v33 = vld [vmem:[%s5317_s22 + $0xa8] sm:$0xff]  ;;  %v326_v34 = vld [vmem:[%s5317_s22 + $0xb0] sm:$0xff]  ;;  %v327_v35 = vld [vmem:[%s5317_s22 + $0xb8] sm:$0xff] }
  0x18   : > { %4522 = vmatmul.mubr.msk.f32.vlgmr.msra.gmra.mrb[0].mxu0 %vm575_vm0, %v305_v13  ;;  %v328_v36 = vld [vmem:[%s5317_s22 + $0xc0] sm:$0xff]  ;;  %v329_v37 = vld [vmem:[%s5317_s22 + $0xc8] sm:$0xff]  ;;  %v330_v38 = vld [vmem:[%s5317_s22 + $0xd0] sm:$0xff] }
  0x19   : > { %4524 = vmatprep.mubr.msk.f32.mxu0 %vm575_vm0, %v306_v14  ;;  %v331_v39 = vld [vmem:[%s5317_s22 + $0xd8] sm:$0xff]  ;;  %v332_v40 = vld [vmem:[%s5317_s22 + $0xe0] sm:$0xff]  ;;  %v333_v41 = vld [vmem:[%s5317_s22 + $0xe8] sm:$0xff] }
  0x1a   : > { %v494_v42 = vld [vmem:[%s5317_s22 + $0x5f0] sm:$0xff]  ;;  %v495_v44 = vld [vmem:[%s5317_s22 + $0x5f8] sm:$0xff]  ;;  %v496_v46 = vld [vmem:[%s5317_s22 + $0x600] sm:$0xff] }
  0x1b   : > { %v334_v43 = vld [vmem:[%s5317_s22 + $0xf0] sm:$0xff]  ;;  %4806 = vmatprep.mubr.msk.f32.mxu1 %vm575_vm0, %v494_v42  ;;  %v335_v45 = vld [vmem:[%s5317_s22 + $0xf8] sm:$0xff]  ;;  %v336_v47 = vld [vmem:[%s5317_s22 + $0x100] sm:$0xff] }
  0x1c   : > { %4525 = vmatmul.mubr.msk.f32.gmra.mrb[2].mxu0 %vm575_vm0, %v307_v15  ;;  %4807 = vmatmul.mubr.msk.f32.vlgmr.msra.gmra.mrb[0].mxu1 %vm575_vm0, %v495_v44  ;;  %v497_v48 = vld [vmem:[%s5317_s22 + $0x608] sm:$0xff]  ;;  %v498_v50 = vld [vmem:[%s5317_s22 + $0x610] sm:$0xff]  ;;  %v499_v52 = vld [vmem:[%s5317_s22 + $0x618] sm:$0xff] }
  0x1d   : > { %4527 = vmatprep.mubr.msk.f32.mxu0 %vm575_vm0, %v308_v16  ;;  %4809 = vmatprep.mubr.msk.f32.mxu1 %vm575_vm0, %v496_v46  ;;  %v337_v49 = vld [vmem:[%s5317_s22 + $0x108] sm:$0xff]  ;;  %v338_v51 = vld [vmem:[%s5317_s22 + $0x110] sm:$0xff]  ;;  %v339_v53 = vld [vmem:[%s5317_s22 + $0x118] sm:$0xff] }
  0x1e   : > { %v500_v54 = vld [vmem:[%s5317_s22 + $0x620] sm:$0xff]  ;;  %v501_v56 = vld [vmem:[%s5317_s22 + $0x628] sm:$0xff]  ;;  %v502_v58 = vld [vmem:[%s5317_s22 + $0x630] sm:$0xff] }
  0x1f   : > { %v340_v55 = vld [vmem:[%s5317_s22 + $0x120] sm:$0xff]  ;;  %v341_v57 = vld [vmem:[%s5317_s22 + $0x128] sm:$0xff]  ;;  %v342_v59 = vld [vmem:[%s5317_s22 + $0x130] sm:$0xff] }
  0x20   : > { %4528 = vmatmul.mubr.msk.f32.gmra.mrb[4].mxu0 %vm575_vm0, %v309_v17  ;;  %4810 = vmatmul.mubr.msk.f32.gmra.mrb[2].mxu1 %vm575_vm0, %v497_v48  ;;  %v503_v60 = vld [vmem:[%s5317_s22 + $0x638] sm:$0xff]  ;;  %v504_v62 = vld [vmem:[%s5317_s22 + $0x640] sm:$0xff]  ;;  %v505_v0 = vld [vmem:[%s5317_s22 + $0x648] sm:$0xff] }
  0x21   : > { %4530 = vmatprep.mubr.msk.f32.mxu0 %vm575_vm0, %v310_v18  ;;  %4812 = vmatprep.mubr.msk.f32.mxu1 %vm575_vm0, %v498_v50  ;;  %v343_v61 = vld [vmem:[%s5317_s22 + $0x138] sm:$0xff]  ;;  %v344_v63 = vld [vmem:[%s5317_s22 + $0x140] sm:$0xff]  ;;  %v345_v1 = vld [vmem:[%s5317_s22 + $0x148] sm:$0xff] }
  0x22   : > { %v506_v2 = vld [vmem:[%s5317_s22 + $0x650] sm:$0xff]  ;;  %v507_v4 = vld [vmem:[%s5317_s22 + $0x658] sm:$0xff]  ;;  %v348_v6 = vld [vmem:[%s5317_s22 + $0x160] sm:$0xff] }
  0x23   : > { %v346_v3 = vld [vmem:[%s5317_s22 + $0x150] sm:$0xff]  ;;  %v347_v5 = vld [vmem:[%s5317_s22 + $0x158] sm:$0xff]  ;;  %v508_v7 = vld [vmem:[%s5317_s22 + $0x660] sm:$0xff] }
  0x24   : > { %4531 = vmatmul.mubr.msk.f32.gmra.mrb[6].mxu0 %vm575_vm0, %v311_v19  ;;  %4813 = vmatmul.mubr.msk.f32.gmra.mrb[4].mxu1 %vm575_vm0, %v499_v52  ;;  %v509_v8 = vld [vmem:[%s5317_s22 + $0x668] sm:$0xff]  ;;  %v350_v10 = vld [vmem:[%s5317_s22 + $0x170] sm:$0xff]  ;;  %v511_v12 = vld [vmem:[%s5317_s22 + $0x678] sm:$0xff] }
  0x25   : > { %4533 = vmatprep.mubr.msk.f32.mxu0 %vm575_vm0, %v312_v20  ;;  %4815 = vmatprep.mubr.msk.f32.mxu1 %vm575_vm0, %v500_v54  ;;  %v349_v9 = vld [vmem:[%s5317_s22 + $0x168] sm:$0xff]  ;;  %v510_v11 = vld [vmem:[%s5317_s22 + $0x670] sm:$0xff]  ;;  %v351_v13 = vld [vmem:[%s5317_s22 + $0x178] sm:$0xff] }
  0x26   : > { %v352_v14 = vld [vmem:[%s5317_s22 + $0x180] sm:$0xff]  ;;  %v513_v16 = vld [vmem:[%s5317_s22 + $0x688] sm:$0xff]  ;;  %v354_v18 = vld [vmem:[%s5317_s22 + $0x190] sm:$0xff] }
  0x27   : > { %v512_v15 = vld [vmem:[%s5317_s22 + $0x680] sm:$0xff]  ;;  %v353_v17 = vld [vmem:[%s5317_s22 + $0x188] sm:$0xff]  ;;  %v514_v19 = vld [vmem:[%s5317_s22 + $0x690] sm:$0xff] }
  0x28   : > { %4534 = vmatmul.mubr.msk.f32.gmra.mrb[8].mxu0 %vm575_vm0, %v313_v21  ;;  %4816 = vmatmul.mubr.msk.f32.gmra.mrb[6].mxu1 %vm575_vm0, %v501_v56  ;;  %v515_v20 = vld [vmem:[%s5317_s22 + $0x698] sm:$0xff]  ;;  %v366_v42 = vld [vmem:[%s5317_s22 + $0x1f0] sm:$0xff]  ;;  %v368_v46 = vld [vmem:[%s5317_s22 + $0x200] sm:$0xff] }
  0x29   : > { %4536 = vmatprep.mubr.msk.f32.mxu0 %vm575_vm0, %v314_v22  ;;  %4818 = vmatprep.mubr.msk.f32.mxu1 %vm575_vm0, %v502_v58  ;;  %v355_v21 = vld [vmem:[%s5317_s22 + $0x198] sm:$0xff]  ;;  %v356_v22 = vld [vmem:[%s5317_s22 + $0x1a0] sm:$0xff]  ;;  %v529_v48 = vld [vmem:[%s5317_s22 + $0x708] sm:$0xff] }
  0x2a   : > { %v527_v44 = vld [vmem:[%s5317_s22 + $0x6f8] sm:$0xff]  ;;  %v370_v50 = vld [vmem:[%s5317_s22 + $0x210] sm:$0xff]  ;;  %v372_v54 = vld [vmem:[%s5317_s22 + $0x220] sm:$0xff] }
  0x2b   : > { %v531_v52 = vld [vmem:[%s5317_s22 + $0x718] sm:$0xff]  ;;  %v533_v56 = vld [vmem:[%s5317_s22 + $0x728] sm:$0xff]  ;;  %v374_v58 = vld [vmem:[%s5317_s22 + $0x230] sm:$0xff] }
  0x2c   : > { %4537 = vmatmul.mubr.msk.f32.gmra.mrb[10].mxu0 %vm575_vm0, %v315_v23  ;;  %4819 = vmatmul.mubr.msk.f32.gmra.mrb[8].mxu1 %vm575_vm0, %v503_v60  ;;  %v516_v23 = vld [vmem:[%s5317_s22 + $0x6a0] sm:$0xff]  ;;  %v535_v60 = vld [vmem:[%s5317_s22 + $0x738] sm:$0xff] }
  0x2d   : > { %4539 = vmatprep.mubr.msk.f32.mxu0 %vm575_vm0, %v316_v24  ;;  %4821 = vmatprep.mubr.msk.f32.mxu1 %vm575_vm0, %v504_v62  ;;  %v517_v24 = vld [vmem:[%s5317_s22 + $0x6a8] sm:$0xff]  ;;  %v376_v62 = vld [vmem:[%s5317_s22 + $0x240] sm:$0xff] }
  0x30   : > { %4540 = vmatmul.mubr.msk.f32.gmra.mrb[12].mxu0 %vm575_vm0, %v317_v25  ;;  %4822 = vmatmul.mubr.msk.f32.gmra.mrb[10].mxu1 %vm575_vm0, %v505_v0  ;;  %v357_v25 = vld [vmem:[%s5317_s22 + $0x1a8] sm:$0xff] }
  0x31   : > { %4542 = vmatprep.mubr.msk.f32.mxu0 %vm575_vm0, %v318_v26  ;;  %4824 = vmatprep.mubr.msk.f32.mxu1 %vm575_vm0, %v506_v2  ;;  %v358_v26 = vld [vmem:[%s5317_s22 + $0x1b0] sm:$0xff]  ;;  %v537_v0 = vld [vmem:[%s5317_s22 + $0x748] sm:$0xff] }
  0x32   : > { %v378_v2 = vld [vmem:[%s5317_s22 + $0x250] sm:$0xff] }
  0x34   : > { %4543 = vmatmul.mubr.msk.f32.gmra.mrb[14].mxu0 %vm575_vm0, %v319_v27  ;;  %4825 = vmatmul.mubr.msk.f32.gmra.mrb[12].mxu1 %vm575_vm0, %v507_v4  ;;  %v518_v27 = vld [vmem:[%s5317_s22 + $0x6b0] sm:$0xff]  ;;  %v539_v4 = vld [vmem:[%s5317_s22 + $0x758] sm:$0xff] }
  0x35   : > { %4545 = vmatprep.mubr.msk.f32.mxu0 %vm575_vm0, %v320_v28  ;;  %4827 = vmatprep.mubr.msk.f32.mxu1 %vm575_vm0, %v508_v7  ;;  %v519_v28 = vld [vmem:[%s5317_s22 + $0x6b8] sm:$0xff]  ;;  %v540_v7 = vld [vmem:[%s5317_s22 + $0x760] sm:$0xff] }
  0x38   : > { %4546 = vmatmul.mubr.msk.f32.gmra.mrb[16].mxu0 %vm575_vm0, %v321_v29  ;;  %4828 = vmatmul.mubr.msk.f32.gmra.mrb[14].mxu1 %vm575_vm0, %v509_v8  ;;  %v359_v29 = vld [vmem:[%s5317_s22 + $0x1b8] sm:$0xff]  ;;  %v541_v8 = vld [vmem:[%s5317_s22 + $0x768] sm:$0xff] }
  0x39   : > { %4548 = vmatprep.mubr.msk.f32.mxu0 %vm575_vm0, %v322_v30  ;;  %4830 = vmatprep.mubr.msk.f32.mxu1 %vm575_vm0, %v510_v11  ;;  %v360_v30 = vld [vmem:[%s5317_s22 + $0x1c0] sm:$0xff]  ;;  %v542_v11 = vld [vmem:[%s5317_s22 + $0x770] sm:$0xff] }
  0x3c   : > { %4549 = vmatmul.mubr.msk.f32.gmra.mrb[18].mxu0 %vm575_vm0, %v323_v31  ;;  %4831 = vmatmul.mubr.msk.f32.gmra.mrb[16].mxu1 %vm575_vm0, %v511_v12  ;;  %v520_v31 = vld [vmem:[%s5317_s22 + $0x6c0] sm:$0xff]  ;;  %v543_v12 = vld [vmem:[%s5317_s22 + $0x778] sm:$0xff] }
  0x3d   : > { %4551 = vmatprep.mubr.msk.f32.mxu0 %vm575_vm0, %v324_v32  ;;  %4833 = vmatprep.mubr.msk.f32.mxu1 %vm575_vm0, %v512_v15  ;;  %v521_v32 = vld [vmem:[%s5317_s22 + $0x6c8] sm:$0xff]  ;;  %v544_v15 = vld [vmem:[%s5317_s22 + $0x780] sm:$0xff] }
  0x40   : > { %4552 = vmatmul.mubr.msk.f32.gmra.mrb[20].mxu0 %vm575_vm0, %v325_v33  ;;  %4834 = vmatmul.mubr.msk.f32.gmra.mrb[18].mxu1 %vm575_vm0, %v513_v16  ;;  %v361_v33 = vld [vmem:[%s5317_s22 + $0x1c8] sm:$0xff] }
  0x41   : > { %4554 = vmatprep.mubr.msk.f32.mxu0 %vm575_vm0, %v326_v34  ;;  %4836 = vmatprep.mubr.msk.f32.mxu1 %vm575_vm0, %v514_v19  ;;  %v362_v34 = vld [vmem:[%s5317_s22 + $0x1d0] sm:$0xff]  ;;  %v545_v16 = vld [vmem:[%s5317_s22 + $0x788] sm:$0xff] }
  0x42   : > { %v546_v19 = vld [vmem:[%s5317_s22 + $0x790] sm:$0xff] }
  0x44   : > { %4555 = vmatmul.mubr.msk.f32.gmra.mrb[22].mxu0 %vm575_vm0, %v327_v35  ;;  %4837 = vmatmul.mubr.msk.f32.gmra.mrb[20].mxu1 %vm575_vm0, %v515_v20  ;;  %v522_v35 = vld [vmem:[%s5317_s22 + $0x6d0] sm:$0xff]  ;;  %v547_v20 = vld [vmem:[%s5317_s22 + $0x798] sm:$0xff] }
  0x45   : > { %4557 = vmatprep.mubr.msk.f32.mxu0 %vm575_vm0, %v328_v36  ;;  %4839 = vmatprep.mubr.msk.f32.mxu1 %vm575_vm0, %v516_v23  ;;  %v523_v36 = vld [vmem:[%s5317_s22 + $0x6d8] sm:$0xff]  ;;  %v548_v23 = vld [vmem:[%s5317_s22 + $0x7a0] sm:$0xff] }
  0x48   : > { %4558 = vmatmul.mubr.msk.f32.gmra.mrb[24].mxu0 %vm575_vm0, %v329_v37  ;;  %4840 = vmatmul.mubr.msk.f32.gmra.mrb[22].mxu1 %vm575_vm0, %v517_v24  ;;  %v363_v37 = vld [vmem:[%s5317_s22 + $0x1d8] sm:$0xff]  ;;  %v549_v24 = vld [vmem:[%s5317_s22 + $0x7a8] sm:$0xff] }
  0x49   : > { %4560 = vmatprep.mubr.msk.f32.mxu0 %vm575_vm0, %v330_v38  ;;  %4842 = vmatprep.mubr.msk.f32.mxu1 %vm575_vm0, %v518_v27  ;;  %v364_v38 = vld [vmem:[%s5317_s22 + $0x1e0] sm:$0xff]  ;;  %v550_v27 = vld [vmem:[%s5317_s22 + $0x7b0] sm:$0xff] }
  0x4c   : > { %4561 = vmatmul.mubr.msk.f32.gmra.mrb[26].mxu0 %vm575_vm0, %v331_v39  ;;  %4843 = vmatmul.mubr.msk.f32.gmra.mrb[24].mxu1 %vm575_vm0, %v519_v28  ;;  %v524_v39 = vld [vmem:[%s5317_s22 + $0x6e0] sm:$0xff]  ;;  %v551_v28 = vld [vmem:[%s5317_s22 + $0x7b8] sm:$0xff] }
  0x4d   : > { %4563 = vmatprep.mubr.msk.f32.mxu0 %vm575_vm0, %v332_v40  ;;  %4845 = vmatprep.mubr.msk.f32.mxu1 %vm575_vm0, %v520_v31  ;;  %v525_v40 = vld [vmem:[%s5317_s22 + $0x6e8] sm:$0xff]  ;;  %v552_v31 = vld [vmem:[%s5317_s22 + $0x7c0] sm:$0xff] }
  0x50   : > { %4564 = vmatmul.mubr.msk.f32.gmra.mrb[28].mxu0 %vm575_vm0, %v333_v41  ;;  %4846 = vmatmul.mubr.msk.f32.gmra.mrb[26].mxu1 %vm575_vm0, %v521_v32  ;;  %v365_v41 = vld [vmem:[%s5317_s22 + $0x1e8] sm:$0xff] }
  0x51   : > { %4566 = vmatprep.mubr.msk.f32.mxu0 %vm575_vm0, %v334_v43  ;;  %4848 = vmatprep.mubr.msk.f32.mxu1 %vm575_vm0, %v522_v35  ;;  %v526_v43 = vld [vmem:[%s5317_s22 + $0x6f0] sm:$0xff]  ;;  %v553_v32 = vld [vmem:[%s5317_s22 + $0x7c8] sm:$0xff] }
  0x52   : > { %v554_v35 = vld [vmem:[%s5317_s22 + $0x7d0] sm:$0xff] }
  0x54   : > { %4567 = vmatmul.mubr.msk.f32.gmra.mrb[30].mxu0 %vm575_vm0, %v335_v45  ;;  %4849 = vmatmul.mubr.msk.f32.gmra.mrb[28].mxu1 %vm575_vm0, %v523_v36  ;;  %v367_v45 = vld [vmem:[%s5317_s22 + $0x1f8] sm:$0xff] }
  0x55   : > { %4569 = vmatprep.mubr.msk.f32.mxu0 %vm575_vm0, %v336_v47  ;;  %4851 = vmatprep.mubr.msk.f32.mxu1 %vm575_vm0, %v524_v39  ;;  %v528_v47 = vld [vmem:[%s5317_s22 + $0x700] sm:$0xff]  ;;  %v555_v36 = vld [vmem:[%s5317_s22 + $0x7d8] sm:$0xff] }
  0x56   : > { %v556_v39 = vld [vmem:[%s5317_s22 + $0x7e0] sm:$0xff] }
  0x58   : > { %4570 = vmatmul.mubr.msk.f32.gmra.mrb[32].mxu0 %vm575_vm0, %v337_v49  ;;  %4852 = vmatmul.mubr.msk.f32.gmra.mrb[30].mxu1 %vm575_vm0, %v525_v40  ;;  %v369_v49 = vld [vmem:[%s5317_s22 + $0x208] sm:$0xff] }
  0x59   : > { %4572 = vmatprep.mubr.msk.f32.mxu0 %vm575_vm0, %v338_v51  ;;  %4854 = vmatprep.mubr.msk.f32.mxu1 %vm575_vm0, %v526_v43  ;;  %v530_v51 = vld [vmem:[%s5317_s22 + $0x710] sm:$0xff]  ;;  %v557_v40 = vld [vmem:[%s5317_s22 + $0x7e8] sm:$0xff] }
  0x5a   : > { %v558_v43 = vld [vmem:[%s5317_s22 + $0x7f0] sm:$0xff] }
  0x5c   : > { %4573 = vmatmul.mubr.msk.f32.gmra.mrb[34].mxu0 %vm575_vm0, %v339_v53  ;;  %4855 = vmatmul.mubr.msk.f32.gmra.mrb[32].mxu1 %vm575_vm0, %v527_v44  ;;  %v371_v53 = vld [vmem:[%s5317_s22 + $0x218] sm:$0xff] }
  0x5d   : > { %4575 = vmatprep.mubr.msk.f32.mxu0 %vm575_vm0, %v340_v55  ;;  %4857 = vmatprep.mubr.msk.f32.mxu1 %vm575_vm0, %v528_v47  ;;  %v532_v55 = vld [vmem:[%s5317_s22 + $0x720] sm:$0xff]  ;;  %v559_v44 = vld [vmem:[%s5317_s22 + $0x7f8] sm:$0xff]  ;;  %v2946_v47 = vld [vmem:[%s6446_s3 + $0x8] sm:$0xff] }
  0x60   : > { %4576 = vmatmul.mubr.msk.f32.gmra.mrb[36].mxu0 %vm575_vm0, %v341_v57  ;;  %4858 = vmatmul.mubr.msk.f32.gmra.mrb[34].mxu1 %vm575_vm0, %v529_v48  ;;  %v373_v57 = vld [vmem:[%s5317_s22 + $0x228] sm:$0xff] }
  0x61   : > { %4578 = vmatprep.mubr.msk.f32.mxu0 %vm575_vm0, %v342_v59  ;;  %4860 = vmatprep.mubr.msk.f32.mxu1 %vm575_vm0, %v530_v51  ;;  %v534_v59 = vld [vmem:[%s5317_s22 + $0x730] sm:$0xff]  ;;  %v401_v48 = vld [vmem:[%s5317_s22 + $0x308] sm:$0xff]  ;;  %v404_v51 = vld [vmem:[%s5317_s22 + $0x320] sm:$0xff] }
  0x64   : > { %4579 = vmatmul.mubr.msk.f32.gmra.mrb[38].mxu0 %vm575_vm0, %v343_v61  ;;  %4861 = vmatmul.mubr.msk.f32.gmra.mrb[36].mxu1 %vm575_vm0, %v531_v52  ;;  %v375_v61 = vld [vmem:[%s5317_s22 + $0x238] sm:$0xff]  ;;  %v405_v52 = vld [vmem:[%s5317_s22 + $0x328] sm:$0xff] }
  0x65   : > { %4581 = vmatprep.mubr.msk.f32.mxu0 %vm575_vm0, %v344_v63  ;;  %4863 = vmatprep.mubr.msk.f32.mxu1 %vm575_vm0, %v532_v55  ;;  %v536_v63 = vld [vmem:[%s5317_s22 + $0x740] sm:$0xff] }
  0x66   : > { %v408_v55 = vld [vmem:[%s5317_s22 + $0x340] sm:$0xff] }
  0x68   : > { %4582 = vmatmul.mubr.msk.f32.gmra.mrb[40].mxu0 %vm575_vm0, %v345_v1  ;;  %4864 = vmatmul.mubr.msk.f32.gmra.mrb[38].mxu1 %vm575_vm0, %v533_v56  ;;  %v377_v1 = vld [vmem:[%s5317_s22 + $0x248] sm:$0xff] }
  0x69   : > { %4584 = vmatprep.mubr.msk.f32.mxu0 %vm575_vm0, %v346_v3  ;;  %4866 = vmatprep.mubr.msk.f32.mxu1 %vm575_vm0, %v534_v59  ;;  %v538_v3 = vld [vmem:[%s5317_s22 + $0x750] sm:$0xff]  ;;  %v409_v56 = vld [vmem:[%s5317_s22 + $0x348] sm:$0xff]  ;;  %v411_v59 = vld [vmem:[%s5317_s22 + $0x358] sm:$0xff] }
  0x6c   : > { %4585 = vmatmul.mubr.msk.f32.gmra.mrb[42].mxu0 %vm575_vm0, %v347_v5  ;;  %4867 = vmatmul.mubr.msk.f32.gmra.mrb[40].mxu1 %vm575_vm0, %v535_v60  ;;  %v379_v5 = vld [vmem:[%s5317_s22 + $0x258] sm:$0xff]  ;;  %v412_v60 = vld [vmem:[%s5317_s22 + $0x360] sm:$0xff] }
  0x6d   : > { %4587 = vmatprep.mubr.msk.f32.mxu0 %vm575_vm0, %v348_v6  ;;  %4869 = vmatprep.mubr.msk.f32.mxu1 %vm575_vm0, %v536_v63  ;;  %v380_v6 = vld [vmem:[%s5317_s22 + $0x260] sm:$0xff] }
  0x70   : > { %4588 = vmatmul.mubr.msk.f32.gmra.mrb[44].mxu0 %vm575_vm0, %v349_v9  ;;  %4870 = vmatmul.mubr.msk.f32.gmra.mrb[42].mxu1 %vm575_vm0, %v537_v0  ;;  %v381_v9 = vld [vmem:[%s5317_s22 + $0x268] sm:$0xff] }
  0x71   : > { %4590 = vmatprep.mubr.msk.f32.mxu0 %vm575_vm0, %v350_v10  ;;  %4872 = vmatprep.mubr.msk.f32.mxu1 %vm575_vm0, %v538_v3  ;;  %v382_v10 = vld [vmem:[%s5317_s22 + $0x270] sm:$0xff] }
  0x72   : > { %v414_v3 = vld [vmem:[%s5317_s22 + $0x370] sm:$0xff] }
  0x74   : > { %4591 = vmatmul.mubr.msk.f32.gmra.mrb[46].mxu0 %vm575_vm0, %v351_v13  ;;  %4873 = vmatmul.mubr.msk.f32.gmra.mrb[44].mxu1 %vm575_vm0, %v539_v4  ;;  %v383_v13 = vld [vmem:[%s5317_s22 + $0x278] sm:$0xff] }
  0x75   : > { %4593 = vmatprep.mubr.msk.f32.mxu0 %vm575_vm0, %v352_v14  ;;  %4875 = vmatprep.mubr.msk.f32.mxu1 %vm575_vm0, %v540_v7  ;;  %v384_v14 = vld [vmem:[%s5317_s22 + $0x280] sm:$0xff] }
  0x78   : > { %4594 = vmatmul.mubr.msk.f32.gmra.mrb[48].mxu0 %vm575_vm0, %v353_v17  ;;  %4876 = vmatmul.mubr.msk.f32.gmra.mrb[46].mxu1 %vm575_vm0, %v541_v8  ;;  %v385_v17 = vld [vmem:[%s5317_s22 + $0x288] sm:$0xff] }
  0x79   : > { %4596 = vmatprep.mubr.msk.f32.mxu0 %vm575_vm0, %v354_v18  ;;  %4878 = vmatprep.mubr.msk.f32.mxu1 %vm575_vm0, %v542_v11  ;;  %v386_v18 = vld [vmem:[%s5317_s22 + $0x290] sm:$0xff] }
  0x7c   : > { %4597 = vmatmul.mubr.msk.f32.gmra.mrb[50].mxu0 %vm575_vm0, %v355_v21  ;;  %4879 = vmatmul.mubr.msk.f32.gmra.mrb[48].mxu1 %vm575_vm0, %v543_v12  ;;  %v387_v21 = vld [vmem:[%s5317_s22 + $0x298] sm:$0xff]  ;;  %v416_v12 = vld [vmem:[%s5317_s22 + $0x380] sm:$0xff] }
  0x7d   : > { %4599 = vmatprep.mubr.msk.f32.mxu0 %vm575_vm0, %v356_v22  ;;  %4881 = vmatprep.mubr.msk.f32.mxu1 %vm575_vm0, %v544_v15  ;;  %v388_v22 = vld [vmem:[%s5317_s22 + $0x2a0] sm:$0xff] }
  0x80   : > { %4600 = vmatmul.mubr.msk.f32.gmra.mrb[52].mxu0 %vm575_vm0, %v357_v25  ;;  %4882 = vmatmul.mubr.msk.f32.gmra.mrb[50].mxu1 %vm575_vm0, %v545_v16  ;;  %v389_v25 = vld [vmem:[%s5317_s22 + $0x2a8] sm:$0xff] }
  0x81   : > { %4602 = vmatprep.mubr.msk.f32.mxu0 %vm575_vm0, %v358_v26  ;;  %4884 = vmatprep.mubr.msk.f32.mxu1 %vm575_vm0, %v546_v19  ;;  %v390_v26 = vld [vmem:[%s5317_s22 + $0x2b0] sm:$0xff]  ;;  %v417_v19 = vld [vmem:[%s5317_s22 + $0x388] sm:$0xff] }
  0x84   : > { %4603 = vmatmul.mubr.msk.f32.gmra.mrb[54].mxu0 %vm575_vm0, %v359_v29  ;;  %4885 = vmatmul.mubr.msk.f32.gmra.mrb[52].mxu1 %vm575_vm0, %v547_v20  ;;  %v391_v29 = vld [vmem:[%s5317_s22 + $0x2b8] sm:$0xff] }
  0x85   : > { %4605 = vmatprep.mubr.msk.f32.mxu0 %vm575_vm0, %v360_v30  ;;  %4887 = vmatprep.mubr.msk.f32.mxu1 %vm575_vm0, %v548_v23  ;;  %v392_v30 = vld [vmem:[%s5317_s22 + $0x2c0] sm:$0xff] }
  0x88   : > { %4606 = vmatmul.mubr.msk.f32.gmra.mrb[56].mxu0 %vm575_vm0, %v361_v33  ;;  %4888 = vmatmul.mubr.msk.f32.gmra.mrb[54].mxu1 %vm575_vm0, %v549_v24  ;;  %v393_v33 = vld [vmem:[%s5317_s22 + $0x2c8] sm:$0xff] }
  0x89   : > { %4608 = vmatprep.mubr.msk.f32.mxu0 %vm575_vm0, %v362_v34  ;;  %4890 = vmatprep.mubr.msk.f32.mxu1 %vm575_vm0, %v550_v27  ;;  %v394_v34 = vld [vmem:[%s5317_s22 + $0x2d0] sm:$0xff] }
  0x8c   : > { %4609 = vmatmul.mubr.msk.f32.gmra.mrb[58].mxu0 %vm575_vm0, %v363_v37  ;;  %4891 = vmatmul.mubr.msk.f32.gmra.mrb[56].mxu1 %vm575_vm0, %v551_v28  ;;  %v395_v37 = vld [vmem:[%s5317_s22 + $0x2d8] sm:$0xff] }
  0x8d   : > { %4611 = vmatprep.mubr.msk.f32.mxu0 %vm575_vm0, %v364_v38  ;;  %4893 = vmatprep.mubr.msk.f32.mxu1 %vm575_vm0, %v552_v31  ;;  %v396_v38 = vld [vmem:[%s5317_s22 + $0x2e0] sm:$0xff]  ;;  %v419_v28 = vld [vmem:[%s5317_s22 + $0x398] sm:$0xff] }
  0x90   : > { %4612 = vmatmul.mubr.msk.f32.gmra.mrb[60].mxu0 %vm575_vm0, %v365_v41  ;;  %4894 = vmatmul.mubr.msk.f32.gmra.mrb[58].mxu1 %vm575_vm0, %v553_v32  ;;  %v397_v41 = vld [vmem:[%s5317_s22 + $0x2e8] sm:$0xff] }
  0x91   : > { %4614 = vmatprep.mubr.msk.f32.mxu0 %vm575_vm0, %v366_v42  ;;  %4896 = vmatprep.mubr.msk.f32.mxu1 %vm575_vm0, %v554_v35  ;;  %v398_v42 = vld [vmem:[%s5317_s22 + $0x2f0] sm:$0xff] }
  0x94   : > { %4615 = vmatmul.mubr.msk.f32.gmra.mrb[62].mxu0 %vm575_vm0, %v367_v45  ;;  %4897 = vmatmul.mubr.msk.f32.gmra.mrb[60].mxu1 %vm575_vm0, %v555_v36  ;;  %v399_v45 = vld [vmem:[%s5317_s22 + $0x2f8] sm:$0xff] }
  0x95   : > { %4617 = vmatprep.mubr.msk.f32.mxu0 %vm575_vm0, %v368_v46  ;;  %4899 = vmatprep.mubr.msk.f32.mxu1 %vm575_vm0, %v556_v39  ;;  %v400_v46 = vld [vmem:[%s5317_s22 + $0x300] sm:$0xff]  ;;  %v422_v39 = vld [vmem:[%s5317_s22 + $0x3b0] sm:$0xff] }
  0x98   : > { %4618 = vmatmul.mubr.msk.f32.gmra.mrb[64].mxu0 %vm575_vm0, %v369_v49  ;;  %4900 = vmatmul.mubr.msk.f32.gmra.mrb[62].mxu1 %vm575_vm0, %v557_v40  ;;  %v402_v49 = vld [vmem:[%s5317_s22 + $0x310] sm:$0xff] }
  0x99   : > { %4620 = vmatprep.mubr.msk.f32.mxu0 %vm575_vm0, %v370_v50  ;;  %4902 = vmatprep.mubr.msk.f32.mxu1 %vm575_vm0, %v558_v43  ;;  %v403_v50 = vld [vmem:[%s5317_s22 + $0x318] sm:$0xff] }
  0x9c   : > { %4621 = vmatmul.mubr.msk.f32.gmra.mrb[66].mxu0 %vm575_vm0, %v371_v53  ;;  %4903 = vmatmul.mubr.msk.f32.gmra.mrb[64].mxu1 %vm575_vm0, %v559_v44  ;;  %v406_v53 = vld [vmem:[%s5317_s22 + $0x330] sm:$0xff] }
  0x9d   : > { %4623 = vmatprep.mubr.msk.f32.mxu0 %vm575_vm0, %v372_v54  ;;  %3025 = vmatprep.mubr.f32.mxu1 %v2946_v47  ;;  %v407_v54 = vld [vmem:[%s5317_s22 + $0x338] sm:$0xff] }
  0xa0   : > { %4624 = vmatmul.mubr.msk.f32.gmra.mrb[68].mxu0 %vm575_vm0, %v373_v57  ;;  %v410_v57 = vld [vmem:[%s5317_s22 + $0x350] sm:$0xff] }
  0xa1   : > { %4626 = vmatprep.mubr.msk.f32.mxu0 %vm575_vm0, %v374_v58  ;;  %v5676_v58 = vld [vmem:[%s6445_s2] ss:$0 sm:$0xff] }
  0xa4   : > { %4627 = vmatmul.mubr.msk.f32.gmra.mrb[70].mxu0 %vm575_vm0, %v375_v61 }
  0xa5   : > { %4629 = vmatprep.mubr.msk.f32.mxu0 %vm575_vm0, %v376_v62 }
  0xa8   : > { %4630 = vmatmul.mubr.msk.f32.gmra.mrb[72].mxu0 %vm575_vm0, %v377_v1  ;;  %v413_v1 = vld [vmem:[%s5317_s22 + $0x368] sm:$0xff] }
  0xa9   : > { %4632 = vmatprep.mubr.msk.f32.mxu0 %vm575_vm0, %v378_v2 }
  0xac   : > { %4633 = vmatmul.mubr.msk.f32.gmra.mrb[74].mxu0 %vm575_vm0, %v379_v5 }
  0xad   : > { %4635 = vmatprep.mubr.msk.f32.mxu0 %vm575_vm0, %v380_v6 }
  0xb0   : > { %4636 = vmatmul.mubr.msk.f32.gmra.mrb[76].mxu0 %vm575_vm0, %v381_v9 }
  0xb1   : > { %4638 = vmatprep.mubr.msk.f32.mxu0 %vm575_vm0, %v382_v10  ;;  %v415_v10 = vld [vmem:[%s5317_s22 + $0x378] sm:$0xff] }
  0xb4   : > { %4639 = vmatmul.mubr.msk.f32.gmra.mrb[78].mxu0 %vm575_vm0, %v383_v13 }
  0xb5   : > { %4641 = vmatprep.mubr.msk.f32.mxu0 %vm575_vm0, %v384_v14 }
  0xb8   : > { %4642 = vmatmul.mubr.msk.f32.gmra.mrb[80].mxu0 %vm575_vm0, %v385_v17 }
  0xb9   : > { %4644 = vmatprep.mubr.msk.f32.mxu0 %vm575_vm0, %v386_v18 }
  0xbc   : > { %4645 = vmatmul.mubr.msk.f32.gmra.mrb[82].mxu0 %vm575_vm0, %v387_v21  ;;  %v418_v21 = vld [vmem:[%s5317_s22 + $0x390] sm:$0xff] }
  0xbd   : > { %4647 = vmatprep.mubr.msk.f32.mxu0 %vm575_vm0, %v388_v22 }
  0xc0   : > { %4648 = vmatmul.mubr.msk.f32.gmra.mrb[84].mxu0 %vm575_vm0, %v389_v25 }
  0xc1   : > { %4650 = vmatprep.mubr.msk.f32.mxu0 %vm575_vm0, %v390_v26 }
  0xc4   : > { %4651 = vmatmul.mubr.msk.f32.gmra.mrb[86].mxu0 %vm575_vm0, %v391_v29 }
  0xc5   : > { %4653 = vmatprep.mubr.msk.f32.mxu0 %vm575_vm0, %v392_v30  ;;  %v420_v30 = vld [vmem:[%s5317_s22 + $0x3a0] sm:$0xff] }
  0xc8   : > { %4654 = vmatmul.mubr.msk.f32.gmra.mrb[88].mxu0 %vm575_vm0, %v393_v33 }
  0xc9   : > { %4656 = vmatprep.mubr.msk.f32.mxu0 %vm575_vm0, %v394_v34 }
  0xcc   : > { %4657 = vmatmul.mubr.msk.f32.gmra.mrb[90].mxu0 %vm575_vm0, %v395_v37  ;;  %v421_v37 = vld [vmem:[%s5317_s22 + $0x3a8] sm:$0xff] }
  0xcd   : > { %4659 = vmatprep.mubr.msk.f32.mxu0 %vm575_vm0, %v396_v38 }
  0xd0   : > { %4660 = vmatmul.mubr.msk.f32.gmra.mrb[92].mxu0 %vm575_vm0, %v397_v41 }
  0xd1   : > { %4662 = vmatprep.mubr.msk.f32.mxu0 %vm575_vm0, %v398_v42 }
  0xd4   : > { %4663 = vmatmul.mubr.msk.f32.gmra.mrb[94].mxu0 %vm575_vm0, %v399_v45 }
  0xd5   : > { %4665 = vmatprep.mubr.msk.f32.mxu0 %vm575_vm0, %v400_v46  ;;  %v423_v46 = vld [vmem:[%s5317_s22 + $0x3b8] sm:$0xff] }
  0xd8   : > { %4666 = vmatmul.mubr.msk.f32.gmra.mrb[96].mxu0 %vm575_vm0, %v401_v48  ;;  %v424_v48 = vld [vmem:[%s5317_s22 + $0x3c0] sm:$0xff] }
  0xd9   : > { %4668 = vmatprep.mubr.msk.f32.mxu0 %vm575_vm0, %v402_v49 }
  0xdc   : > { %4669 = vmatmul.mubr.msk.f32.gmra.mrb[98].mxu0 %vm575_vm0, %v403_v50 }
  0xdd   : > { %4671 = vmatprep.mubr.msk.f32.mxu0 %vm575_vm0, %v404_v51 }
  0xe0   : > { %4672 = vmatmul.mubr.msk.f32.gmra.mrb[100].mxu0 %vm575_vm0, %v405_v52 }
  0xe1   : > { %4674 = vmatprep.mubr.msk.f32.mxu0 %vm575_vm0, %v406_v53 }
  0xe4   : > { %4675 = vmatmul.mubr.msk.f32.gmra.mrb[102].mxu0 %vm575_vm0, %v407_v54 }
  0xe5   : > { %4677 = vmatprep.mubr.msk.f32.mxu0 %vm575_vm0, %v408_v55  ;;  %v425_v55 = vld [vmem:[%s5317_s22 + $0x3c8] sm:$0xff] }
  0xe8   : > { %4678 = vmatmul.mubr.msk.f32.gmra.mrb[104].mxu0 %vm575_vm0, %v409_v56 }
  0xe9   : > { %4680 = vmatprep.mubr.msk.f32.mxu0 %vm575_vm0, %v410_v57  ;;  %v426_v57 = vld [vmem:[%s5317_s22 + $0x3d0] sm:$0xff] }
  0xeb   : > { %v4523_v61 = vpop.f32.mrb[0].mxu0 }
  0xec   : > { %v1416_v62 = vadd.f32 %v4523_v61, %v5676_v58  ;;  %v1410_v63 = vpop.f32.mrb[1].mxu0  ;;  %4681 = vmatmul.mubr.msk.f32.gmra.mrb[106].mxu0 %vm575_vm0, %v411_v59 }
  0xed   : > { %v1411_v0 = vadd.f32 %v5676_v58, %v1410_v63  ;;  %4683 = vmatprep.mubr.msk.f32.mxu0 %vm575_vm0, %v412_v60 }
  0xee   : > { %v2690_v2 = vmax.f32 %v1416_v62, 0.0 }
  0xef   : > { %v2689_v4 = vmax.f32 %v1411_v0, 0.0  ;;  %v4526_v5 = vpop.f32.mrb[2].mxu0 }
  0xf0   : > { %v1426_v6 = vadd.f32 %v4526_v5, %v5676_v58  ;;  %v1420_v7 = vpop.f32.mrb[3].mxu0  ;;  %4684 = vmatmul.mubr.msk.f32.gmra.mrb[108].mxu0 %vm575_vm0, %v413_v1  ;;  %v427_v1 = vld [vmem:[%s5317_s22 + $0x3d8] sm:$0xff] }
  0xf1   : > { %v5689_v8 = vpack.c.bf16 %v2690_v2, %v2689_v4  ;;  %v1421_v9 = vadd.f32 %v5676_v58, %v1420_v7  ;;  %4686 = vmatprep.mubr.msk.f32.mxu0 %vm575_vm0, %v414_v3  ;;  %v428_v3 = vld [vmem:[%s5317_s22 + $0x3e0] sm:$0xff] }
  0xf2   : > { %v2692_v11 = vmax.f32 %v1426_v6, 0.0 }
  0xf3   : > { %v2691_v13 = vmax.f32 %v1421_v9, 0.0  ;;  %v4529_v14 = vpop.f32.mrb[4].mxu0 }
  0xf4   : > { %v1436_v15 = vadd.f32 %v4529_v14, %v5676_v58  ;;  %v1430_v16 = vpop.f32.mrb[5].mxu0  ;;  %4687 = vmatmul.mubr.msk.f32.gmra.mrb[110].mxu0 %vm575_vm0, %v415_v10 }
  0xf5   : > { %v5697_v17 = vpack.c.bf16 %v2692_v11, %v2691_v13  ;;  %v1431_v18 = vadd.f32 %v5676_v58, %v1430_v16  ;;  %4689 = vmatprep.mubr.msk.f32.mxu0 %vm575_vm0, %v416_v12  ;;  %v429_v11 = vld [vmem:[%s5317_s22 + $0x3e8] sm:$0xff]  ;;  %v430_v13 = vld [vmem:[%s5317_s22 + $0x3f0] sm:$0xff] }
  0xf6   : > { %v2694_v20 = vmax.f32 %v1436_v15, 0.0 }
  0xf7   : > { %v2693_v22 = vmax.f32 %v1431_v18, 0.0  ;;  %v4532_v23 = vpop.f32.mrb[6].mxu0 }
  0xf8   : > { %v1446_v24 = vadd.f32 %v4532_v23, %v5676_v58  ;;  %v1440_v25 = vpop.f32.mrb[7].mxu0  ;;  %4690 = vmatmul.mubr.msk.f32.gmra.mrb[112].mxu0 %vm575_vm0, %v417_v19  ;;  %v432_v23 = vld [vmem:[%s5317_s22 + $0x400] sm:$0xff] }
  0xf9   : > { %v5705_v26 = vpack.c.bf16 %v2694_v20, %v2693_v22  ;;  %v1441_v27 = vadd.f32 %v5676_v58, %v1440_v25  ;;  %4692 = vmatprep.mubr.msk.f32.mxu0 %vm575_vm0, %v418_v21  ;;  %v431_v21 = vld [vmem:[%s5317_s22 + $0x3f8] sm:$0xff] }
  0xfa   : > { %v2696_v29 = vmax.f32 %v1446_v24, 0.0 }
  0xfb   : > { %v2695_v31 = vmax.f32 %v1441_v27, 0.0  ;;  %v4535_v32 = vpop.f32.mrb[8].mxu0 }
  0xfc   : > { %v1456_v33 = vadd.f32 %v4535_v32, %v5676_v58  ;;  %v1450_v34 = vpop.f32.mrb[9].mxu0  ;;  %4693 = vmatmul.mubr.msk.f32.gmra.mrb[114].mxu0 %vm575_vm0, %v419_v28 }
  0xfd   : > { %v5713_v35 = vpack.c.bf16 %v2696_v29, %v2695_v31  ;;  %v1451_v36 = vadd.f32 %v5676_v58, %v1450_v34  ;;  %4695 = vmatprep.mubr.msk.f32.mxu0 %vm575_vm0, %v420_v30  ;;  %v433_v31 = vld [vmem:[%s5317_s22 + $0x408] sm:$0xff] }
  0xfe   : > { %v2698_v38 = vmax.f32 %v1456_v33, 0.0  ;;  %v434_v33 = vld [vmem:[%s5317_s22 + $0x410] sm:$0xff] }
  0xff   : > { %v2697_v40 = vmax.f32 %v1451_v36, 0.0  ;;  %v4538_v41 = vpop.f32.mrb[10].mxu0 }
 0x100   : > { %v1466_v42 = vadd.f32 %v4538_v41, %v5676_v58  ;;  %v1460_v43 = vpop.f32.mrb[11].mxu0  ;;  %4696 = vmatmul.mubr.msk.f32.gmra.mrb[116].mxu0 %vm575_vm0, %v421_v37 }
 0x101   : > { %v5721_v44 = vpack.c.bf16 %v2698_v38, %v2697_v40  ;;  %v1461_v45 = vadd.f32 %v5676_v58, %v1460_v43  ;;  %4698 = vmatprep.mubr.msk.f32.mxu0 %vm575_vm0, %v422_v39  ;;  %v435_v40 = vld [vmem:[%s5317_s22 + $0x418] sm:$0xff] }
 0x102   : > { %v2700_v47 = vmax.f32 %v1466_v42, 0.0  ;;  %v436_v42 = vld [vmem:[%s5317_s22 + $0x420] sm:$0xff] }
 0x103   : > { %v2699_v49 = vmax.f32 %v1461_v45, 0.0  ;;  %v4541_v50 = vpop.f32.mrb[12].mxu0 }
 0x104   : > { %v1476_v51 = vadd.f32 %v4541_v50, %v5676_v58  ;;  %v1470_v52 = vpop.f32.mrb[13].mxu0  ;;  %4699 = vmatmul.mubr.msk.f32.gmra.mrb[118].mxu0 %vm575_vm0, %v423_v46 }
 0x105   : > { %v5729_v53 = vpack.c.bf16 %v2700_v47, %v2699_v49  ;;  %v1471_v54 = vadd.f32 %v5676_v58, %v1470_v52  ;;  %4701 = vmatprep.mubr.msk.f32.mxu0 %vm575_vm0, %v424_v48  ;;  %v437_v49 = vld [vmem:[%s5317_s22 + $0x428] sm:$0xff] }
 0x106   : > { %v2702_v56 = vmax.f32 %v1476_v51, 0.0  ;;  %v438_v51 = vld [vmem:[%s5317_s22 + $0x430] sm:$0xff] }
 0x107   : > { %v2701_v59 = vmax.f32 %v1471_v54, 0.0  ;;  %v4544_v60 = vpop.f32.mrb[14].mxu0 }
 0x108   : > { %v1486_v61 = vadd.f32 %v4544_v60, %v5676_v58  ;;  %v1480_v62 = vpop.f32.mrb[15].mxu0  ;;  %4702 = vmatmul.mubr.msk.f32.gmra.mrb[120].mxu0 %vm575_vm0, %v425_v55 }
 0x109   : > { %v5737_v63 = vpack.c.bf16 %v2702_v56, %v2701_v59  ;;  %v1481_v0 = vadd.f32 %v5676_v58, %v1480_v62  ;;  %4704 = vmatprep.mubr.msk.f32.mxu0 %vm575_vm0, %v426_v57  ;;  %v439_v59 = vld [vmem:[%s5317_s22 + $0x438] sm:$0xff] }
 0x10a   : > { %v2704_v2 = vmax.f32 %v1486_v61, 0.0  ;;  %v440_v61 = vld [vmem:[%s5317_s22 + $0x440] sm:$0xff] }
 0x10b   : > { %v2703_v4 = vmax.f32 %v1481_v0, 0.0  ;;  %v4547_v5 = vpop.f32.mrb[16].mxu0 }
 0x10c   : > { %v1496_v6 = vadd.f32 %v4547_v5, %v5676_v58  ;;  %v1490_v7 = vpop.f32.mrb[17].mxu0  ;;  %4705 = vmatmul.mubr.msk.f32.gmra.mrb[122].mxu0 %vm575_vm0, %v427_v1 }
 0x10d   : > { %v5745_v9 = vpack.c.bf16 %v2704_v2, %v2703_v4  ;;  %v1491_v10 = vadd.f32 %v5676_v58, %v1490_v7  ;;  %4707 = vmatprep.mubr.msk.f32.mxu0 %vm575_vm0, %v428_v3  ;;  %v441_v4 = vld [vmem:[%s5317_s22 + $0x448] sm:$0xff] }
 0x10e   : > { %v2706_v12 = vmax.f32 %v1496_v6, 0.0  ;;  %v442_v6 = vld [vmem:[%s5317_s22 + $0x450] sm:$0xff] }
 0x10f   : > { %v2705_v14 = vmax.f32 %v1491_v10, 0.0  ;;  %v4550_v15 = vpop.f32.mrb[18].mxu0 }
 0x110   : > { %v1506_v16 = vadd.f32 %v4550_v15, %v5676_v58  ;;  %v1500_v18 = vpop.f32.mrb[19].mxu0  ;;  %4708 = vmatmul.mubr.msk.f32.gmra.mrb[124].mxu0 %vm575_vm0, %v429_v11 }
 0x111   : > { %v4940_v19 = vpack.c.bf16 %v2706_v12, %v2705_v14  ;;  %v1501_v20 = vadd.f32 %v5676_v58, %v1500_v18  ;;  %4710 = vmatprep.mubr.msk.f32.mxu0 %vm575_vm0, %v430_v13  ;;  %v443_v14 = vld [vmem:[%s5317_s22 + $0x458] sm:$0xff] }
 0x112   : > { %v2708_v22 = vmax.f32 %v1506_v16, 0.0  ;;  %v444_v16 = vld [vmem:[%s5317_s22 + $0x460] sm:$0xff] }
 0x113   : > { %v2707_v24 = vmax.f32 %v1501_v20, 0.0  ;;  %v4553_v25 = vpop.f32.mrb[20].mxu0  ;;  %4941 = vmatprep.subr.bf16.mxu1 %v4940_v19 }
 0x114   : > { %v1516_v27 = vadd.f32 %v4553_v25, %v5676_v58  ;;  %v1510_v28 = vpop.f32.mrb[21].mxu0  ;;  %4711 = vmatmul.mubr.msk.f32.gmra.mrb[126].mxu0 %vm575_vm0, %v431_v21  ;;  %4943 = vmatpush3.bf16.msra.mxu1 %v5689_v8  ;;  %v446_v25 = vld [vmem:[%s5317_s22 + $0x470] sm:$0xff] }
 0x115   : > { %v4944_v29 = vpack.c.bf16 %v2708_v22, %v2707_v24  ;;  %v1511_v30 = vadd.f32 %v5676_v58, %v1510_v28  ;;  %4713 = vmatprep.mubr.msk.f32.mxu0 %vm575_vm0, %v432_v23  ;;  %v445_v23 = vld [vmem:[%s5317_s22 + $0x468] sm:$0xff] }
 0x116   : > { %v2710_v32 = vmax.f32 %v1516_v27, 0.0 }
 0x117   : > { %v2709_v34 = vmax.f32 %v1511_v30, 0.0  ;;  %v4556_v36 = vpop.f32.mrb[22].mxu0  ;;  %4945 = vmatprep.subr.bf16.mxu1 %v4944_v29 }
 0x118   : > { %v1526_v37 = vadd.f32 %v4556_v36, %v5676_v58  ;;  %v1520_v38 = vpop.f32.mrb[23].mxu0  ;;  %4714 = vmatmul.mubr.msk.f32.gmra.mrb[128].mxu0 %vm575_vm0, %v433_v31  ;;  %4947 = vmatpush3.bf16.msra.mxu1 %v5697_v17 }
 0x119   : > { %v4948_v8 = vpack.c.bf16 %v2710_v32, %v2709_v34  ;;  %v1521_v39 = vadd.f32 %v5676_v58, %v1520_v38  ;;  %4716 = vmatprep.mubr.msk.f32.mxu0 %vm575_vm0, %v434_v33  ;;  %v447_v33 = vld [vmem:[%s5317_s22 + $0x478] sm:$0xff] }
 0x11a   : > { %v2712_v41 = vmax.f32 %v1526_v37, 0.0  ;;  %v2948_v34 = vld [vmem:[%s6446_s3 + $0x18] sm:$0xff]  ;;  %v448_v37 = vld [vmem:[%s5317_s22 + $0x480] sm:$0xff] }
 0x11b   : > { %v2711_v43 = vmax.f32 %v1521_v39, 0.0  ;;  %v4559_v45 = vpop.f32.mrb[24].mxu0  ;;  %4949 = vmatprep.subr.bf16.mxu1 %v4948_v8 }
 0x11c   : > { %v1536_v46 = vadd.f32 %v4559_v45, %v5676_v58  ;;  %v1530_v47 = vpop.f32.mrb[25].mxu0  ;;  %4717 = vmatmul.mubr.msk.f32.gmra.mrb[130].mxu0 %vm575_vm0, %v435_v40  ;;  %4951 = vmatpush3.bf16.msra.mxu1 %v5705_v26  ;;  %v450_v45 = vld [vmem:[%s5317_s22 + $0x490] sm:$0xff] }
 0x11d   : > { %v4952_v17 = vpack.c.bf16 %v2712_v41, %v2711_v43  ;;  %v1531_v48 = vadd.f32 %v5676_v58, %v1530_v47  ;;  %4719 = vmatprep.mubr.msk.f32.mxu0 %vm575_vm0, %v436_v42  ;;  %v449_v42 = vld [vmem:[%s5317_s22 + $0x488] sm:$0xff] }
 0x11e   : > { %v2714_v50 = vmax.f32 %v1536_v46, 0.0 }
 0x11f   : > { %v2713_v52 = vmax.f32 %v1531_v48, 0.0  ;;  %v4562_v54 = vpop.f32.mrb[26].mxu0  ;;  %4953 = vmatprep.subr.bf16.mxu1 %v4952_v17 }
 0x120   : > { %v1546_v55 = vadd.f32 %v4562_v54, %v5676_v58  ;;  %v1540_v56 = vpop.f32.mrb[27].mxu0  ;;  %4720 = vmatmul.mubr.msk.f32.gmra.mrb[132].mxu0 %vm575_vm0, %v437_v49  ;;  %4955 = vmatpush3.bf16.msra.mxu1 %v5713_v35  ;;  %v452_v54 = vld [vmem:[%s5317_s22 + $0x4a0] sm:$0xff] }
 0x121   : > { %v4956_v26 = vpack.c.bf16 %v2714_v50, %v2713_v52  ;;  %v1541_v57 = vadd.f32 %v5676_v58, %v1540_v56  ;;  %4722 = vmatprep.mubr.msk.f32.mxu0 %vm575_vm0, %v438_v51  ;;  %v451_v51 = vld [vmem:[%s5317_s22 + $0x498] sm:$0xff] }
 0x122   : > { %v2716_v60 = vmax.f32 %v1546_v55, 0.0 }
 0x123   : > { %v2715_v62 = vmax.f32 %v1541_v57, 0.0  ;;  %v4565_v0 = vpop.f32.mrb[28].mxu0  ;;  %4957 = vmatprep.subr.bf16.mxu1 %v4956_v26 }
 0x124   : > { %v1556_v1 = vadd.f32 %v4565_v0, %v5676_v58  ;;  %v1550_v2 = vpop.f32.mrb[29].mxu0  ;;  %4723 = vmatmul.mubr.msk.f32.gmra.mrb[134].mxu0 %vm575_vm0, %v439_v59  ;;  %4959 = vmatpush3.bf16.msra.mxu1 %v5721_v44  ;;  %v454_v0 = vld [vmem:[%s5317_s22 + $0x4b0] sm:$0xff] }
 0x125   : > { %v4960_v35 = vpack.c.bf16 %v2716_v60, %v2715_v62  ;;  %v1551_v3 = vadd.f32 %v5676_v58, %v1550_v2  ;;  %4725 = vmatprep.mubr.msk.f32.mxu0 %vm575_vm0, %v440_v61  ;;  %v453_v61 = vld [vmem:[%s5317_s22 + $0x4a8] sm:$0xff] }
 0x126   : > { %v2718_v5 = vmax.f32 %v1556_v1, 0.0 }
 0x127   : > { %v2717_v7 = vmax.f32 %v1551_v3, 0.0  ;;  %v4568_v10 = vpop.f32.mrb[30].mxu0  ;;  %4961 = vmatprep.subr.bf16.mxu1 %v4960_v35 }
 0x128   : > { %v1566_v11 = vadd.f32 %v4568_v10, %v5676_v58  ;;  %v1560_v12 = vpop.f32.mrb[31].mxu0  ;;  %4726 = vmatmul.mubr.msk.f32.gmra.mrb[136].mxu0 %vm575_vm0, %v441_v4  ;;  %4963 = vmatpush3.bf16.msra.mxu1 %v5729_v53  ;;  %v456_v10 = vld [vmem:[%s5317_s22 + $0x4c0] sm:$0xff] }
 0x129   : > { %v4964_v44 = vpack.c.bf16 %v2718_v5, %v2717_v7  ;;  %v1561_v13 = vadd.f32 %v5676_v58, %v1560_v12  ;;  %4728 = vmatprep.mubr.msk.f32.mxu0 %vm575_vm0, %v442_v6  ;;  %v455_v6 = vld [vmem:[%s5317_s22 + $0x4b8] sm:$0xff] }
 0x12a   : > { %v2720_v15 = vmax.f32 %v1566_v11, 0.0 }
 0x12b   : > { %v2719_v18 = vmax.f32 %v1561_v13, 0.0  ;;  %v4571_v19 = vpop.f32.mrb[32].mxu0  ;;  %4965 = vmatprep.subr.bf16.mxu1 %v4964_v44 }
 0x12c   : > { %v1576_v20 = vadd.f32 %v4571_v19, %v5676_v58  ;;  %v1570_v21 = vpop.f32.mrb[33].mxu0  ;;  %4729 = vmatmul.mubr.msk.f32.gmra.mrb[138].mxu0 %vm575_vm0, %v443_v14  ;;  %4967 = vmatpush3.bf16.msra.mxu1 %v5737_v63  ;;  %v2945_v63 = vld [vmem:[%s6446_s3] sm:$0xff]  ;;  %v458_v19 = vld [vmem:[%s5317_s22 + $0x4d0] sm:$0xff] }
 0x12d   : > { %v4968_v53 = vpack.c.bf16 %v2720_v15, %v2719_v18  ;;  %v1571_v22 = vadd.f32 %v5676_v58, %v1570_v21  ;;  %4731 = vmatprep.mubr.msk.f32.mxu0 %vm575_vm0, %v444_v16  ;;  %v457_v16 = vld [vmem:[%s5317_s22 + $0x4c8] sm:$0xff] }
 0x12e   : > { %v2722_v24 = vmax.f32 %v1576_v20, 0.0 }
 0x12f   : > { %v2721_v27 = vmax.f32 %v1571_v22, 0.0  ;;  %v4574_v28 = vpop.f32.mrb[34].mxu0  ;;  %4969 = vmatprep.subr.bf16.mxu1 %v4968_v53 }
 0x130   : > { %v1586_v29 = vadd.f32 %v4574_v28, %v5676_v58  ;;  %v1580_v30 = vpop.f32.mrb[35].mxu0  ;;  %4732 = vmatmul.mubr.msk.f32.gmra.mrb[140].mxu0 %vm575_vm0, %v445_v23  ;;  %4971 = vmatpush3.bf16.msra.mxu1 %v5745_v9  ;;  %v460_v28 = vld [vmem:[%s5317_s22 + $0x4e0] sm:$0xff] }
 0x131   : > { %v5812_v31 = vpack.c.bf16 %v2722_v24, %v2721_v27  ;;  %v1581_v32 = vadd.f32 %v5676_v58, %v1580_v30  ;;  %4734 = vmatprep.mubr.msk.f32.mxu0 %vm575_vm0, %v446_v25  ;;  %v459_v25 = vld [vmem:[%s5317_s22 + $0x4d8] sm:$0xff] }
 0x132   : > { %v2724_v36 = vmax.f32 %v1586_v29, 0.0 }
 0x133   : > { %v2723_v9 = vmax.f32 %v1581_v32, 0.0  ;;  %v4577_v38 = vpop.f32.mrb[36].mxu0  ;;  %3026 = vmatmul.mubr.f32.vlgmr.msra.gmra.mrb[66].mxu1 %v2945_v63 }
 0x134   : > { %v1596_v8 = vadd.f32 %v4577_v38, %v5676_v58  ;;  %v1590_v39 = vpop.f32.mrb[37].mxu0  ;;  %4735 = vmatmul.mubr.msk.f32.gmra.mrb[142].mxu0 %vm575_vm0, %v447_v33  ;;  %3095 = vmatprep.mubr.f32.mxu1 %v2948_v34 }
 0x135   : > { %v5823_v40 = vpack.c.bf16 %v2724_v36, %v2723_v9  ;;  %v1591_v41 = vadd.f32 %v5676_v58, %v1590_v39  ;;  %4737 = vmatprep.mubr.msk.f32.mxu0 %vm575_vm0, %v448_v37  ;;  %v461_v36 = vld [vmem:[%s5317_s22 + $0x4e8] sm:$0xff]  ;;  %v462_v9 = vld [vmem:[%s5317_s22 + $0x4f0] sm:$0xff] }
 0x136   : > { %v2726_v43 = vmax.f32 %v1596_v8, 0.0 }
 0x137   : > { %v2725_v46 = vmax.f32 %v1591_v41, 0.0  ;;  %v4580_v47 = vpop.f32.mrb[38].mxu0 }
 0x138   : > { %v1606_v17 = vadd.f32 %v4580_v47, %v5676_v58  ;;  %v1600_v48 = vpop.f32.mrb[39].mxu0  ;;  %4738 = vmatmul.mubr.msk.f32.gmra.mrb[144].mxu0 %vm575_vm0, %v449_v42  ;;  %v464_v47 = vld [vmem:[%s5317_s22 + $0x500] sm:$0xff] }
 0x139   : > { %v5831_v49 = vpack.c.bf16 %v2726_v43, %v2725_v46  ;;  %v1601_v50 = vadd.f32 %v5676_v58, %v1600_v48  ;;  %4740 = vmatprep.mubr.msk.f32.mxu0 %vm575_vm0, %v450_v45  ;;  %v463_v45 = vld [vmem:[%s5317_s22 + $0x4f8] sm:$0xff] }
 0x13a   : > { %v2728_v52 = vmax.f32 %v1606_v17, 0.0 }
 0x13b   : > { %v2727_v55 = vmax.f32 %v1601_v50, 0.0  ;;  %v4583_v56 = vpop.f32.mrb[40].mxu0 }
 0x13c   : > { %v1616_v26 = vadd.f32 %v4583_v56, %v5676_v58  ;;  %v1610_v57 = vpop.f32.mrb[41].mxu0  ;;  %4741 = vmatmul.mubr.msk.f32.gmra.mrb[146].mxu0 %vm575_vm0, %v451_v51 }
 0x13d   : > { %v5839_v59 = vpack.c.bf16 %v2728_v52, %v2727_v55  ;;  %v1611_v60 = vadd.f32 %v5676_v58, %v1610_v57  ;;  %4743 = vmatprep.mubr.msk.f32.mxu0 %vm575_vm0, %v452_v54  ;;  %v465_v55 = vld [vmem:[%s5317_s22 + $0x508] sm:$0xff] }
 0x13e   : > { %v2730_v62 = vmax.f32 %v1616_v26, 0.0  ;;  %v466_v26 = vld [vmem:[%s5317_s22 + $0x510] sm:$0xff] }
 0x13f   : > { %v2729_v1 = vmax.f32 %v1611_v60, 0.0  ;;  %v4586_v2 = vpop.f32.mrb[42].mxu0 }
 0x140   : > { %v1626_v35 = vadd.f32 %v4586_v2, %v5676_v58  ;;  %v1620_v3 = vpop.f32.mrb[43].mxu0  ;;  %4744 = vmatmul.mubr.msk.f32.gmra.mrb[148].mxu0 %vm575_vm0, %v453_v61 }
 0x141   : > { %v5847_v4 = vpack.c.bf16 %v2730_v62, %v2729_v1  ;;  %v1621_v5 = vadd.f32 %v5676_v58, %v1620_v3  ;;  %4746 = vmatprep.mubr.msk.f32.mxu0 %vm575_vm0, %v454_v0  ;;  %v467_v1 = vld [vmem:[%s5317_s22 + $0x518] sm:$0xff] }
 0x142   : > { %v2732_v7 = vmax.f32 %v1626_v35, 0.0  ;;  %v468_v35 = vld [vmem:[%s5317_s22 + $0x520] sm:$0xff] }
 0x143   : > { %v2731_v11 = vmax.f32 %v1621_v5, 0.0  ;;  %v4589_v12 = vpop.f32.mrb[44].mxu0 }
 0x144   : > { %v1636_v44 = vadd.f32 %v4589_v12, %v5676_v58  ;;  %v1630_v13 = vpop.f32.mrb[45].mxu0  ;;  %4747 = vmatmul.mubr.msk.f32.gmra.mrb[150].mxu0 %vm575_vm0, %v455_v6 }
 0x145   : > { %v5855_v14 = vpack.c.bf16 %v2732_v7, %v2731_v11  ;;  %v1631_v15 = vadd.f32 %v5676_v58, %v1630_v13  ;;  %4749 = vmatprep.mubr.msk.f32.mxu0 %vm575_vm0, %v456_v10  ;;  %v469_v11 = vld [vmem:[%s5317_s22 + $0x528] sm:$0xff] }
 0x146   : > { %v2734_v18 = vmax.f32 %v1636_v44, 0.0  ;;  %v470_v44 = vld [vmem:[%s5317_s22 + $0x530] sm:$0xff] }
 0x147   : > { %v2733_v20 = vmax.f32 %v1631_v15, 0.0  ;;  %v4592_v21 = vpop.f32.mrb[46].mxu0 }
 0x148   : > { %v1646_v53 = vadd.f32 %v4592_v21, %v5676_v58  ;;  %v1640_v22 = vpop.f32.mrb[47].mxu0  ;;  %4750 = vmatmul.mubr.msk.f32.gmra.mrb[152].mxu0 %vm575_vm0, %v457_v16 }
 0x149   : > { %v5863_v23 = vpack.c.bf16 %v2734_v18, %v2733_v20  ;;  %v1641_v24 = vadd.f32 %v5676_v58, %v1640_v22  ;;  %4752 = vmatprep.mubr.msk.f32.mxu0 %vm575_vm0, %v458_v19  ;;  %v471_v20 = vld [vmem:[%s5317_s22 + $0x538] sm:$0xff] }
 0x14a   : > { %v2736_v27 = vmax.f32 %v1646_v53, 0.0  ;;  %v472_v53 = vld [vmem:[%s5317_s22 + $0x540] sm:$0xff] }
 0x14b   : > { %v2735_v29 = vmax.f32 %v1641_v24, 0.0  ;;  %v4595_v30 = vpop.f32.mrb[48].mxu0 }
 0x14c   : > { %v1656_v63 = vadd.f32 %v4595_v30, %v5676_v58  ;;  %v1650_v32 = vpop.f32.mrb[49].mxu0  ;;  %4753 = vmatmul.mubr.msk.f32.gmra.mrb[154].mxu0 %vm575_vm0, %v459_v25 }
 0x14d   : > { %v5871_v33 = vpack.c.bf16 %v2736_v27, %v2735_v29  ;;  %v1651_v34 = vadd.f32 %v5676_v58, %v1650_v32  ;;  %4755 = vmatprep.mubr.msk.f32.mxu0 %vm575_vm0, %v460_v28  ;;  %v473_v29 = vld [vmem:[%s5317_s22 + $0x548] sm:$0xff] }
 0x14e   : > { %v2738_v37 = vmax.f32 %v1656_v63, 0.0  ;;  %v474_v63 = vld [vmem:[%s5317_s22 + $0x550] sm:$0xff] }
 0x14f   : > { %v2737_v38 = vmax.f32 %v1651_v34, 0.0  ;;  %v4598_v8 = vpop.f32.mrb[50].mxu0 }
 0x150   : > { %v1666_v39 = vadd.f32 %v4598_v8, %v5676_v58  ;;  %v1660_v41 = vpop.f32.mrb[51].mxu0  ;;  %4756 = vmatmul.mubr.msk.f32.gmra.mrb[156].mxu0 %vm575_vm0, %v461_v36 }
 0x151   : > { %v4972_v42 = vpack.c.bf16 %v2738_v37, %v2737_v38  ;;  %v1661_v43 = vadd.f32 %v5676_v58, %v1660_v41  ;;  %4758 = vmatprep.mubr.msk.f32.mxu0 %vm575_vm0, %v462_v9  ;;  %v475_v38 = vld [vmem:[%s5317_s22 + $0x558] sm:$0xff] }
 0x152   : > { %v2740_v46 = vmax.f32 %v1666_v39, 0.0  ;;  %v476_v39 = vld [vmem:[%s5317_s22 + $0x560] sm:$0xff] }
 0x153   : > { %v2739_v17 = vmax.f32 %v1661_v43, 0.0  ;;  %v4601_v48 = vpop.f32.mrb[52].mxu0  ;;  %4973 = vmatprep.subr.bf16.mxu1 %v4972_v42 }
 0x154   : > { %v1676_v50 = vadd.f32 %v4601_v48, %v5676_v58  ;;  %v1670_v51 = vpop.f32.mrb[53].mxu0  ;;  %4759 = vmatmul.mubr.msk.f32.gmra.mrb[158].mxu0 %vm575_vm0, %v463_v45  ;;  %4975 = vmatpush3.bf16.msra.mxu1 %v5812_v31  ;;  %v478_v48 = vld [vmem:[%s5317_s22 + $0x570] sm:$0xff] }
 0x155   : > { %v4976_v52 = vpack.c.bf16 %v2740_v46, %v2739_v17  ;;  %v1671_v54 = vadd.f32 %v5676_v58, %v1670_v51  ;;  %4761 = vmatprep.mubr.msk.f32.mxu0 %vm575_vm0, %v464_v47  ;;  %v477_v47 = vld [vmem:[%s5317_s22 + $0x568] sm:$0xff] }
 0x156   : > { %v2742_v56 = vmax.f32 %v1676_v50, 0.0 }
 0x157   : > { %v2741_v57 = vmax.f32 %v1671_v54, 0.0  ;;  %v4604_v60 = vpop.f32.mrb[54].mxu0  ;;  %4977 = vmatprep.subr.bf16.mxu1 %v4976_v52 }
 0x158   : > { %v1686_v61 = vadd.f32 %v4604_v60, %v5676_v58  ;;  %v1680_v62 = vpop.f32.mrb[55].mxu0  ;;  %4762 = vmatmul.mubr.msk.f32.gmra.mrb[160].mxu0 %vm575_vm0, %v465_v55  ;;  %4979 = vmatpush3.bf16.msra.mxu1 %v5823_v40 }
 0x159   : > { %v4980_v31 = vpack.c.bf16 %v2742_v56, %v2741_v57  ;;  %v1681_v0 = vadd.f32 %v5676_v58, %v1680_v62  ;;  %4764 = vmatprep.mubr.msk.f32.mxu0 %vm575_vm0, %v466_v26  ;;  %v479_v26 = vld [vmem:[%s5317_s22 + $0x578] sm:$0xff]  ;;  %v2950_v57 = vld [vmem:[%s6446_s3 + $0x28] sm:$0xff] }
 0x15a   : > { %v2744_v2 = vmax.f32 %v1686_v61, 0.0  ;;  %v480_v61 = vld [vmem:[%s5317_s22 + $0x580] sm:$0xff] }
 0x15b   : > { %v2743_v3 = vmax.f32 %v1681_v0, 0.0  ;;  %v4607_v5 = vpop.f32.mrb[56].mxu0  ;;  %4981 = vmatprep.subr.bf16.mxu1 %v4980_v31 }
 0x15c   : > { %v1696_v6 = vadd.f32 %v4607_v5, %v5676_v58  ;;  %v1690_v7 = vpop.f32.mrb[57].mxu0  ;;  %4765 = vmatmul.mubr.msk.f32.gmra.mrb[162].mxu0 %vm575_vm0, %v467_v1  ;;  %4983 = vmatpush3.bf16.msra.mxu1 %v5831_v49  ;;  %v482_v5 = vld [vmem:[%s5317_s22 + $0x590] sm:$0xff] }
 0x15d   : > { %v4984_v40 = vpack.c.bf16 %v2744_v2, %v2743_v3  ;;  %v1691_v10 = vadd.f32 %v5676_v58, %v1690_v7  ;;  %4767 = vmatprep.mubr.msk.f32.mxu0 %vm575_vm0, %v468_v35  ;;  %v481_v35 = vld [vmem:[%s5317_s22 + $0x588] sm:$0xff] }
 0x15e   : > { %v2746_v12 = vmax.f32 %v1696_v6, 0.0 }
 0x15f   : > { %v2745_v13 = vmax.f32 %v1691_v10, 0.0  ;;  %v4610_v15 = vpop.f32.mrb[58].mxu0  ;;  %4985 = vmatprep.subr.bf16.mxu1 %v4984_v40 }
 0x160   : > { %v1706_v16 = vadd.f32 %v4610_v15, %v5676_v58  ;;  %v1700_v18 = vpop.f32.mrb[59].mxu0  ;;  %4768 = vmatmul.mubr.msk.f32.gmra.mrb[164].mxu0 %vm575_vm0, %v469_v11  ;;  %4987 = vmatpush3.bf16.msra.mxu1 %v5839_v59  ;;  %v484_v15 = vld [vmem:[%s5317_s22 + $0x5a0] sm:$0xff] }
 0x161   : > { %v4988_v49 = vpack.c.bf16 %v2746_v12, %v2745_v13  ;;  %v1701_v19 = vadd.f32 %v5676_v58, %v1700_v18  ;;  %4770 = vmatprep.mubr.msk.f32.mxu0 %vm575_vm0, %v470_v44  ;;  %v483_v44 = vld [vmem:[%s5317_s22 + $0x598] sm:$0xff] }
 0x162   : > { %v2748_v21 = vmax.f32 %v1706_v16, 0.0 }
 0x163   : > { %v2747_v22 = vmax.f32 %v1701_v19, 0.0  ;;  %v4613_v24 = vpop.f32.mrb[60].mxu0  ;;  %4989 = vmatprep.subr.bf16.mxu1 %v4988_v49 }
 0x164   : > { %v1716_v25 = vadd.f32 %v4613_v24, %v5676_v58  ;;  %v1710_v27 = vpop.f32.mrb[61].mxu0  ;;  %4771 = vmatmul.mubr.msk.f32.gmra.mrb[166].mxu0 %vm575_vm0, %v471_v20  ;;  %4991 = vmatpush3.bf16.msra.mxu1 %v5847_v4  ;;  %v486_v24 = vld [vmem:[%s5317_s22 + $0x5b0] sm:$0xff] }
 0x165   : > { %v4992_v59 = vpack.c.bf16 %v2748_v21, %v2747_v22  ;;  %v1711_v28 = vadd.f32 %v5676_v58, %v1710_v27  ;;  %4773 = vmatprep.mubr.msk.f32.mxu0 %vm575_vm0, %v472_v53  ;;  %v485_v53 = vld [vmem:[%s5317_s22 + $0x5a8] sm:$0xff] }
 0x166   : > { %v2750_v30 = vmax.f32 %v1716_v25, 0.0 }
 0x167   : > { %v2749_v32 = vmax.f32 %v1711_v28, 0.0  ;;  %v4616_v34 = vpop.f32.mrb[62].mxu0  ;;  %4993 = vmatprep.subr.bf16.mxu1 %v4992_v59 }
 0x168   : > { %v1726_v36 = vadd.f32 %v4616_v34, %v5676_v58  ;;  %v1720_v37 = vpop.f32.mrb[63].mxu0  ;;  %4774 = vmatmul.mubr.msk.f32.gmra.mrb[168].mxu0 %vm575_vm0, %v473_v29  ;;  %4995 = vmatpush3.bf16.msra.mxu1 %v5855_v14  ;;  %v488_v34 = vld [vmem:[%s5317_s22 + $0x5c0] sm:$0xff] }
 0x169   : > { %v4996_v4 = vpack.c.bf16 %v2750_v30, %v2749_v32  ;;  %v1721_v9 = vadd.f32 %v5676_v58, %v1720_v37  ;;  %4776 = vmatprep.mubr.msk.f32.mxu0 %vm575_vm0, %v474_v63  ;;  %v487_v63 = vld [vmem:[%s5317_s22 + $0x5b8] sm:$0xff] }
 0x16a   : > { %v2752_v8 = vmax.f32 %v1726_v36, 0.0 }
 0x16b   : > { %v2751_v41 = vmax.f32 %v1721_v9, 0.0  ;;  %v4619_v42 = vpop.f32.mrb[64].mxu0  ;;  %4997 = vmatprep.subr.bf16.mxu1 %v4996_v4 }
 0x16c   : > { %v1736_v43 = vadd.f32 %v4619_v42, %v5676_v58  ;;  %v1730_v45 = vpop.f32.mrb[65].mxu0  ;;  %4777 = vmatmul.mubr.msk.f32.gmra.mrb[170].mxu0 %vm575_vm0, %v475_v38  ;;  %4999 = vmatpush3.bf16.msra.mxu1 %v5863_v23  ;;  %v2947_v23 = vld [vmem:[%s6446_s3 + $0x10] sm:$0xff] }
 0x16d   : > { %v5000_v14 = vpack.c.bf16 %v2752_v8, %v2751_v41  ;;  %v1731_v46 = vadd.f32 %v5676_v58, %v1730_v45  ;;  %4779 = vmatprep.mubr.msk.f32.mxu0 %vm575_vm0, %v476_v39  ;;  %v489_v39 = vld [vmem:[%s5317_s22 + $0x5c8] sm:$0xff]  ;;  %v490_v42 = vld [vmem:[%s5317_s22 + $0x5d0] sm:$0xff] }
 0x16e   : > { %v2754_v17 = vmax.f32 %v1736_v43, 0.0 }
 0x16f   : > { %v2753_v50 = vmax.f32 %v1731_v46, 0.0  ;;  %v4622_v51 = vpop.f32.mrb[66].mxu0  ;;  %5001 = vmatprep.subr.bf16.mxu1 %v5000_v14 }
 0x170   : > { %v1746_v52 = vadd.f32 %v4622_v51, %v5676_v58  ;;  %v1740_v54 = vpop.f32.mrb[67].mxu0  ;;  %4780 = vmatmul.mubr.msk.f32.gmra.mrb[172].mxu0 %vm575_vm0, %v477_v47  ;;  %5003 = vmatpush3.bf16.msra.mxu1 %v5871_v33  ;;  %v492_v51 = vld [vmem:[%s5317_s22 + $0x5e0] sm:$0xff] }
 0x171   : > { %v5938_v55 = vpack.c.bf16 %v2754_v17, %v2753_v50  ;;  %v1741_v56 = vadd.f32 %v5676_v58, %v1740_v54  ;;  %4782 = vmatprep.mubr.msk.f32.mxu0 %vm575_vm0, %v478_v48  ;;  %v491_v48 = vld [vmem:[%s5317_s22 + $0x5d8] sm:$0xff] }
 0x172   : > { %v2756_v60 = vmax.f32 %v1746_v52, 0.0 }
 0x173   : > { %v2755_v33 = vmax.f32 %v1741_v56, 0.0  ;;  %v4625_v62 = vpop.f32.mrb[68].mxu0  ;;  %3096 = vmatmul.mubr.f32.vlgmr.msra.gmra.mrb[68].mxu1 %v2947_v23 }
 0x174   : > { %v1756_v31 = vadd.f32 %v4625_v62, %v5676_v58  ;;  %v1750_v0 = vpop.f32.mrb[69].mxu0  ;;  %4783 = vmatmul.mubr.msk.f32.gmra.mrb[174].mxu0 %vm575_vm0, %v479_v26  ;;  %3165 = vmatprep.mubr.f32.mxu1 %v2950_v57 }
 0x175   : > { %v5949_v1 = vpack.c.bf16 %v2756_v60, %v2755_v33  ;;  %v1751_v2 = vadd.f32 %v5676_v58, %v1750_v0  ;;  %4785 = vmatprep.mubr.msk.f32.mxu0 %vm575_vm0, %v480_v61  ;;  %v493_v60 = vld [vmem:[%s5317_s22 + $0x5e8] sm:$0xff] }
 0x176   : > { %v2758_v3 = vmax.f32 %v1756_v31, 0.0 }
 0x177   : > { %v2757_v6 = vmax.f32 %v1751_v2, 0.0  ;;  %v4628_v7 = vpop.f32.mrb[70].mxu0 }
 0x178   : > { %v1766_v40 = vadd.f32 %v4628_v7, %v5676_v58  ;;  %v1760_v10 = vpop.f32.mrb[71].mxu0  ;;  %4786 = vmatmul.mubr.msk.f32.gmra.mrb[176].mxu0 %vm575_vm0, %v481_v35 }
 0x179   : > { %v5957_v11 = vpack.c.bf16 %v2758_v3, %v2757_v6  ;;  %v1761_v12 = vadd.f32 %v5676_v58, %v1760_v10  ;;  %4788 = vmatprep.mubr.msk.f32.mxu0 %vm575_vm0, %v482_v5 }
 0x17a   : > { %v2760_v13 = vmax.f32 %v1766_v40, 0.0 }
 0x17b   : > { %v2759_v16 = vmax.f32 %v1761_v12, 0.0  ;;  %v4631_v18 = vpop.f32.mrb[72].mxu0 }
 0x17c   : > { %v1776_v49 = vadd.f32 %v4631_v18, %v5676_v58  ;;  %v1770_v19 = vpop.f32.mrb[73].mxu0  ;;  %4789 = vmatmul.mubr.msk.f32.gmra.mrb[178].mxu0 %vm575_vm0, %v483_v44 }
 0x17d   : > { %v5965_v20 = vpack.c.bf16 %v2760_v13, %v2759_v16  ;;  %v1771_v21 = vadd.f32 %v5676_v58, %v1770_v19  ;;  %4791 = vmatprep.mubr.msk.f32.mxu0 %vm575_vm0, %v484_v15  ;;  %v6011_v16 = vld [vmem:[%s6445_s2] ss:$0 sm:$0xff] }
 0x17e   : > { %v2762_v22 = vmax.f32 %v1776_v49, 0.0 }
 0x17f   : > { %v2761_v25 = vmax.f32 %v1771_v21, 0.0  ;;  %v4634_v27 = vpop.f32.mrb[74].mxu0 }
 0x180   : > { %v1786_v59 = vadd.f32 %v4634_v27, %v5676_v58  ;;  %v1780_v28 = vpop.f32.mrb[75].mxu0  ;;  %4792 = vmatmul.mubr.msk.f32.gmra.mrb[180].mxu0 %vm575_vm0, %v485_v53 }
 0x181   : > { %v5973_v29 = vpack.c.bf16 %v2762_v22, %v2761_v25  ;;  %v1781_v30 = vadd.f32 %v5676_v58, %v1780_v28  ;;  %4794 = vmatprep.mubr.msk.f32.mxu0 %vm575_vm0, %v486_v24 }
 0x182   : > { %v2764_v32 = vmax.f32 %v1786_v59, 0.0 }
 0x183   : > { %v2763_v36 = vmax.f32 %v1781_v30, 0.0  ;;  %v4637_v37 = vpop.f32.mrb[76].mxu0 }
 0x184   : > { %v1796_v4 = vadd.f32 %v4637_v37, %v5676_v58  ;;  %v1790_v9 = vpop.f32.mrb[77].mxu0  ;;  %4795 = vmatmul.mubr.msk.f32.gmra.mrb[182].mxu0 %vm575_vm0, %v487_v63  ;;  %v4808_v37 = vpop.f32.mrb[0].mxu1 }
 0x185   : > { %v5981_v38 = vpack.c.bf16 %v2764_v32, %v2763_v36  ;;  %v1791_v8 = vadd.f32 %v5676_v58, %v1790_v9  ;;  %4797 = vmatprep.mubr.msk.f32.mxu0 %vm575_vm0, %v488_v34 }
 0x186   : > { %v2766_v41 = vmax.f32 %v1796_v4, 0.0 }
 0x187   : > { %v2765_v43 = vmax.f32 %v1791_v8, 0.0  ;;  %v4640_v45 = vpop.f32.mrb[78].mxu0 }
 0x188   : > { %v1806_v14 = vadd.f32 %v4640_v45, %v5676_v58  ;;  %v1800_v46 = vpop.f32.mrb[79].mxu0  ;;  %4798 = vmatmul.mubr.msk.f32.gmra.mrb[184].mxu0 %vm575_vm0, %v489_v39 }
 0x189   : > { %v5989_v47 = vpack.c.bf16 %v2766_v41, %v2765_v43  ;;  %v1801_v17 = vadd.f32 %v5676_v58, %v1800_v46  ;;  %4800 = vmatprep.mubr.msk.f32.mxu0 %vm575_vm0, %v490_v42  ;;  %v2366_v41 = vadd.f32 %v6011_v16, %v4808_v37 }
 0x18a   : > { %v2768_v50 = vmax.f32 %v1806_v14, 0.0 }
 0x18b   : > { %v2767_v52 = vmax.f32 %v1801_v17, 0.0  ;;  %v4643_v54 = vpop.f32.mrb[80].mxu0  ;;  %v2880_v14 = vmax.f32 %v2366_v41, 0.0 }
 0x18c   : > { %v1816_v23 = vadd.f32 %v4643_v54, %v5676_v58  ;;  %v1810_v56 = vpop.f32.mrb[81].mxu0  ;;  %4801 = vmatmul.mubr.msk.f32.gmra.mrb[186].mxu0 %vm575_vm0, %v491_v48 }
 0x18d   : > { %v5997_v26 = vpack.c.bf16 %v2768_v50, %v2767_v52  ;;  %v1811_v57 = vadd.f32 %v5676_v58, %v1810_v56  ;;  %4803 = vmatprep.mubr.msk.f32.mxu0 %vm575_vm0, %v492_v51 }
 0x18e   : > { %v2770_v61 = vmax.f32 %v1816_v23, 0.0 }
 0x18f   : > { %v2769_v33 = vmax.f32 %v1811_v57, 0.0  ;;  %v4646_v62 = vpop.f32.mrb[82].mxu0 }
 0x190   : > { %v1826_v31 = vadd.f32 %v4646_v62, %v5676_v58  ;;  %v1820_v0 = vpop.f32.mrb[83].mxu0  ;;  %4804 = vmatmul.mubr.msk.f32.gmra.mrb[188].mxu0 %vm575_vm0, %v493_v60 }
 0x191   : > { %v5004_v2 = vpack.c.bf16 %v2770_v61, %v2769_v33  ;;  %v1821_v35 = vadd.f32 %v5676_v58, %v1820_v0 }
 0x192   : > { %v2772_v3 = vmax.f32 %v1826_v31, 0.0 }
 0x193   : > { %v2771_v5 = vmax.f32 %v1821_v35, 0.0  ;;  %v4649_v6 = vpop.f32.mrb[84].mxu0  ;;  %5005 = vmatprep.subr.bf16.mxu1 %v5004_v2 }
 0x194   : > { %v1836_v7 = vadd.f32 %v4649_v6, %v5676_v58  ;;  %v1830_v40 = vpop.f32.mrb[85].mxu0  ;;  %5007 = vmatpush3.bf16.msra.mxu1 %v5938_v55 }
 0x195   : > { %v5008_v10 = vpack.c.bf16 %v2772_v3, %v2771_v5  ;;  %v1831_v12 = vadd.f32 %v5676_v58, %v1830_v40 }
 0x196   : > { %v2774_v44 = vmax.f32 %v1836_v7, 0.0 }
 0x197   : > { %v2773_v13 = vmax.f32 %v1831_v12, 0.0  ;;  %v4652_v15 = vpop.f32.mrb[86].mxu0  ;;  %5009 = vmatprep.subr.bf16.mxu1 %v5008_v10 }
 0x198   : > { %v1846_v18 = vadd.f32 %v6011_v16, %v4652_v15  ;;  %v1840_v49 = vpop.f32.mrb[87].mxu0  ;;  %5011 = vmatpush3.bf16.msra.mxu1 %v5949_v1 }
 0x199   : > { %v5012_v19 = vpack.c.bf16 %v2774_v44, %v2773_v13  ;;  %v1841_v55 = vadd.f32 %v6011_v16, %v1840_v49 }
 0x19a   : > { %v2776_v21 = vmax.f32 %v1846_v18, 0.0 }
 0x19b   : > { %v2775_v53 = vmax.f32 %v1841_v55, 0.0  ;;  %v4655_v58 = vpop.f32.mrb[88].mxu0  ;;  %5013 = vmatprep.subr.bf16.mxu1 %v5012_v19 }
 0x19c   : > { %v1856_v22 = vadd.f32 %v6011_v16, %v4655_v58  ;;  %v1850_v24 = vpop.f32.mrb[89].mxu0  ;;  %5015 = vmatpush3.bf16.msra.mxu1 %v5957_v11  ;;  %v2360_v11 = vpop.f32.mrb[1].mxu1 }
 0x19d   : > { %v5016_v25 = vpack.c.bf16 %v2776_v21, %v2775_v53  ;;  %v1851_v27 = vadd.f32 %v6011_v16, %v1850_v24  ;;  %v2361_v42 = vadd.f32 %v6011_v16, %v2360_v11  ;;  %v4811_v17 = vpop.f32.mrb[2].mxu1  ;;  %v2949_v21 = vld [vmem:[%s6446_s3 + $0x20] sm:$0xff] }
 0x19e   : > { %v2778_v59 = vmax.f32 %v1856_v22, 0.0  ;;  %v2370_v51 = vpop.f32.mrb[3].mxu1  ;;  %v2376_v23 = vadd.f32 %v6011_v16, %v4811_v17 }
 0x19f   : > { %v2777_v28 = vmax.f32 %v1851_v27, 0.0  ;;  %v4658_v30 = vpop.f32.mrb[90].mxu0  ;;  %5017 = vmatprep.subr.bf16.mxu1 %v5016_v25  ;;  %v2879_v46 = vmax.f32 %v2361_v42, 0.0  ;;  %v2371_v56 = vadd.f32 %v6011_v16, %v2370_v51  ;;  %v4814_v31 = vpop.f32.mrb[4].mxu1  ;;  %v2952_v27 = vld [vmem:[%s6446_s3 + $0x38] sm:$0xff] }
 0x1a0   : > { %v1866_v1 = vadd.f32 %v6011_v16, %v4658_v30  ;;  %v1860_v63 = vpop.f32.mrb[91].mxu0  ;;  %5019 = vmatpush3.bf16.msra.mxu1 %v5965_v20  ;;  %v2882_v33 = vmax.f32 %v2376_v23, 0.0  ;;  %v2380_v35 = vpop.f32.mrb[5].mxu1  ;;  %v2386_v6 = vadd.f32 %v6011_v16, %v4814_v31 }
 0x1a1   : > { %v5020_v32 = vpack.c.bf16 %v2778_v59, %v2777_v28  ;;  %v1861_v34 = vadd.f32 %v6011_v16, %v1860_v63  ;;  %v2881_v62 = vmax.f32 %v2371_v56, 0.0  ;;  %v2381_v7 = vadd.f32 %v6011_v16, %v2380_v35  ;;  %v4817_v15 = vpop.f32.mrb[6].mxu1 }
 0x1a2   : > { %v2780_v36 = vmax.f32 %v1866_v1, 0.0  ;;  %v2884_v44 = vmax.f32 %v2386_v6, 0.0  ;;  %v2390_v19 = vpop.f32.mrb[7].mxu1  ;;  %v2396_v58 = vadd.f32 %v6011_v16, %v4817_v15 }
 0x1a3   : > { %v2779_v4 = vmax.f32 %v1861_v34, 0.0  ;;  %v4661_v9 = vpop.f32.mrb[92].mxu0  ;;  %5021 = vmatprep.subr.bf16.mxu1 %v5020_v32  ;;  %v6036_v5 = vpack.c.bf16 %v2882_v33, %v2881_v62  ;;  %v2883_v13 = vmax.f32 %v2381_v7, 0.0  ;;  %v2391_v22 = vadd.f32 %v6011_v16, %v2390_v19  ;;  %v4820_v30 = vpop.f32.mrb[8].mxu1 }
 0x1a4   : > { %v1876_v8 = vadd.f32 %v6011_v16, %v4661_v9  ;;  %v1870_v39 = vpop.f32.mrb[93].mxu0  ;;  %5023 = vmatpush3.bf16.msra.mxu1 %v5973_v29  ;;  %v6029_v29 = vpack.c.bf16 %v2880_v14, %v2879_v46  ;;  %v2400_v32 = vpop.f32.mrb[9].mxu1 }
 0x1a5   : > { %v5024_v43 = vpack.c.bf16 %v2780_v36, %v2779_v4  ;;  %v1871_v20 = vadd.f32 %v6011_v16, %v1870_v39  ;;  %v6046_v53 = vpack.c.bf16 %v2884_v44, %v2883_v13  ;;  %v2885_v28 = vmax.f32 %v2391_v22, 0.0 }
 0x1a6   : > { %v2782_v45 = vmax.f32 %v1876_v8, 0.0  ;;  %v2406_v4 = vadd.f32 %v6011_v16, %v4820_v30  ;;  %v2401_v9 = vadd.f32 %v6011_v16, %v2400_v32 }
 0x1a7   : > { %v2781_v48 = vmax.f32 %v1871_v20, 0.0  ;;  %v4664_v50 = vpop.f32.mrb[94].mxu0  ;;  %5025 = vmatprep.subr.bf16.mxu1 %v5024_v43  ;;  %v4823_v43 = vpop.f32.mrb[10].mxu1 }
 0x1a8   : > { %v1886_v52 = vadd.f32 %v6011_v16, %v4664_v50  ;;  %v1880_v54 = vpop.f32.mrb[95].mxu0  ;;  %5027 = vmatpush3.bf16.msra.mxu1 %v5981_v38  ;;  %v2888_v41 = vmax.f32 %v2406_v4, 0.0  ;;  %v2887_v42 = vmax.f32 %v2401_v9, 0.0  ;;  %v2410_v14 = vpop.f32.mrb[11].mxu1  ;;  %v2416_v50 = vadd.f32 %v6011_v16, %v4823_v43 }
 0x1a9   : > { %v5028_v57 = vpack.c.bf16 %v2782_v45, %v2781_v48  ;;  %v1881_v60 = vadd.f32 %v6011_v16, %v1880_v54  ;;  %v2411_v51 = vadd.f32 %v6011_v16, %v2410_v14 }
 0x1aa   : > { %v2784_v61 = vmax.f32 %v1886_v52, 0.0  ;;  %v6065_v48 = vpack.c.bf16 %v2888_v41, %v2887_v42  ;;  %v2890_v56 = vmax.f32 %v2416_v50, 0.0 }
 0x1ab   : > { %v2783_v0 = vmax.f32 %v1881_v60, 0.0  ;;  %v4667_v2 = vpop.f32.mrb[96].mxu0  ;;  %5029 = vmatprep.subr.bf16.mxu1 %v5028_v57  ;;  %v2889_v57 = vmax.f32 %v2411_v51, 0.0  ;;  %v4826_v60 = vpop.f32.mrb[12].mxu1 }
 0x1ac   : > { %v1896_v3 = vadd.f32 %v6011_v16, %v4667_v2  ;;  %v1890_v38 = vpop.f32.mrb[97].mxu0  ;;  %5031 = vmatpush3.bf16.msra.mxu1 %v5989_v47  ;;  %v2420_v62 = vpop.f32.mrb[13].mxu1  ;;  %v2426_v35 = vadd.f32 %v6011_v16, %v4826_v60 }
 0x1ad   : > { %v5032_v40 = vpack.c.bf16 %v2784_v61, %v2783_v0  ;;  %v1891_v10 = vadd.f32 %v6011_v16, %v1890_v38  ;;  %v6073_v2 = vpack.c.bf16 %v2890_v56, %v2889_v57 }
 0x1ae   : > { %v2786_v12 = vmax.f32 %v1896_v3, 0.0  ;;  %v2421_v3 = vadd.f32 %v6011_v16, %v2420_v62 }
 0x1af   : > { %v2785_v18 = vmax.f32 %v1891_v10, 0.0  ;;  %v4670_v49 = vpop.f32.mrb[98].mxu0  ;;  %5033 = vmatprep.subr.bf16.mxu1 %v5032_v40  ;;  %v2892_v40 = vmax.f32 %v2426_v35, 0.0 }
 0x1b0   : > { %v1906_v55 = vadd.f32 %v6011_v16, %v4670_v49  ;;  %v1900_v47 = vpop.f32.mrb[99].mxu0  ;;  %5035 = vmatpush3.bf16.msra.mxu1 %v5997_v26  ;;  %v2886_v26 = vmax.f32 %v2396_v58, 0.0  ;;  %v2891_v10 = vmax.f32 %v2421_v3, 0.0 }
 0x1b1   : > { %v6050_v24 = vpack.c.bf16 %v2786_v12, %v2785_v18  ;;  %v1901_v25 = vadd.f32 %v6011_v16, %v1900_v47  ;;  %v4829_v12 = vpop.f32.mrb[14].mxu1 }
 0x1b2   : > { %v2788_v59 = vmax.f32 %v1906_v55, 0.0  ;;  %v6057_v37 = vpack.c.bf16 %v2886_v26, %v2885_v28  ;;  %v2430_v15 = vpop.f32.mrb[15].mxu1  ;;  %v6081_v19 = vpack.c.bf16 %v2892_v40, %v2891_v10  ;;  %v2436_v55 = vadd.f32 %v6011_v16, %v4829_v12 }
 0x1b3   : > { %v2787_v1 = vmax.f32 %v1901_v25, 0.0  ;;  %v4673_v63 = vpop.f32.mrb[100].mxu0  ;;  %3166 = vmatmul.mubr.f32.vlgmr.msra.gmra.mrb[70].mxu1 %v2949_v21  ;;  %v2431_v47 = vadd.f32 %v6011_v16, %v2430_v15 }
 0x1b4   : > { %v1916_v34 = vadd.f32 %v6011_v16, %v4673_v63  ;;  %v1910_v36 = vpop.f32.mrb[101].mxu0  ;;  %3235 = vmatprep.mubr.f32.mxu1 %v2952_v27  ;;  %v2894_v25 = vmax.f32 %v2436_v55, 0.0 }
 0x1b5   : > { %v6061_v11 = vpack.c.bf16 %v2788_v59, %v2787_v1  ;;  %v1911_v8 = vadd.f32 %v6011_v16, %v1910_v36  ;;  %v2893_v27 = vmax.f32 %v2431_v47, 0.0  ;;  %v4832_v59 = vpop.f32.mrb[16].mxu1 }
 0x1b6   : > { %v2790_v39 = vmax.f32 %v1916_v34, 0.0  ;;  %v2440_v30 = vpop.f32.mrb[17].mxu1  ;;  %v2446_v34 = vadd.f32 %v6011_v16, %v4832_v59 }
 0x1b7   : > { %v2789_v20 = vmax.f32 %v1911_v8, 0.0  ;;  %v4676_v45 = vpop.f32.mrb[102].mxu0  ;;  %v6089_v32 = vpack.c.bf16 %v2894_v25, %v2893_v27  ;;  %v2441_v36 = vadd.f32 %v6011_v16, %v2440_v30  ;;  %v4835_v42 = vpop.f32.mrb[18].mxu1 }
 0x1b8   : > { %v1926_v46 = vadd.f32 %v6011_v16, %v4676_v45  ;;  %v1920_v17 = vpop.f32.mrb[103].mxu0  ;;  %v2450_v45 = vpop.f32.mrb[19].mxu1  ;;  %v2456_v50 = vadd.f32 %v6011_v16, %v4835_v42 }
 0x1b9   : > { %v6069_v52 = vpack.c.bf16 %v2790_v39, %v2789_v20  ;;  %v1921_v54 = vadd.f32 %v6011_v16, %v1920_v17  ;;  %v2896_v39 = vmax.f32 %v2446_v34, 0.0  ;;  %v2895_v41 = vmax.f32 %v2441_v36, 0.0 }
 0x1ba   : > { %v2792_v23 = vmax.f32 %v1926_v46, 0.0  ;;  %v2451_v51 = vadd.f32 %v6011_v16, %v2450_v45  ;;  %v2898_v57 = vmax.f32 %v2456_v50, 0.0 }
 0x1bb   : > { %v2791_v61 = vmax.f32 %v1921_v54, 0.0  ;;  %v4679_v33 = vpop.f32.mrb[104].mxu0  ;;  %v6097_v17 = vpack.c.bf16 %v2896_v39, %v2895_v41 }
 0x1bc   : > { %v1936_v31 = vadd.f32 %v6011_v16, %v4679_v33  ;;  %v1930_v0 = vpop.f32.mrb[105].mxu0  ;;  %v2897_v60 = vmax.f32 %v2451_v51, 0.0 }
 0x1bd   : > { %v6077_v38 = vpack.c.bf16 %v2792_v23, %v2791_v61  ;;  %v1931_v6 = vadd.f32 %v6011_v16, %v1930_v0  ;;  %v4838_v61 = vpop.f32.mrb[20].mxu1 }
 0x1be   : > { %v2794_v7 = vmax.f32 %v1936_v31, 0.0  ;;  %v2460_v31 = vpop.f32.mrb[21].mxu1  ;;  %v6105_v3 = vpack.c.bf16 %v2898_v57, %v2897_v60 }
 0x1bf   : > { %v2793_v44 = vmax.f32 %v1931_v6, 0.0  ;;  %v4682_v13 = vpop.f32.mrb[106].mxu0  ;;  %v2466_v6 = vadd.f32 %v6011_v16, %v4838_v61  ;;  %v4841_v15 = vpop.f32.mrb[22].mxu1 }
 0x1c0   : > { %v1946_v18 = vadd.f32 %v6011_v16, %v4682_v13  ;;  %v1940_v49 = vpop.f32.mrb[107].mxu0  ;;  %v2470_v55 = vpop.f32.mrb[23].mxu1  ;;  %v2476_v25 = vadd.f32 %v6011_v16, %v4841_v15 }
 0x1c1   : > { %v6085_v21 = vpack.c.bf16 %v2794_v7, %v2793_v44  ;;  %v1941_v58 = vadd.f32 %v6011_v16, %v1940_v49  ;;  %v2461_v7 = vadd.f32 %v6011_v16, %v2460_v31  ;;  %v2900_v44 = vmax.f32 %v2466_v6, 0.0 }
 0x1c2   : > { %v2796_v22 = vmax.f32 %v1946_v18, 0.0  ;;  %v2471_v27 = vadd.f32 %v6011_v16, %v2470_v55  ;;  %v2902_v30 = vmax.f32 %v2476_v25, 0.0 }
 0x1c3   : > { %v2795_v26 = vmax.f32 %v1941_v58, 0.0  ;;  %v4685_v28 = vpop.f32.mrb[108].mxu0  ;;  %v2899_v13 = vmax.f32 %v2461_v7, 0.0 }
 0x1c4   : > { %v1956_v1 = vadd.f32 %v6011_v16, %v4685_v28  ;;  %v1950_v63 = vpop.f32.mrb[109].mxu0 }
 0x1c5   : > { %v6093_v4 = vpack.c.bf16 %v2796_v22, %v2795_v26  ;;  %v1951_v9 = vadd.f32 %v6011_v16, %v1950_v63  ;;  %v6113_v22 = vpack.c.bf16 %v2900_v44, %v2899_v13  ;;  %v4844_v63 = vpop.f32.mrb[24].mxu1 }
 0x1c6   : > { %v2798_v8 = vmax.f32 %v1956_v1, 0.0  ;;  %v2901_v1 = vmax.f32 %v2471_v27, 0.0  ;;  %v2486_v42 = vadd.f32 %v6011_v16, %v4844_v63 }
 0x1c7   : > { %v2797_v43 = vmax.f32 %v1951_v9, 0.0  ;;  %v4688_v20 = vpop.f32.mrb[110].mxu0  ;;  %v2480_v9 = vpop.f32.mrb[25].mxu1 }
 0x1c8   : > { %v1966_v14 = vadd.f32 %v6011_v16, %v4688_v20  ;;  %v1960_v46 = vpop.f32.mrb[111].mxu0  ;;  %v6120_v41 = vpack.c.bf16 %v2902_v30, %v2901_v1  ;;  %v4847_v51 = vpop.f32.mrb[26].mxu1 }
 0x1c9   : > { %v6101_v54 = vpack.c.bf16 %v2798_v8, %v2797_v43  ;;  %v1961_v23 = vadd.f32 %v6011_v16, %v1960_v46  ;;  %v2481_v43 = vadd.f32 %v6011_v16, %v2480_v9  ;;  %v2904_v46 = vmax.f32 %v2486_v42, 0.0  ;;  %v2490_v57 = vpop.f32.mrb[27].mxu1 }
 0x1ca   : > { %v2800_v56 = vmax.f32 %v1966_v14, 0.0 }
 0x1cb   : > { %v2799_v33 = vmax.f32 %v1961_v23, 0.0  ;;  %v4691_v62 = vpop.f32.mrb[112].mxu0  ;;  %v2903_v50 = vmax.f32 %v2481_v43, 0.0 }
 0x1cc   : > { %v1976_v0 = vadd.f32 %v6011_v16, %v4691_v62  ;;  %v1970_v35 = vpop.f32.mrb[113].mxu0  ;;  %v2491_v62 = vadd.f32 %v6011_v16, %v2490_v57 }
 0x1cd   : > { %v6109_v40 = vpack.c.bf16 %v2800_v56, %v2799_v33  ;;  %v1971_v10 = vadd.f32 %v6011_v16, %v1970_v35  ;;  %v6127_v61 = vpack.c.bf16 %v2904_v46, %v2903_v50  ;;  %v2496_v33 = vadd.f32 %v6011_v16, %v4847_v51 }
 0x1ce   : > { %v2802_v12 = vmax.f32 %v1976_v0, 0.0  ;;  %v2905_v7 = vmax.f32 %v2491_v62, 0.0 }
 0x1cf   : > { %v2801_v18 = vmax.f32 %v1971_v10, 0.0  ;;  %v4694_v49 = vpop.f32.mrb[114].mxu0  ;;  %v2906_v6 = vmax.f32 %v2496_v33, 0.0  ;;  %v4850_v10 = vpop.f32.mrb[28].mxu1 }
 0x1d0   : > { %v1986_v47 = vadd.f32 %v6011_v16, %v4694_v49  ;;  %v1980_v58 = vpop.f32.mrb[115].mxu0  ;;  %v2500_v13 = vpop.f32.mrb[29].mxu1  ;;  %v2506_v49 = vadd.f32 %v6011_v16, %v4850_v10 }
 0x1d1   : > { %v5036_v59 = vpack.c.bf16 %v2802_v12, %v2801_v18  ;;  %v1981_v26 = vadd.f32 %v6011_v16, %v1980_v58  ;;  %v6134_v18 = vpack.c.bf16 %v2906_v6, %v2905_v7  ;;  %v2501_v55 = vadd.f32 %v6011_v16, %v2500_v13 }
 0x1d2   : > { %v2804_v28 = vmax.f32 %v1986_v47, 0.0  ;;  %v2908_v27 = vmax.f32 %v2506_v49, 0.0 }
 0x1d3   : > { %v2803_v34 = vmax.f32 %v1981_v26, 0.0  ;;  %v4697_v36 = vpop.f32.mrb[116].mxu0  ;;  %5037 = vmatprep.subr.bf16.mxu1 %v5036_v59  ;;  %v2907_v59 = vmax.f32 %v2501_v55, 0.0  ;;  %v4853_v26 = vpop.f32.mrb[30].mxu1 }
 0x1d4   : > { %v1996_v8 = vadd.f32 %v6011_v16, %v4697_v36  ;;  %v1990_v39 = vpop.f32.mrb[117].mxu0  ;;  %5039 = vmatpush3.bf16.msra.mxu1 %v6050_v24  ;;  %v2510_v1 = vpop.f32.mrb[31].mxu1  ;;  %v2516_v36 = vadd.f32 %v6011_v16, %v4853_v26 }
 0x1d5   : > { %v5040_v20 = vpack.c.bf16 %v2804_v28, %v2803_v34  ;;  %v1991_v45 = vadd.f32 %v6011_v16, %v1990_v39  ;;  %v6141_v34 = vpack.c.bf16 %v2908_v27, %v2907_v59  ;;  %v2511_v9 = vadd.f32 %v6011_v16, %v2510_v1 }
 0x1d6   : > { %v2806_v14 = vmax.f32 %v1996_v8, 0.0  ;;  %v2910_v43 = vmax.f32 %v2516_v36, 0.0 }
 0x1d7   : > { %v2805_v23 = vmax.f32 %v1991_v45, 0.0  ;;  %v4700_v56 = vpop.f32.mrb[118].mxu0  ;;  %5041 = vmatprep.subr.bf16.mxu1 %v5040_v20  ;;  %v2909_v20 = vmax.f32 %v2511_v9, 0.0  ;;  %v4856_v45 = vpop.f32.mrb[32].mxu1 }
 0x1d8   : > { %v2006_v60 = vadd.f32 %v6011_v16, %v4700_v56  ;;  %v2000_v24 = vpop.f32.mrb[119].mxu0  ;;  %5043 = vmatpush3.bf16.msra.mxu1 %v6061_v11  ;;  %v2520_v50 = vpop.f32.mrb[33].mxu1  ;;  %v2526_v56 = vadd.f32 %v6011_v16, %v4856_v45 }
 0x1d9   : > { %v5044_v31 = vpack.c.bf16 %v2806_v14, %v2805_v23  ;;  %v2001_v0 = vadd.f32 %v6011_v16, %v2000_v24  ;;  %v6148_v23 = vpack.c.bf16 %v2910_v43, %v2909_v20  ;;  %v2521_v57 = vadd.f32 %v6011_v16, %v2520_v50 }
 0x1da   : > { %v2808_v35 = vmax.f32 %v2006_v60, 0.0  ;;  %v2912_v62 = vmax.f32 %v2526_v56, 0.0 }
 0x1db   : > { %v2807_v12 = vmax.f32 %v2001_v0, 0.0  ;;  %v4703_v44 = vpop.f32.mrb[120].mxu0  ;;  %5045 = vmatprep.subr.bf16.mxu1 %v5044_v31  ;;  %v2911_v31 = vmax.f32 %v2521_v57, 0.0  ;;  %v4859_v0 = vpop.f32.mrb[34].mxu1 }
 0x1dc   : > { %v2016_v15 = vadd.f32 %v6011_v16, %v4703_v44  ;;  %v2010_v11 = vpop.f32.mrb[121].mxu0  ;;  %5047 = vmatpush3.bf16.msra.mxu1 %v6069_v52  ;;  %v2530_v7 = vpop.f32.mrb[35].mxu1  ;;  %v2536_v44 = vadd.f32 %v6011_v16, %v4859_v0 }
 0x1dd   : > { %v5048_v47 = vpack.c.bf16 %v2808_v35, %v2807_v12  ;;  %v2011_v58 = vadd.f32 %v6011_v16, %v2010_v11  ;;  %v6155_v12 = vpack.c.bf16 %v2912_v62, %v2911_v31  ;;  %v2531_v13 = vadd.f32 %v6011_v16, %v2530_v7  ;;  %v4862_v49 = vpop.f32.mrb[36].mxu1 }
 0x1de   : > { %v2810_v25 = vmax.f32 %v2016_v15, 0.0  ;;  %v2540_v27 = vpop.f32.mrb[37].mxu1 }
 0x1df   : > { %v2809_v28 = vmax.f32 %v2011_v58, 0.0  ;;  %v4706_v30 = vpop.f32.mrb[122].mxu0  ;;  %5049 = vmatprep.subr.bf16.mxu1 %v5048_v47  ;;  %v2914_v47 = vmax.f32 %v2536_v44, 0.0  ;;  %v2913_v58 = vmax.f32 %v2531_v13, 0.0 }
 0x1e0   : > { %v2026_v63 = vadd.f32 %v6011_v16, %v4706_v30  ;;  %v2020_v52 = vpop.f32.mrb[123].mxu0  ;;  %5051 = vmatpush3.bf16.msra.mxu1 %v6077_v38 }
 0x1e1   : > { %v5052_v8 = vpack.c.bf16 %v2810_v25, %v2809_v28  ;;  %v2021_v39 = vadd.f32 %v6011_v16, %v2020_v52  ;;  %v2546_v25 = vadd.f32 %v6011_v16, %v4862_v49  ;;  %v6164_v1 = vpack.c.bf16 %v2914_v47, %v2913_v58 }
 0x1e2   : > { %v2812_v42 = vmax.f32 %v2026_v63, 0.0 }
 0x1e3   : > { %v2811_v14 = vmax.f32 %v2021_v39, 0.0  ;;  %v4709_v46 = vpop.f32.mrb[124].mxu0  ;;  %5053 = vmatprep.subr.bf16.mxu1 %v5052_v8  ;;  %v2916_v63 = vmax.f32 %v2546_v25, 0.0  ;;  %v4865_v8 = vpop.f32.mrb[38].mxu1 }
 0x1e4   : > { %v2036_v51 = vadd.f32 %v6011_v16, %v4709_v46  ;;  %v2030_v38 = vpop.f32.mrb[125].mxu0  ;;  %5055 = vmatpush3.bf16.msra.mxu1 %v6085_v21  ;;  %v2550_v43 = vpop.f32.mrb[39].mxu1 }
 0x1e5   : > { %v5056_v60 = vpack.c.bf16 %v2812_v42, %v2811_v14  ;;  %v2031_v24 = vadd.f32 %v6011_v16, %v2030_v38  ;;  %v2556_v42 = vadd.f32 %v6011_v16, %v4865_v8  ;;  %v2551_v46 = vadd.f32 %v6011_v16, %v2550_v43 }
 0x1e6   : > { %v2814_v33 = vmax.f32 %v2036_v51, 0.0  ;;  %v2951_v51 = vld [vmem:[%s6446_s3 + $0x30] sm:$0xff] }
 0x1e7   : > { %v2813_v35 = vmax.f32 %v2031_v24, 0.0  ;;  %v4712_v6 = vpop.f32.mrb[126].mxu0  ;;  %5057 = vmatprep.subr.bf16.mxu1 %v5056_v60  ;;  %v2918_v38 = vmax.f32 %v2556_v42, 0.0  ;;  %v2954_v60 = vld [vmem:[%s6446_s3 + $0x48] sm:$0xff]  ;;  %v2917_v24 = vmax.f32 %v2551_v46, 0.0 }
 0x1e8   : > { %v2046_v10 = vadd.f32 %v6011_v16, %v4712_v6  ;;  %v2040_v21 = vpop.f32.mrb[127].mxu0  ;;  %5059 = vmatpush3.bf16.msra.mxu1 %v6093_v4  ;;  %v2541_v4 = vadd.f32 %v6011_v16, %v2540_v27 }
 0x1e9   : > { %v5060_v15 = vpack.c.bf16 %v2814_v33, %v2813_v35  ;;  %v2041_v11 = vadd.f32 %v6011_v16, %v2040_v21  ;;  %v4868_v33 = vpop.f32.mrb[40].mxu1  ;;  %v6183_v6 = vpack.c.bf16 %v2918_v38, %v2917_v24 }
 0x1ea   : > { %v2816_v55 = vmax.f32 %v2046_v10, 0.0  ;;  %v2915_v9 = vmax.f32 %v2541_v4, 0.0  ;;  %v2566_v31 = vadd.f32 %v6011_v16, %v4868_v33  ;;  %v2560_v0 = vpop.f32.mrb[41].mxu1 }
 0x1eb   : > { %v2815_v59 = vmax.f32 %v2041_v11, 0.0  ;;  %v4715_v26 = vpop.f32.mrb[128].mxu0  ;;  %5061 = vmatprep.subr.bf16.mxu1 %v5060_v15  ;;  %v2561_v7 = vadd.f32 %v6011_v16, %v2560_v0  ;;  %v4871_v49 = vpop.f32.mrb[42].mxu1 }
 0x1ec   : > { %v2056_v28 = vadd.f32 %v6011_v16, %v4715_v26  ;;  %v2050_v30 = vpop.f32.mrb[129].mxu0  ;;  %5063 = vmatpush3.bf16.msra.mxu1 %v6101_v54  ;;  %v6168_v14 = vpack.c.bf16 %v2916_v63, %v2915_v9  ;;  %v2920_v44 = vmax.f32 %v2566_v31, 0.0  ;;  %v2576_v47 = vadd.f32 %v6011_v16, %v4871_v49  ;;  %v2570_v58 = vpop.f32.mrb[43].mxu1 }
 0x1ed   : > { %v5064_v52 = vpack.c.bf16 %v2816_v55, %v2815_v59  ;;  %v2051_v36 = vadd.f32 %v6011_v16, %v2050_v30  ;;  %v2919_v11 = vmax.f32 %v2561_v7, 0.0  ;;  %v2571_v26 = vadd.f32 %v6011_v16, %v2570_v58  ;;  %v4874_v9 = vpop.f32.mrb[44].mxu1 }
 0x1ee   : > { %v2818_v39 = vmax.f32 %v2056_v28, 0.0  ;;  %v2922_v30 = vmax.f32 %v2576_v47, 0.0  ;;  %v2580_v42 = vpop.f32.mrb[45].mxu1 }
 0x1ef   : > { %v2817_v20 = vmax.f32 %v2051_v36, 0.0  ;;  %v4718_v45 = vpop.f32.mrb[130].mxu0  ;;  %5065 = vmatprep.subr.bf16.mxu1 %v5064_v52  ;;  %v6191_v59 = vpack.c.bf16 %v2920_v44, %v2919_v11  ;;  %v2921_v36 = vmax.f32 %v2571_v26, 0.0  ;;  %v2581_v46 = vadd.f32 %v6011_v16, %v2580_v42  ;;  %v4877_v24 = vpop.f32.mrb[46].mxu1 }
 0x1f0   : > { %v2066_v54 = vadd.f32 %v6011_v16, %v4718_v45  ;;  %v2060_v50 = vpop.f32.mrb[131].mxu0  ;;  %5067 = vmatpush3.bf16.msra.mxu1 %v6109_v40  ;;  %v2590_v31 = vpop.f32.mrb[47].mxu1 }
 0x1f1   : > { %v6176_v56 = vpack.c.bf16 %v2818_v39, %v2817_v20  ;;  %v2061_v57 = vadd.f32 %v6011_v16, %v2060_v50  ;;  %v2586_v39 = vadd.f32 %v6011_v16, %v4874_v9  ;;  %v6199_v45 = vpack.c.bf16 %v2922_v30, %v2921_v36 }
 0x1f2   : > { %v2820_v62 = vmax.f32 %v2066_v54, 0.0  ;;  %v2591_v7 = vadd.f32 %v6011_v16, %v2590_v31 }
 0x1f3   : > { %v2819_v40 = vmax.f32 %v2061_v57, 0.0  ;;  %v4721_v35 = vpop.f32.mrb[132].mxu0  ;;  %3236 = vmatmul.mubr.f32.vlgmr.msra.gmra.mrb[72].mxu1 %v2951_v51  ;;  %v2924_v51 = vmax.f32 %v2586_v39, 0.0 }
 0x1f4   : > { %v2076_v10 = vadd.f32 %v6011_v16, %v4721_v35  ;;  %v2070_v21 = vpop.f32.mrb[133].mxu0  ;;  %3305 = vmatprep.mubr.f32.mxu1 %v2954_v60  ;;  %v2923_v60 = vmax.f32 %v2581_v46, 0.0  ;;  %v2925_v49 = vmax.f32 %v2591_v7, 0.0 }
 0x1f5   : > { %v6187_v13 = vpack.c.bf16 %v2820_v62, %v2819_v40  ;;  %v2071_v15 = vadd.f32 %v6011_v16, %v2070_v21  ;;  %v2596_v62 = vadd.f32 %v6011_v16, %v4877_v24 }
 0x1f6   : > { %v2822_v55 = vmax.f32 %v2076_v10, 0.0  ;;  %v6207_v35 = vpack.c.bf16 %v2924_v51, %v2923_v60 }
 0x1f7   : > { %v2821_v25 = vmax.f32 %v2071_v15, 0.0  ;;  %v4724_v27 = vpop.f32.mrb[134].mxu0  ;;  %v2926_v44 = vmax.f32 %v2596_v62, 0.0 }
 0x1f8   : > { %v2086_v4 = vadd.f32 %v6011_v16, %v4724_v27  ;;  %v2080_v28 = vpop.f32.mrb[135].mxu0 }
 0x1f9   : > { %v6195_v63 = vpack.c.bf16 %v2822_v55, %v2821_v25  ;;  %v2081_v52 = vadd.f32 %v6011_v16, %v2080_v28  ;;  %v4880_v55 = vpop.f32.mrb[48].mxu1 }
 0x1fa   : > { %v2824_v8 = vmax.f32 %v2086_v4, 0.0  ;;  %v2606_v58 = vadd.f32 %v6011_v16, %v4880_v55  ;;  %v2600_v25 = vpop.f32.mrb[49].mxu1  ;;  %v6215_v4 = vpack.c.bf16 %v2926_v44, %v2925_v49 }
 0x1fb   : > { %v2823_v43 = vmax.f32 %v2081_v52, 0.0  ;;  %v4727_v20 = vpop.f32.mrb[136].mxu0  ;;  %v2601_v28 = vadd.f32 %v6011_v16, %v2600_v25  ;;  %v4883_v42 = vpop.f32.mrb[50].mxu1 }
 0x1fc   : > { %v2096_v54 = vadd.f32 %v6011_v16, %v4727_v20  ;;  %v2090_v50 = vpop.f32.mrb[137].mxu0  ;;  %v2928_v36 = vmax.f32 %v2606_v58, 0.0  ;;  %v2616_v20 = vadd.f32 %v6011_v16, %v4883_v42  ;;  %v2610_v46 = vpop.f32.mrb[51].mxu1 }
 0x1fd   : > { %v6203_v38 = vpack.c.bf16 %v2824_v8, %v2823_v43  ;;  %v2091_v57 = vadd.f32 %v6011_v16, %v2090_v50  ;;  %v2927_v39 = vmax.f32 %v2601_v28, 0.0 }
 0x1fe   : > { %v2826_v33 = vmax.f32 %v2096_v54, 0.0 }
 0x1ff   : > { %v2825_v0 = vmax.f32 %v2091_v57, 0.0  ;;  %v4730_v40 = vpop.f32.mrb[138].mxu0  ;;  %v6223_v51 = vpack.c.bf16 %v2928_v36, %v2927_v39  ;;  %v2611_v57 = vadd.f32 %v6011_v16, %v2610_v46 }
 0x200   : > { %v2106_v10 = vadd.f32 %v6011_v16, %v4730_v40  ;;  %v2100_v21 = vpop.f32.mrb[139].mxu0  ;;  %v4886_v40 = vpop.f32.mrb[52].mxu1 }
 0x201   : > { %v6211_v15 = vpack.c.bf16 %v2826_v33, %v2825_v0  ;;  %v2101_v11 = vadd.f32 %v6011_v16, %v2100_v21  ;;  %v2930_v33 = vmax.f32 %v2616_v20, 0.0  ;;  %v2929_v0 = vmax.f32 %v2611_v57, 0.0  ;;  %v2620_v21 = vpop.f32.mrb[53].mxu1 }
 0x202   : > { %v2828_v47 = vmax.f32 %v2106_v10, 0.0  ;;  %v2626_v10 = vadd.f32 %v6011_v16, %v4886_v40  ;;  %v2621_v55 = vadd.f32 %v6011_v16, %v2620_v21 }
 0x203   : > { %v2827_v27 = vmax.f32 %v2101_v11, 0.0  ;;  %v4733_v26 = vpop.f32.mrb[140].mxu0  ;;  %v6231_v49 = vpack.c.bf16 %v2930_v33, %v2929_v0 }
 0x204   : > { %v2116_v30 = vadd.f32 %v6011_v16, %v4733_v26  ;;  %v2110_v52 = vpop.f32.mrb[141].mxu0  ;;  %v2932_v25 = vmax.f32 %v2626_v10, 0.0  ;;  %v2931_v28 = vmax.f32 %v2621_v55, 0.0 }
 0x205   : > { %v6219_v9 = vpack.c.bf16 %v2828_v47, %v2827_v27  ;;  %v2111_v8 = vadd.f32 %v6011_v16, %v2110_v52 }
 0x206   : > { %v2830_v43 = vmax.f32 %v2116_v30, 0.0  ;;  %v4889_v30 = vpop.f32.mrb[54].mxu1 }
 0x207   : > { %v2829_v54 = vmax.f32 %v2111_v8, 0.0  ;;  %v4736_v50 = vpop.f32.mrb[142].mxu0  ;;  %v2636_v36 = vadd.f32 %v6011_v16, %v4889_v30  ;;  %v2630_v8 = vpop.f32.mrb[55].mxu1 }
 0x208   : > { %v2126_v60 = vadd.f32 %v6011_v16, %v4736_v50  ;;  %v2120_v24 = vpop.f32.mrb[143].mxu0  ;;  %v2631_v20 = vadd.f32 %v6011_v16, %v2630_v8  ;;  %v4892_v33 = vpop.f32.mrb[56].mxu1 }
 0x209   : > { %v6227_v62 = vpack.c.bf16 %v2830_v43, %v2829_v54  ;;  %v2121_v31 = vadd.f32 %v6011_v16, %v2120_v24  ;;  %v6239_v43 = vpack.c.bf16 %v2932_v25, %v2931_v28  ;;  %v2934_v50 = vmax.f32 %v2636_v36, 0.0  ;;  %v2640_v40 = vpop.f32.mrb[57].mxu1 }
 0x20a   : > { %v2832_v7 = vmax.f32 %v2126_v60, 0.0  ;;  %v2933_v24 = vmax.f32 %v2631_v20, 0.0  ;;  %v2646_v0 = vadd.f32 %v6011_v16, %v4892_v33  ;;  %v4895_v28 = vpop.f32.mrb[58].mxu1 }
 0x20b   : > { %v2831_v44 = vmax.f32 %v2121_v31, 0.0  ;;  %v4739_v11 = vpop.f32.mrb[144].mxu0  ;;  %v2650_v36 = vpop.f32.mrb[59].mxu1 }
 0x20c   : > { %v2136_v47 = vadd.f32 %v6011_v16, %v4739_v11  ;;  %v2130_v58 = vpop.f32.mrb[145].mxu0  ;;  %v6245_v21 = vpack.c.bf16 %v2934_v50, %v2933_v24  ;;  %v2651_v20 = vadd.f32 %v6011_v16, %v2650_v36  ;;  %v4898_v24 = vpop.f32.mrb[60].mxu1 }
 0x20d   : > { %v6235_v27 = vpack.c.bf16 %v2832_v7, %v2831_v44  ;;  %v2131_v26 = vadd.f32 %v6011_v16, %v2130_v58  ;;  %v2641_v44 = vadd.f32 %v6011_v16, %v2640_v40 }
 0x20e   : > { %v2834_v52 = vmax.f32 %v2136_v47, 0.0  ;;  %v2936_v47 = vmax.f32 %v2646_v0, 0.0  ;;  %v2660_v0 = vpop.f32.mrb[61].mxu1 }
 0x20f   : > { %v2833_v39 = vmax.f32 %v2131_v26, 0.0  ;;  %v4742_v42 = vpop.f32.mrb[146].mxu0  ;;  %v2935_v26 = vmax.f32 %v2641_v44, 0.0  ;;  %v2661_v44 = vadd.f32 %v6011_v16, %v2660_v0 }
 0x210   : > { %v2146_v46 = vadd.f32 %v6011_v16, %v4742_v42  ;;  %v2140_v54 = vpop.f32.mrb[147].mxu0 }
 0x211   : > { %v5068_v57 = vpack.c.bf16 %v2834_v52, %v2833_v39  ;;  %v2141_v60 = vadd.f32 %v6011_v16, %v2140_v54  ;;  %v2656_v52 = vadd.f32 %v6011_v16, %v4895_v28  ;;  %v6252_v42 = vpack.c.bf16 %v2936_v47, %v2935_v26  ;;  %v4901_v26 = vpop.f32.mrb[62].mxu1 }
 0x212   : > { %v2836_v31 = vmax.f32 %v2146_v46, 0.0 }
 0x213   : > { %v2835_v7 = vmax.f32 %v2141_v60, 0.0  ;;  %v4745_v10 = vpop.f32.mrb[148].mxu0  ;;  %5069 = vmatprep.subr.bf16.mxu1 %v5068_v57  ;;  %v2938_v54 = vmax.f32 %v2656_v52, 0.0  ;;  %v2937_v60 = vmax.f32 %v2651_v20, 0.0  ;;  %v2670_v52 = vpop.f32.mrb[63].mxu1 }
 0x214   : > { %v2156_v11 = vadd.f32 %v6011_v16, %v4745_v10  ;;  %v2150_v55 = vpop.f32.mrb[149].mxu0  ;;  %5071 = vmatpush3.bf16.msra.mxu1 %v6176_v56  ;;  %v2671_v20 = vadd.f32 %v6011_v16, %v2670_v52 }
 0x215   : > { %v5072_v58 = vpack.c.bf16 %v2836_v31, %v2835_v7  ;;  %v2151_v25 = vadd.f32 %v6011_v16, %v2150_v55  ;;  %v2666_v31 = vadd.f32 %v6011_v16, %v4898_v24  ;;  %v6259_v10 = vpack.c.bf16 %v2938_v54, %v2937_v60  ;;  %v4904_v60 = vpop.f32.mrb[64].mxu1 }
 0x216   : > { %v2838_v30 = vmax.f32 %v2156_v11, 0.0  ;;  %v2680_v0 = vpop.f32.mrb[65].mxu1 }
 0x217   : > { %v2837_v8 = vmax.f32 %v2151_v25, 0.0  ;;  %v4748_v39 = vpop.f32.mrb[150].mxu0  ;;  %5073 = vmatprep.subr.bf16.mxu1 %v5072_v58  ;;  %v2940_v55 = vmax.f32 %v2666_v31, 0.0  ;;  %v2939_v25 = vmax.f32 %v2661_v44, 0.0 }
 0x218   : > { %v2166_v46 = vadd.f32 %v6011_v16, %v4748_v39  ;;  %v2160_v56 = vpop.f32.mrb[151].mxu0  ;;  %5075 = vmatpush3.bf16.msra.mxu1 %v6187_v13 }
 0x219   : > { %v5076_v50 = vpack.c.bf16 %v2838_v30, %v2837_v8  ;;  %v2161_v57 = vadd.f32 %v6011_v16, %v2160_v56  ;;  %v2676_v30 = vadd.f32 %v6011_v16, %v4901_v26  ;;  %v6266_v39 = vpack.c.bf16 %v2940_v55, %v2939_v25 }
 0x21a   : > { %v2840_v33 = vmax.f32 %v2166_v46, 0.0 }
 0x21b   : > { %v2839_v40 = vmax.f32 %v2161_v57, 0.0  ;;  %v4751_v7 = vpop.f32.mrb[152].mxu0  ;;  %5077 = vmatprep.subr.bf16.mxu1 %v5076_v50  ;;  %v2942_v56 = vmax.f32 %v2676_v30, 0.0  ;;  %v2941_v57 = vmax.f32 %v2671_v20, 0.0 }
 0x21c   : > { %v2176_v11 = vadd.f32 %v6011_v16, %v4751_v7  ;;  %v2170_v13 = vpop.f32.mrb[153].mxu0  ;;  %5079 = vmatpush3.bf16.msra.mxu1 %v6195_v63 }
 0x21d   : > { %v5080_v47 = vpack.c.bf16 %v2840_v33, %v2839_v40  ;;  %v2171_v58 = vadd.f32 %v6011_v16, %v2170_v13  ;;  %v6275_v33 = vld [vmem:[%s6445_s2] ss:$0 sm:$0xff]  ;;  %v6278_v44 = vpack.c.bf16 %v2942_v56, %v2941_v57 }
 0x21e   : > { %v2842_v28 = vmax.f32 %v2176_v11, 0.0  ;;  %v2686_v31 = vadd.f32 %v6275_v33, %v4904_v60  ;;  %v4248_v11 = vpop.f32.mrb[66].mxu1 }
 0x21f   : > { %v2841_v36 = vmax.f32 %v2171_v58, 0.0  ;;  %v4754_v8 = vpop.f32.mrb[154].mxu0  ;;  %5081 = vmatprep.subr.bf16.mxu1 %v5080_v47  ;;  %v4249_v47 = vpop.f32.mrb[67].mxu1 }
 0x220   : > { %v2186_v46 = vadd.f32 %v6011_v16, %v4754_v8  ;;  %v2180_v63 = vpop.f32.mrb[155].mxu0  ;;  %5083 = vmatpush3.bf16.msra.mxu1 %v6203_v38  ;;  %v2681_v38 = vadd.f32 %v6275_v33, %v2680_v0  ;;  %v2944_v55 = vmax.f32 %v2686_v31, 0.0 }
 0x221   : > { %v5084_v54 = vpack.c.bf16 %v2842_v28, %v2841_v36  ;;  %v2181_v50 = vadd.f32 %v6011_v16, %v2180_v63  ;;  %v6284_v28 = vadd.f32 %v4249_v47, %v4248_v11  ;;  %v2953_v11 = vld [vmem:[%s6446_s3 + $0x40] sm:$0xff] }
 0x222   : > { %v2844_v24 = vmax.f32 %v2186_v46, 0.0  ;;  %v2943_v26 = vmax.f32 %v2681_v38, 0.0 }
 0x223   : > { %v2843_v40 = vmax.f32 %v2181_v50, 0.0  ;;  %v4757_v7 = vpop.f32.mrb[156].mxu0  ;;  %5085 = vmatprep.subr.bf16.mxu1 %v5084_v54 }
 0x224   : > { %v2196_v16 = vadd.f32 %v6275_v33, %v4757_v7  ;;  %v2190_v13 = vpop.f32.mrb[157].mxu0  ;;  %5087 = vmatpush3.bf16.msra.mxu1 %v6211_v15  ;;  %v6286_v8 = vpack.c.bf16 %v2944_v55, %v2943_v26 }
 0x225   : > { %v5088_v58 = vpack.c.bf16 %v2844_v24, %v2843_v40  ;;  %v2191_v25 = vadd.f32 %v6275_v33, %v2190_v13  ;;  %v2956_v13 = vld [vmem:[%s6446_s3 + $0x58] sm:$0xff] }
 0x226   : > { %v2846_v30 = vmax.f32 %v2196_v16, 0.0 }
 0x227   : > { %v2845_v52 = vmax.f32 %v2191_v25, 0.0  ;;  %v4760_v36 = vpop.f32.mrb[158].mxu0  ;;  %5089 = vmatprep.subr.bf16.mxu1 %v5088_v58 }
 0x228   : > { %v2206_v20 = vadd.f32 %v6275_v33, %v4760_v36  ;;  %v2200_v46 = vpop.f32.mrb[159].mxu0  ;;  %5091 = vmatpush3.bf16.msra.mxu1 %v6219_v9 }
 0x229   : > { %v5092_v15 = vpack.c.bf16 %v2846_v30, %v2845_v52  ;;  %v2201_v63 = vadd.f32 %v6275_v33, %v2200_v46 }
 0x22a   : > { %v2848_v56 = vmax.f32 %v2206_v20, 0.0 }
 0x22b   : > { %v2847_v54 = vmax.f32 %v2201_v63, 0.0  ;;  %v4763_v50 = vpop.f32.mrb[160].mxu0  ;;  %5093 = vmatprep.subr.bf16.mxu1 %v5092_v15 }
 0x22c   : > { %v2216_v57 = vadd.f32 %v6275_v33, %v4763_v50  ;;  %v2210_v60 = vpop.f32.mrb[161].mxu0  ;;  %5095 = vmatpush3.bf16.msra.mxu1 %v6227_v62 }
 0x22d   : > { %v5096_v24 = vpack.c.bf16 %v2848_v56, %v2847_v54  ;;  %v2211_v31 = vadd.f32 %v6275_v33, %v2210_v60 }
 0x22e   : > { %v2850_v0 = vmax.f32 %v2216_v57, 0.0 }
 0x22f   : > { %v2849_v40 = vmax.f32 %v2211_v31, 0.0  ;;  %v4766_v7 = vpop.f32.mrb[162].mxu0  ;;  %5097 = vmatprep.subr.bf16.mxu1 %v5096_v24 }
 0x230   : > { %v2226_v9 = vadd.f32 %v6275_v33, %v4766_v7  ;;  %v2220_v38 = vpop.f32.mrb[163].mxu0  ;;  %5099 = vmatpush3.bf16.msra.mxu1 %v6235_v27 }
 0x231   : > { %v6299_v16 = vpack.c.bf16 %v2850_v0, %v2849_v40  ;;  %v2221_v62 = vadd.f32 %v6275_v33, %v2220_v38 }
 0x232   : > { %v2852_v55 = vmax.f32 %v2226_v9, 0.0 }
 0x233   : > { %v2851_v47 = vmax.f32 %v2221_v62, 0.0  ;;  %v4769_v58 = vpop.f32.mrb[164].mxu0  ;;  %3306 = vmatmul.mubr.f32.vlgmr.msra.gmra.mrb[74].mxu1 %v2953_v11 }
 0x234   : > { %v2236_v25 = vadd.f32 %v6275_v33, %v4769_v58  ;;  %v2230_v26 = vpop.f32.mrb[165].mxu0  ;;  %3375 = vmatprep.mubr.f32.mxu1 %v2956_v13 }
 0x235   : > { %v6306_v27 = vpack.c.bf16 %v2852_v55, %v2851_v47  ;;  %v2231_v30 = vadd.f32 %v6275_v33, %v2230_v26 }
 0x236   : > { %v2854_v52 = vmax.f32 %v2236_v25, 0.0 }
 0x237   : > { %v2853_v36 = vmax.f32 %v2231_v30, 0.0  ;;  %v4772_v20 = vpop.f32.mrb[166].mxu0 }
 0x238   : > { %v2246_v46 = vadd.f32 %v6275_v33, %v4772_v20  ;;  %v2240_v15 = vpop.f32.mrb[167].mxu0 }
 0x239   : > { %v6310_v63 = vpack.c.bf16 %v2854_v52, %v2853_v36  ;;  %v2241_v56 = vadd.f32 %v6275_v33, %v2240_v15 }
 0x23a   : > { %v2856_v54 = vmax.f32 %v2246_v46, 0.0 }
 0x23b   : > { %v2855_v50 = vmax.f32 %v2241_v56, 0.0  ;;  %v4775_v57 = vpop.f32.mrb[168].mxu0 }
 0x23c   : > { %v2256_v60 = vadd.f32 %v6275_v33, %v4775_v57  ;;  %v2250_v24 = vpop.f32.mrb[169].mxu0 }
 0x23d   : > { %v6314_v31 = vpack.c.bf16 %v2856_v54, %v2855_v50  ;;  %v2251_v0 = vadd.f32 %v6275_v33, %v2250_v24 }
 0x23e   : > { %v2858_v40 = vmax.f32 %v2256_v60, 0.0 }
 0x23f   : > { %v2857_v7 = vmax.f32 %v2251_v0, 0.0  ;;  %v4778_v9 = vpop.f32.mrb[170].mxu0 }
 0x240   : > { %v2266_v38 = vadd.f32 %v6275_v33, %v4778_v9  ;;  %v2260_v11 = vpop.f32.mrb[171].mxu0 }
 0x241   : > { %v6318_v62 = vpack.c.bf16 %v2858_v40, %v2857_v7  ;;  %v2261_v13 = vadd.f32 %v6275_v33, %v2260_v11 }
 0x242   : > { %v2860_v55 = vmax.f32 %v2266_v38, 0.0 }
 0x243   : > { %v2859_v47 = vmax.f32 %v2261_v13, 0.0  ;;  %v4781_v58 = vpop.f32.mrb[172].mxu0 }
 0x244   : > { %v2276_v25 = vadd.f32 %v6275_v33, %v4781_v58  ;;  %v2270_v26 = vpop.f32.mrb[173].mxu0 }
 0x245   : > { %v6322_v30 = vpack.c.bf16 %v2860_v55, %v2859_v47  ;;  %v2271_v52 = vadd.f32 %v6275_v33, %v2270_v26 }
 0x246   : > { %v2862_v36 = vmax.f32 %v2276_v25, 0.0  ;;  %v4283_v20 = vpop.f32.mrb[68].mxu1 }
 0x247   : > { %v2861_v46 = vmax.f32 %v2271_v52, 0.0  ;;  %v4784_v15 = vpop.f32.mrb[174].mxu0  ;;  %v4284_v56 = vpop.f32.mrb[69].mxu1 }
 0x248   : > { %v2286_v54 = vadd.f32 %v6275_v33, %v4784_v15  ;;  %v2280_v50 = vpop.f32.mrb[175].mxu0  ;;  %v4285_v57 = vadd.f32 %v4284_v56, %v4283_v20 }
 0x249   : > { %v6326_v60 = vpack.c.bf16 %v2862_v36, %v2861_v46  ;;  %v2281_v24 = vadd.f32 %v6275_v33, %v2280_v50 }
 0x24a   : > { %v2864_v0 = vmax.f32 %v2286_v54, 0.0  ;;  %v6330_v40 = vadd.f32 %v4285_v57, %v6284_v28 }
 0x24b   : > { %v2863_v7 = vmax.f32 %v2281_v24, 0.0  ;;  %v4787_v9 = vpop.f32.mrb[176].mxu0 }
 0x24c   : > { %v2296_v38 = vadd.f32 %v6275_v33, %v4787_v9  ;;  %v2290_v11 = vpop.f32.mrb[177].mxu0 }
 0x24d   : > { %v5130_v13 = vpack.c.bf16 %v2864_v0, %v2863_v7  ;;  %v2291_v55 = vadd.f32 %v6275_v33, %v2290_v11 }
 0x24e   : > { %v2866_v47 = vmax.f32 %v2296_v38, 0.0 }
 0x24f   : > { %v2865_v58 = vmax.f32 %v2291_v55, 0.0  ;;  %v4790_v25 = vpop.f32.mrb[178].mxu0 }
 0x250   : > { %v2306_v26 = vadd.f32 %v6275_v33, %v4790_v25  ;;  %v2300_v52 = vpop.f32.mrb[179].mxu0 }
 0x251   : > { %v5100_v36 = vpack.c.bf16 %v2866_v47, %v2865_v58  ;;  %v2301_v20 = vadd.f32 %v6275_v33, %v2300_v52 }
 0x252   : > { %v2868_v46 = vmax.f32 %v2306_v26, 0.0 }
 0x253   : > { %v2867_v28 = vmax.f32 %v2301_v20, 0.0  ;;  %v4793_v15 = vpop.f32.mrb[180].mxu0  ;;  %5101 = vmatprep.subr.bf16.mxu1 %v5100_v36 }
 0x254   : > { %v2316_v56 = vadd.f32 %v6275_v33, %v4793_v15  ;;  %v2310_v54 = vpop.f32.mrb[181].mxu0  ;;  %5103 = vmatpush3.bf16.msra.mxu1 %v6299_v16 }
 0x255   : > { %v5104_v50 = vpack.c.bf16 %v2868_v46, %v2867_v28  ;;  %v2311_v57 = vadd.f32 %v6275_v33, %v2310_v54 }
 0x256   : > { %v2870_v24 = vmax.f32 %v2316_v56, 0.0 }
 0x257   : > { %v2869_v0 = vmax.f32 %v2311_v57, 0.0  ;;  %v4796_v7 = vpop.f32.mrb[182].mxu0  ;;  %5105 = vmatprep.subr.bf16.mxu1 %v5104_v50 }
 0x258   : > { %v2326_v9 = vadd.f32 %v6275_v33, %v4796_v7  ;;  %v2320_v38 = vpop.f32.mrb[183].mxu0  ;;  %5107 = vmatpush3.bf16.msra.mxu1 %v6306_v27 }
 0x259   : > { %v5108_v11 = vpack.c.bf16 %v2870_v24, %v2869_v0  ;;  %v2321_v55 = vadd.f32 %v6275_v33, %v2320_v38 }
 0x25a   : > { %v2872_v47 = vmax.f32 %v2326_v9, 0.0 }
 0x25b   : > { %v2871_v58 = vmax.f32 %v2321_v55, 0.0  ;;  %v4799_v25 = vpop.f32.mrb[184].mxu0  ;;  %5109 = vmatprep.subr.bf16.mxu1 %v5108_v11  ;;  %v2955_v55 = vld [vmem:[%s6446_s3 + $0x50] sm:$0xff] }
 0x25c   : > { %v2336_v16 = vadd.f32 %v6275_v33, %v4799_v25  ;;  %v2330_v26 = vpop.f32.mrb[185].mxu0  ;;  %5111 = vmatpush3.bf16.msra.mxu1 %v6310_v63 }
 0x25d   : > { %v5112_v52 = vpack.c.bf16 %v2872_v47, %v2871_v58  ;;  %v2331_v36 = vadd.f32 %v6275_v33, %v2330_v26 }
 0x25e   : > { %v2874_v20 = vmax.f32 %v2336_v16, 0.0  ;;  %v3945_v16 = vld [vmem:[%s6448_s5] ss:$0 sm:$0xff] }
 0x25f   : > { %v2873_v46 = vmax.f32 %v2331_v36, 0.0  ;;  %v4802_v28 = vpop.f32.mrb[186].mxu0  ;;  %5113 = vmatprep.subr.bf16.mxu1 %v5112_v52  ;;  %v3947_v52 = vld [vmem:[%s6449_s6] ss:$0 sm:$0xff] }
 0x260   : > { %v2346_v27 = vadd.f32 %v6275_v33, %v4802_v28  ;;  %v2340_v15 = vpop.f32.mrb[187].mxu0  ;;  %5115 = vmatpush3.bf16.msra.mxu1 %v6314_v31 }
 0x261   : > { %v5116_v56 = vpack.c.bf16 %v2874_v20, %v2873_v46  ;;  %v2341_v54 = vadd.f32 %v6275_v33, %v2340_v15  ;;  %v3948_v46 = vld [vmem:[%s6450_s7] ss:$0 sm:$0xff] }
 0x262   : > { %v2876_v50 = vmax.f32 %v2346_v27, 0.0 }
 0x263   : > { %v2875_v57 = vmax.f32 %v2341_v54, 0.0  ;;  %v4805_v24 = vpop.f32.mrb[188].mxu0  ;;  %5117 = vmatprep.subr.bf16.mxu1 %v5116_v56 }
 0x264   : > { %v2356_v63 = vadd.f32 %v6275_v33, %v4805_v24  ;;  %v2350_v0 = vpop.f32.mrb[189].mxu0  ;;  %5119 = vmatpush3.bf16.msra.mxu1 %v6318_v62 }
 0x265   : > { %v5120_v7 = vpack.c.bf16 %v2876_v50, %v2875_v57  ;;  %v2351_v9 = vadd.f32 %v6275_v33, %v2350_v0  ;;  %v2958_v33 = vld [vmem:[%s6446_s3 + $0x68] sm:$0xff] }
 0x266   : > { %v2878_v38 = vmax.f32 %v2356_v63, 0.0 }
 0x267   : > { %v2877_v11 = vmax.f32 %v2351_v9, 0.0  ;;  %5121 = vmatprep.subr.bf16.mxu1 %v5120_v7 }
 0x268   : > { %5123 = vmatpush3.bf16.msra.mxu1 %v6322_v30 }
 0x269   : > { %v5124_v31 = vpack.c.bf16 %v2878_v38, %v2877_v11 }
 0x26b   : > { %5125 = vmatprep.subr.bf16.mxu1 %v5124_v31 }
 0x26c   : > { %5127 = vmatpush3.bf16.msra.mxu1 %v6326_v60 }
 0x26d   : > { %5129 = vmatprep.subr.bf16.mxu1 %v6029_v29 }
 0x270   : > { %5131 = vmatpush3.bf16.msra.mxu1 %v5130_v13 }
 0x271   : > { %5133 = vmatprep.subr.bf16.mxu1 %v6105_v3 }
 0x273   : > { %3376 = vmatmul.mubr.f32.vlgmr.msra.gmra.mrb[76].mxu1 %v2955_v55 }
 0x274   : > { %5135 = vmatpush3.bf16.msra.mxu1 %v6036_v5  ;;  %3445 = vmatprep.mubr.f32.mxu1 %v2958_v33 }
 0x275   : > { %5137 = vmatprep.subr.bf16.mxu1 %v6113_v22 }
 0x278   : > { %5139 = vmatpush3.bf16.msra.mxu1 %v6046_v53 }
 0x279   : > { %5141 = vmatprep.subr.bf16.mxu1 %v6120_v41  ;;  %v3521_v41 = vld [vmem:[%s6447_s4] sm:$0xff] }
 0x27c   : > { %5143 = vmatpush3.bf16.msra.mxu1 %v6057_v37  ;;  %v2957_v37 = vld [vmem:[%s6446_s3 + $0x60] sm:$0xff] }
 0x27d   : > { %5145 = vmatprep.subr.bf16.mxu1 %v6127_v61  ;;  %v3522_v61 = vld [vmem:[%s6447_s4 + $0x8] sm:$0xff] }
 0x280   : > { %5147 = vmatpush3.bf16.msra.mxu1 %v6065_v48  ;;  %v2960_v48 = vld [vmem:[%s6446_s3 + $0x78] sm:$0xff] }
 0x281   : > { %5149 = vmatprep.subr.bf16.mxu1 %v6134_v18  ;;  %v3523_v18 = vld [vmem:[%s6447_s4 + $0x10] sm:$0xff] }
 0x284   : > { %5151 = vmatpush3.bf16.msra.mxu1 %v6073_v2  ;;  %v2959_v2 = vld [vmem:[%s6446_s3 + $0x70] sm:$0xff] }
 0x285   : > { %5153 = vmatprep.subr.bf16.mxu1 %v6141_v34  ;;  %v5237_v34 = vmov 0.0|0.0  }
 0x286   : > { %v4318_v29 = vpop.f32.mrb[70].mxu1 }
 0x287   : > { %v4319_v5 = vpop.f32.mrb[71].mxu1 }
 0x288   : > { %5155 = vmatpush3.bf16.msra.mxu1 %v6081_v19  ;;  %v4320_v3 = vadd.f32 %v4319_v5, %v4318_v29 }
 0x289   : > { %5157 = vmatprep.subr.bf16.mxu1 %v6148_v23  ;;  %v5197_v23 = vpack.c.bf16 %v3522_v61, %v3521_v41 }
 0x28a   : > { %v3168_v53 = vadd.f32 %v4320_v3, %v6330_v40 }
 0x28c   : > { %5159 = vmatpush3.bf16.msra.mxu1 %v6089_v32 }
 0x28d   : > { %5161 = vmatprep.subr.bf16.mxu1 %v6155_v12  ;;  %v3524_v12 = vld [vmem:[%s6447_s4 + $0x18] sm:$0xff] }
 0x290   : > { %5163 = vmatpush3.bf16.msra.mxu1 %v6097_v17 }
 0x291   : > { %5165 = vmatprep.subr.bf16.mxu1 %v6231_v49 }
 0x293   : > { %3446 = vmatmul.mubr.f32.vlgmr.msra.gmra.mrb[78].mxu1 %v2957_v37 }
 0x294   : > { %5167 = vmatpush3.bf16.msra.mxu1 %v6164_v1  ;;  %3515 = vmatprep.mubr.f32.mxu1 %v2960_v48  ;;  %v5200_v1 = vpack.c.bf16 %v3524_v12, %v3523_v18 }
 0x295   : > { %5169 = vmatprep.subr.bf16.mxu1 %v6239_v43 }
 0x298   : > { %5171 = vmatpush3.bf16.msra.mxu1 %v6168_v14  ;;  %v3525_v14 = vld [vmem:[%s6447_s4 + $0x20] sm:$0xff] }
 0x299   : > { %5173 = vmatprep.subr.bf16.mxu1 %v6245_v21 }
 0x29c   : > { %5175 = vmatpush3.bf16.msra.mxu1 %v6183_v6  ;;  %v3526_v6 = vld [vmem:[%s6447_s4 + $0x28] sm:$0xff] }
 0x29d   : > { %5177 = vmatprep.subr.bf16.mxu1 %v6252_v42  ;;  %v5239_v42 = vmov 0.0  }
 0x2a0   : > { %5179 = vmatpush3.bf16.msra.mxu1 %v6191_v59  ;;  %v5203_v59 = vpack.c.bf16 %v3526_v6, %v3525_v14 }
 0x2a1   : > { %5181 = vmatprep.subr.bf16.mxu1 %v6259_v10 }
 0x2a4   : > { %5183 = vmatpush3.bf16.msra.mxu1 %v6199_v45 }
 0x2a5   : > { %5185 = vmatprep.subr.bf16.mxu1 %v6266_v39 }
 0x2a8   : > { %5187 = vmatpush3.bf16.msra.mxu1 %v6207_v35  ;;  %v3527_v35 = vld [vmem:[%s6447_s4 + $0x30] sm:$0xff] }
 0x2a9   : > { %5189 = vmatprep.subr.bf16.mxu1 %v6278_v44 }
 0x2ac   : > { %5191 = vmatpush3.bf16.msra.mxu1 %v6215_v4  ;;  %v3528_v4 = vld [vmem:[%s6447_s4 + $0x38] sm:$0xff] }
 0x2ad   : > { %5193 = vmatprep.subr.bf16.mxu1 %v6286_v8  ;;  %v5206_v49 = vpack.c.bf16 %v3528_v4, %v3527_v35 }
 0x2b0   : > { %5195 = vmatpush3.bf16.msra.mxu1 %v6223_v51 }
 0x2b1   : > { %5196 = vmatprep.subr.bf16.mxu1 %v5237_v34 }
 0x2b3   : > { %3516 = vmatmul.mubr.f32.vlgmr.msra.gmra.mrb[80].mxu1 %v2959_v2 }
 0x2b4   : > { %5198 = vmatpush3.bf16.msra.mxu1 %v5197_v23  ;;  %4921 = vmatprep.mubr.msk.f32.mxu1 %vm5238_vm1, %v5239_v42 }
 0x2b5   : > { %5199 = vmatprep.subr.bf16.mxu1 %v5237_v34 }
 0x2b8   : > { %5201 = vmatpush3.bf16.msra.mxu1 %v5200_v1 }
 0x2b9   : > { %5202 = vmatprep.subr.bf16.mxu1 %v5237_v34 }
 0x2bc   : > { %5204 = vmatpush3.bf16.msra.mxu1 %v5203_v59 }
 0x2bd   : > { %5205 = vmatprep.subr.bf16.mxu1 %v5237_v34 }
 0x2c0   : > { %5207 = vmatpush3.bf16.msra.mxu1 %v5206_v49 }
 0x2c6   : > { %v4353_v19 = vpop.f32.mrb[72].mxu1 }
 0x2c7   : > { %v4354_v32 = vpop.f32.mrb[73].mxu1 }
 0x2c8   : > { %v4355_v17 = vadd.f32 %v4354_v32, %v4353_v19 }
 0x2ca   : > { %v3238_v22 = vadd.f32 %v4355_v17, %v3168_v53 }
 0x306   : > { %v4388_v45 = vpop.f32.mrb[74].mxu1 }
 0x307   : > { %v4389_v51 = vpop.f32.mrb[75].mxu1 }
 0x308   : > { %v4390_v43 = vadd.f32 %v4389_v51, %v4388_v45 }
 0x30a   : > { %v3308_v21 = vadd.f32 %v4390_v43, %v3238_v22 }
 0x346   : > { %v4423_v10 = vpop.f32.mrb[76].mxu1 }
 0x347   : > { %v4424_v39 = vpop.f32.mrb[77].mxu1 }
 0x348   : > { %v4425_v44 = vadd.f32 %v4424_v39, %v4423_v10 }
 0x34a   : > { %v3378_v8 = vadd.f32 %v4425_v44, %v3308_v21 }
 0x366   : > { %v4458_v62 = vpop.f32.mrb[78].mxu1 }
 0x367   : > { %v4459_v30 = vpop.f32.mrb[79].mxu1 }
 0x368   : > { %v4460_v60 = vadd.f32 %v4459_v30, %v4458_v62 }
 0x36a   : > { %v3448_v40 = vadd.f32 %v4460_v60, %v3378_v8 }
 0x386   : > { %v4493_v13 = vpop.f32.mrb[80].mxu1 }
 0x387   : > { %v4494_v47 = vpop.f32.mrb[81].mxu1 }
 0x388   : > { %v4495_v58 = vadd.f32 %v4494_v47, %v4493_v13 }
 0x38a   : > { %v3518_v25 = vadd.f32 %v4495_v58, %v3448_v40 }
 0x38c   : > { %4922 = vmatmul.mubr.msk.f32.vlgmr.msra.gmra.mrb[82].mxu1 %vm575_vm0, %v3518_v25 }
 0x45f   : > { %v3605_v26 = vpop.f32.mrb[82].mxu1 }
 0x460   : > { %v3606_v36 = vadd.f32 %v3945_v16, %v3605_v26  ;;  %v4923_v20 = vpop.f32.mrb[83].mxu1 }
 0x462   : > { %v3616_v28 = vmul.f32 %v3947_v52, %v3606_v36 }
 0x464   : > { %v3624_v27 = vadd.f32 %v3948_v46, %v3616_v28 }
 0x466   : > { %3626 = vst.msk [vmem:[%s303_s10] sm:$0xff] %vm3625_vm2, %v3624_v27 }
 0x467 PF: > { %s18_s27 = sadd.s32 1, %s5235_s27  }
 0x468   : > { %p15_p4 = scmp.ge.s32.totalorder %s18_s27, 4  }
 0x46a   :  { %17 = sbr.rel (!%p15_p4) target bundleno = 1 (0x1), region = 82 }

// kernel: conv_lstm3_forward.3
= control target key start
LH: loop header
LB: loop body
LE: loop exit
PB: predicated region body
PF: predicated region fallthrough
CT: control target
= control target key end

     0   :  { %s5842_s0 = inlined_call_operand.vmem [shape: f32[2,8,32], index: 0, kind: input, shape index: {}]   ;;  %s5843_s1 = inlined_call_operand.vmem [shape: f32[32,1], index: 1, kind: input, shape index: {}]   ;;  %s5844_s2 = inlined_call_operand.<no memory space> [shape: f32[1,1], index: 2, kind: input, shape index: {}]   ;;  %s5845_s3 = inlined_call_operand.vmem [shape: f32[32,128], index: 3, kind: input, shape index: {}]   ;;  %s5846_s4 = inlined_call_operand.vmem [shape: f32[32,128], index: 4, kind: input, shape index: {}]   ;;  %s5847_s5 = inlined_call_operand.vmem [shape: f32[1,128], index: 5, kind: input, shape index: {}]   ;;  %s5848_s6 = inlined_call_operand.vmem [shape: f32[32,128], index: 6, kind: input, shape index: {}]   ;;  %s5849_s7 = inlined_call_operand.vmem [shape: f32[32,128], index: 7, kind: input, shape index: {}]   ;;  %s5850_s8 = inlined_call_operand.vmem [shape: f32[1,128], index: 8, kind: input, shape index: {}]   ;;  %s5851_s9 = inlined_call_operand.vmem [shape: f32[64,1], index: 9, kind: input, shape index: {}]   ;;  %s5852_s11 = inlined_call_operand.vmem [shape: f32[64,32], index: 11, kind: input, shape index: {}]   ;;  %s5853_s12 = inlined_call_operand.vmem [shape: f32[1,32], index: 12, kind: input, shape index: {}]   ;;  %s5854_s13 = inlined_call_operand.vmem [shape: f32[1,32], index: 13, kind: input, shape index: {}]   ;;  %s5855_s14 = inlined_call_operand.vmem [shape: f32[1,32], index: 14, kind: input, shape index: {}]   ;;  %s5856_s15 = inlined_call_operand.vmem [shape: f32[32,10], index: 15, kind: input, shape index: {}]   ;;  %s5857_s16 = inlined_call_operand.vmem [shape: f32[1,10], index: 16, kind: input, shape index: {}]   ;;  %s5858_s17 = inlined_call_operand.hbm [shape: f32[2,10], index: 17, kind: output, shape index: {}]   ;;  %s5859_s10 = inlined_call_operand.<no memory space> [shape: f32[1,1], index: 10, kind: input, shape index: {}]  }
   0x1   :  { %5862 = sst [smem:[#allocation7_spill]] %s5842_s0  ;;  %v22_v0 = vstv %s5844_s2  ;;  %v24_v1 = vstv %s5859_s10 }
   0x2   :  { %5863 = sst [smem:[#allocation8_spill]] %s5843_s1  ;;  %23 = vst [vmem:[#allocation2] sm:$0x1] %v22_v0  ;;  %25 = vst [vmem:[#allocation3] sm:$0x1] %v24_v1 }
   0x3   :  { %s5864_s0 = sld [smem:[#allocation8_spill]]  ;;  %vm67_vm0 = vcmask 261120   ;;  %s5865_s22 = sld [smem:[#allocation7_spill]]  ;;  %v4885_v8 = vmov 0  }
   0x4   :  { %4581 = vset.pattern.permute.xlu0 %v4885_v8  ;;  %4582 = vset.pattern.permute.xlu1 %v4885_v8 }
   0x9   :  { %v63_v2 = vld [vmem:[%s5864_s0] sm:$0xff]  ;;  %v64_v3 = vld [vmem:[%s5864_s0 + $0x8] sm:$0xff]  ;;  %v65_v4 = vld [vmem:[%s5864_s0 + $0x10] sm:$0xff] }
   0xa   :  { %v4326_v5 = vpack.c.bf16 %v64_v3, %v63_v2  ;;  %v66_v6 = vld [vmem:[%s5864_s0 + $0x18] sm:$0xff]  ;;  %v5017_v7 = vld [vmem:[%s5865_s22] sm:$0xff] }
   0xb   :  { %v4330_v9 = vpack.c.bf16 %v66_v6, %v65_v4  ;;  %3943 = vmatprep.mubr.msk.f32.mxu0 %vm67_vm0, %v5017_v7  ;;  %v3683_v10 = vld [vmem:[#allocation2] ss:$0 sm:$0xff] }
   0xc   :  { %26 = vsyncpa [#allocation5], 0  ;;  %4327 = vmatprep.subr.bf16.mxu0 %v4326_v5  ;;  %156 = vperm.xlu0 %4581, %v3683_v10   ;;  %v5024_v11 = vld [vmem:[%s5865_s22 + $0x8] sm:$0xff]  ;;  %v169_v17 = vlaneseq  ;;  %vm179_vm1 = vcmask 1041409   ;;  %vm182_vm2 = vcmask 58368   ;;  %v250_v44 = vld [vmem:[%s5845_s3] sm:$0xff] }
   0xd   :  { %4329 = vmatpush3.bf16.msra.mxu0 %v4326_v5  ;;  %v251_v45 = vld [vmem:[%s5845_s3 + $0x8] sm:$0xff]  ;;  %v342_v46 = vld [vmem:[%s5848_s6] sm:$0xff]  ;;  %v252_v49 = vld [vmem:[%s5845_s3 + $0x10] sm:$0xff]  ;;  %v4886_v62 = vmov 0.0|0.0   ;;  %vm4887_vm3 = vmmov 0   ;;  %vm2712_vm4 = vcmask 1047559  }
   0xe   :  { %4331 = vmatprep.subr.bf16.mxu0 %v4330_v9  ;;  %v170_v18 = vand.u32 127, %v169_v17  ;;  %v172_v19 = vshrl.u32 %v169_v17, 7  ;;  %v4334_v47 = vpack.c.bf16 %v251_v45, %v250_v44  ;;  %v343_v48 = vld [vmem:[%s5848_s6 + $0x8] sm:$0xff]  ;;  %v253_v50 = vld [vmem:[%s5845_s3 + $0x18] sm:$0xff]  ;;  %v344_v53 = vld [vmem:[%s5848_s6 + $0x10] sm:$0xff]  ;;  %vm2652_vm5 = vcmask 1042434  }
   0xf   :  { %v4342_v51 = vpack.c.bf16 %v343_v48, %v342_v46  ;;  %v4338_v52 = vpack.c.bf16 %v253_v50, %v252_v49  ;;  %v345_v54 = vld [vmem:[%s5848_s6 + $0x18] sm:$0xff]  ;;  %v428_v63 = vld [vmem:[%s5846_s4] sm:$0xff]  ;;  %v429_v0 = vld [vmem:[%s5846_s4 + $0x8] sm:$0xff]  ;;  %vm2700_vm6 = vcmask 1046534   ;;  %vm2664_vm7 = vcmask 1043459   ;;  %s4892_s10 = smov 3  }
  0x10   :  { %v173_v20 = vsub.s32 %v170_v18, %v172_v19  ;;  %v189_v27 = vsub.s32 0, %v172_v19  ;;  %v193_v28 = vsub.s32 1, %v172_v19  ;;  %4335 = vmatprep.subr.bf16.mxu1 %v4334_v47  ;;  %v4346_v55 = vpack.c.bf16 %v345_v54, %v344_v53  ;;  %v559_v1 = vld [vmem:[%s5849_s7] sm:$0xff]  ;;  %v560_v2 = vld [vmem:[%s5849_s7 + $0x8] sm:$0xff]  ;;  %v430_v10 = vld [vmem:[%s5846_s4 + $0x10] sm:$0xff]  ;;  %s4895_s21 = smov 4  }
  0x11   :  { %4333 = vmatpush3.bf16.msra.mxu0 %v4330_v9  ;;  %4337 = vmatpush3.bf16.msra.mxu1 %v4334_v47  ;;  %v5072_v8 = vpack.c.bf16 %v429_v0, %v428_v63  ;;  %v5074_v9 = vpack.c.bf16 %v560_v2, %v559_v1  ;;  %vm2688_vm8 = vcmask 1045509   ;;  %vm2676_vm9 = vcmask 1044484   ;;  %s4896_s22 = smov 7  }
  0x12   :  { %4343 = vmatprep.subr.bf16.mxu0 %v4342_v51  ;;  %4339 = vmatprep.subr.bf16.mxu1 %v4338_v52  ;;  %vm2749_vm10 = vcmask 523264   ;;  %vm3269_vm11 = vcmask 1040384   ;;  %vm3373_vm12 = vcmask 7168   ;;  %vm3375_vm13 = vcmask 15360  }
  0x13   :  { %vm3377_vm14 = vcmask 23552   ;;  %vm3379_vm15 = vcmask 31744  }
  0x14   :  { %3944 = vmatmul.mubr.msk.f32.vlgmr.msra.gmra.mrb[0].mxu0 %vm67_vm0, %v5024_v11 }
  0x15   :  { %4345 = vmatpush3.bf16.msra.mxu0 %v4342_v51  ;;  %4341 = vmatpush3.bf16.msra.mxu1 %v4338_v52 }
  0x16   :  { %4347 = vmatprep.subr.bf16.mxu0 %v4346_v55  ;;  %4350 = vmatprep.subr.bf16.mxu1 %v4886_v62 }
  0x19   :  { %4349 = vmatpush3.bf16.msra.mxu0 %v4346_v55 }
  0x1a   :  { %4356 = vmatprep.subr.bf16.mxu0 %v4886_v62 }
  0x8b   :  { %v157_v12 = vpop.permute.xlu0 %156 }
  0xe7   :  { %v3945_v13 = vpop.f32.mrb[0].mxu0 }
  0xe8   :  { %v160_v14 = vadd.f32 %v3945_v13, %v157_v12  ;;  %v140_v15 = vpop.f32.mrb[1].mxu0  ;;  %v561_v13 = vld [vmem:[%s5849_s7 + $0x10] sm:$0xff] }
  0xe9   :  { %v159_v16 = vadd.f32 %v157_v12, %v140_v15  ;;  %v431_v12 = vld [vmem:[%s5846_s4 + $0x18] sm:$0xff]  ;;  %v4888_v15 = vmov 0.0   ;;  %s4893_s4 = smov 2  }
  0xea   :  { %167 = vperm.xlu1 %4582, %v160_v14  }
  0xeb   :  { %164 = vperm.xlu0 %4581, %v159_v16  }
 0x169   :  { %v168_v21 = vpop.permute.xlu1 %167 }
 0x16a   :  { %v178_v22 = vrot.slane %v168_v21, %v173_v20  ;;  %v165_v23 = vpop.permute.xlu0 %164 }
 0x16b   :  { %v174_v24 = vrot.slane %v165_v23, %v173_v20 }
 0x16d   :  { %v180_v25 = vsel %vm179_vm1, %v178_v22, %v174_v24  ;;  %v3687_v24 = vld [vmem:[%s5850_s8] ss:$0 sm:$0xff]  ;;  %s4890_s8 = smov 32  }
 0x16e   :  { %v183_v26 = vsel %vm182_vm2, %v180_v25, -inf }
 0x16f   :  { %184 = vmax.xlane.f32.xlu1 %v183_v26 }
 0x1fc   :  { %v185_v29 = vpop.xlane.xlu1 %184 }
 0x1fd   :  { %v190_v30 = vrot.slane %v185_v29, %v189_v27  ;;  %v194_v31 = vrot.slane %v185_v29, %v193_v28 }
 0x1ff   :  { %v197_v32 = vsub.f32 %v159_v16, %v190_v30  ;;  %v198_v33 = vsub.f32 %v160_v14, %v194_v31 }
 0x201   :  { %v199_v34 = vmul.f32 1.442695, %v197_v32  ;;  %v201_v35 = vmul.f32 1.442695, %v198_v33 }
 0x203   :  { %4591 = vpow2.f32 %v199_v34 }
 0x204   :  { %4593 = vpow2.f32 %v201_v35 }
 0x20d   :  { %v4592_v36 = vpop.eup %4591 }
 0x20e   :  { %206 = vperm.xlu0 %4581, %v4592_v36   ;;  %v4594_v37 = vpop.eup %4593 }
 0x212   :  { %209 = vperm.xlu0 %4581, %v4594_v37  }
 0x28d   :  { %v207_v38 = vpop.permute.xlu0 %206 }
 0x28e   :  { %v214_v40 = vrot.slane %v207_v38, %v173_v20 }
 0x291   :  { %v210_v39 = vpop.permute.xlu0 %209 }
 0x292   :  { %v218_v41 = vrot.slane %v210_v39, %v173_v20  ;;  %v3684_v20 = vld [vmem:[%s5847_s5] ss:$0 sm:$0xff]  ;;  %s4889_s5 = smov 64  }
 0x294   :  { %v219_v42 = vsel %vm179_vm1, %v218_v41, %v214_v40 }
 0x295   :  { %v221_v43 = vsel %vm182_vm2, %v219_v42, 0.0 }
 0x296   :  { %222 = vadd.xlane.f32.xlu0 %v221_v43 }
 0x323   :  { %v223_v56 = vpop.xlane.xlu0 %222 }
 0x324   :  { %4595 = vrcp.f32 %v223_v56 }
 0x32e   :  { %v4596_v57 = vpop.eup %4595 }
 0x32f   :  { %v233_v58 = vrot.slane %v4596_v57, %v193_v28  ;;  %v229_v59 = vrot.slane %v4596_v57, %v189_v27 }
 0x331   :  { %v237_v60 = vmul.f32 %v4594_v37, %v233_v58  ;;  %v236_v61 = vmul.f32 %v4592_v36, %v229_v59 }
 0x333   :  { %245 = vperm.xlu0 %4581, %v237_v60   ;;  %240 = vperm.xlu1 %4582, %v236_v61  }
 0x3b2   :  { %v246_v3 = vpop.permute.xlu0 %245  ;;  %v241_v4 = vpop.permute.xlu1 %240 }
 0x3b3   :  { %v249_v5 = vmul.f32 %v246_v3, %v5024_v11  ;;  %v248_v6 = vmul.f32 %v241_v4, %v5017_v7  ;;  %v562_v7 = vld [vmem:[%s5849_s7 + $0x18] sm:$0xff]  ;;  %v5094_v11 = vpack.c.bf16 %v431_v12, %v430_v10  ;;  %s4894_s7 = smov 5  }
 0x3b4   :  { %v5096_v14 = vpack.c.bf16 %v562_v7, %v561_v13 }
 0x3b5   :  { %3954 = vmatprep.mubr.msk.f32.mxu1 %vm67_vm0, %v248_v6  ;;  %3965 = vmatprep.mubr.msk.f32.mxu0 %vm67_vm0, %v248_v6 }
 0x3b6   :  { %3955 = vmatmul.mubr.msk.f32.vlgmr.msra.gmra.mrb[0].mxu1 %vm67_vm0, %v249_v5  ;;  %3966 = vmatmul.mubr.msk.f32.vlgmr.msra.gmra.mrb[2].mxu0 %vm67_vm0, %v249_v5 }
 0x3b7   :  { %4352 = vmatpush3.bf16.msra.mxu1 %v5072_v8  ;;  %4358 = vmatpush3.bf16.msra.mxu0 %v5074_v9 }
 0x3b8   :  { %4353 = vmatprep.subr.bf16.mxu1 %v4886_v62  ;;  %4359 = vmatprep.subr.bf16.mxu0 %v4886_v62 }
 0x3b9   :  { %3976 = vmatprep.mubr.msk.f32.mxu1 %vm4887_vm3, %v4888_v15  ;;  %3987 = vmatprep.mubr.msk.f32.mxu0 %vm4887_vm3, %v4888_v15 }
 0x3bb   :  { %4355 = vmatpush3.bf16.msra.mxu1 %v5094_v11  ;;  %4361 = vmatpush3.bf16.msra.mxu0 %v5096_v14 }
 0x3bc   :  { %4368 = vmatprep.subr.bf16.mxu0 %v4886_v62  ;;  %4362 = vmatprep.subr.bf16.mxu1 %v4886_v62 }
 0x3be   :  { %3977 = vmatmul.mubr.f32.vlgmr.msra.gmra.mrb[2].mxu1 %v4888_v15  ;;  %3988 = vmatmul.mubr.f32.vlgmr.msra.gmra.mrb[4].mxu0 %v4888_v15 }
 0x3bf   :  { %4370 = vmatpush3.bf16.msra.mxu0 %v5074_v9  ;;  %4364 = vmatpush3.bf16.msra.mxu1 %v5072_v8 }
 0x3c0   :  { %4371 = vmatprep.subr.bf16.mxu0 %v4886_v62  ;;  %4009 = vmatprep.mubr.msk.f32.mxu0 %vm4887_vm3, %v4888_v15 }
 0x3c1   :  { %4365 = vmatprep.subr.bf16.mxu1 %v4886_v62  ;;  %3998 = vmatprep.mubr.msk.f32.mxu1 %vm4887_vm3, %v4888_v15 }
 0x3c3   :  { %4373 = vmatpush3.bf16.msra.mxu0 %v5096_v14  ;;  %4367 = vmatpush3.bf16.msra.mxu1 %v5094_v11 }
 0x3c4   :  { %4380 = vmatprep.subr.bf16.mxu0 %v4886_v62  ;;  %4374 = vmatprep.subr.bf16.mxu1 %v4886_v62 }
 0x489   :  { %v3956_v16 = vpop.f32.mrb[0].mxu1  ;;  %v3967_v17 = vpop.f32.mrb[2].mxu0 }
 0x48a   :  { %v333_v18 = vpop.f32.mrb[1].mxu1  ;;  %v419_v19 = vpop.f32.mrb[3].mxu0  ;;  %v5134_v32 = vadd.f32 %v3967_v17, %v3687_v24  ;;  %v5137_v35 = vadd.f32 %v3956_v16, %v3684_v20 }
 0x48b   :  { %v5125_v21 = vadd.f32 %v3684_v20, %v333_v18  ;;  %v5131_v29 = vadd.f32 %v3687_v24, %v419_v19 }
 0x491   :  { %v501_v22 = vpop.f32.mrb[2].mxu1  ;;  %v629_v23 = vpop.f32.mrb[4].mxu0 }
 0x492   :  { %v509_v25 = vadd.f32 %v501_v22, %v5125_v21  ;;  %v3989_v26 = vpop.f32.mrb[5].mxu0  ;;  %v3978_v27 = vpop.f32.mrb[3].mxu1  ;;  %v634_v28 = vrot.slane %v629_v23, 1  ;;  %v635_v30 = vrot.slane %v629_v23, 2  ;;  %v506_v33 = vrot.slane %v501_v22, 1 }
 0x494   :  { %4597 = vtanh.f32 %v509_v25  ;;  %v638_v31 = vadd.f32 %v634_v28, %v5131_v29  ;;  %v639_v34 = vadd.f32 %v635_v30, %v5134_v32  ;;  %v510_v37 = vadd.f32 %v506_v33, %v5137_v35 }
 0x495   :  { %v3690_v43 = vmul.f32 -1.442695, %v509_v25 }
 0x496   :  { %4599 = vtanh.f32 %v638_v31  ;;  %v3692_v41 = vmul.f32 -1.442695, %v638_v31  ;;  %v3693_v42 = vmul.f32 -1.442695, %v639_v34  ;;  %v3691_v44 = vmul.f32 -1.442695, %v510_v37 }
 0x497   :  { %4601 = vtanh.f32 %v639_v34 }
 0x498   :  { %4603 = vtanh.f32 %v510_v37 }
 0x499   :  { %4605 = vpow2.f32 %v3692_v41 }
 0x49a   :  { %4607 = vpow2.f32 %v3693_v42 }
 0x49b   :  { %4609 = vpow2.f32 %v3690_v43 }
 0x49c   :  { %4611 = vpow2.f32 %v3691_v44 }
 0x49e   :  { %v4598_v36 = vpop.eup %4597 }
 0x49f   :  { %529 = vrot.lane.b32.xlu0 %v4598_v36, %s4889_s5 }
 0x4a0   :  { %v4600_v38 = vpop.eup %4599 }
 0x4a1   :  { %658 = vrot.lane.b32.xlu1 %v4600_v38, %s4889_s5  ;;  %v4602_v39 = vpop.eup %4601 }
 0x4a2   :  { %v4604_v40 = vpop.eup %4603 }
 0x4a3   :  { %v4606_v45 = vpop.eup %4605 }
 0x4a4   :  { %v646_v46 = vadd.f32 1.0, %v4606_v45  ;;  %v4608_v47 = vpop.eup %4607 }
 0x4a5   :  { %660 = vrot.lane.b32.xlu1 %v4602_v39, %s4889_s5  ;;  %v4610_v48 = vpop.eup %4609  ;;  %v647_v49 = vadd.f32 1.0, %v4608_v47 }
 0x4a6   :  { %4613 = vrcp.f32 %v646_v46  ;;  %v4612_v50 = vpop.eup %4611  ;;  %v517_v51 = vadd.f32 1.0, %v4610_v48 }
 0x4a7   :  { %v518_v52 = vadd.f32 1.0, %v4612_v50  ;;  %4615 = vrcp.f32 %v647_v49 }
 0x4a8   :  { %4617 = vrcp.f32 %v517_v51 }
 0x4a9   :  { %531 = vrot.lane.b32.xlu1 %v4604_v40, %s4889_s5  ;;  %4619 = vrcp.f32 %v518_v52 }
 0x4b0   :  { %v4614_v53 = vpop.eup %4613 }
 0x4b1   :  { %v4616_v56 = vpop.eup %4615  ;;  %v654_v2 = vmul.f32 0.0, %v4614_v53 }
 0x4b2   :  { %v4618_v60 = vpop.eup %4617  ;;  %v655_v5 = vmul.f32 0.0, %v4616_v56 }
 0x4b3   :  { %v4620_v61 = vpop.eup %4619  ;;  %v525_v13 = vmul.f32 0.0, %v4618_v60 }
 0x4b4   :  { %v526_v12 = vmul.f32 0.0, %v4620_v61 }
 0x511   :  { %v530_v59 = vpop.permute.xlu0 %529 }
 0x512   :  { %v535_v0 = vmul.f32 %v4618_v60, %v530_v59 }
 0x513   :  { %v659_v54 = vpop.permute.xlu1 %658 }
 0x514   :  { %v664_v55 = vmul.f32 %v4614_v53, %v659_v54 }
 0x516   :  { %668 = vrot.lane.b32.xlu1 %v664_v55, %s4890_s8 }
 0x517   :  { %v661_v57 = vpop.permute.xlu1 %660 }
 0x518   :  { %v665_v58 = vmul.f32 %v4616_v56, %v661_v57 }
 0x51a   :  { %670 = vrot.lane.b32.xlu0 %v665_v58, %s4890_s8 }
 0x51b   :  { %v532_v63 = vpop.permute.xlu1 %531 }
 0x51c   :  { %v536_v1 = vmul.f32 %v4620_v61, %v532_v63 }
 0x51e   :  { %541 = vrot.lane.b32.xlu1 %v536_v1, %s4890_s8  ;;  %539 = vrot.lane.b32.xlu0 %v535_v0, %s4890_s8 }
 0x588   :  { %v669_v3 = vpop.permute.xlu1 %668 }
 0x589   :  { %v5148_v4 = vadd.f32 %v669_v3, %v654_v2 }
 0x58b   :  { %4621 = vtanh.f32 %v5148_v4 }
 0x58c   :  { %v671_v6 = vpop.permute.xlu0 %670 }
 0x58d   :  { %v5151_v10 = vadd.f32 %v671_v6, %v655_v5 }
 0x58f   :  { %4623 = vtanh.f32 %v5151_v10 }
 0x590   :  { %v542_v7 = vpop.permute.xlu1 %541  ;;  %v540_v16 = vpop.permute.xlu0 %539 }
 0x591   :  { %v5154_v17 = vadd.f32 %v542_v7, %v526_v12  ;;  %v5156_v18 = vadd.f32 %v540_v16, %v525_v13 }
 0x593   :  { %4625 = vtanh.f32 %v5154_v17 }
 0x594   :  { %4627 = vtanh.f32 %v5156_v18 }
 0x595   :  { %v4622_v19 = vpop.eup %4621 }
 0x596   :  { %680 = vrot.lane.b32.xlu1 %v4622_v19, %s4889_s5 }
 0x599   :  { %v4624_v20 = vpop.eup %4623 }
 0x59a   :  { %682 = vrot.lane.b32.xlu0 %v4624_v20, %s4889_s5 }
 0x59d   :  { %v4626_v22 = vpop.eup %4625 }
 0x59e   :  { %v4628_v23 = vpop.eup %4627  ;;  %553 = vrot.lane.b32.xlu1 %v4626_v22, %s4889_s5 }
 0x59f   :  { %551 = vrot.lane.b32.xlu0 %v4628_v23, %s4889_s5 }
 0x608   :  { %v681_v24 = vpop.permute.xlu1 %680 }
 0x609   :  { %v5164_v25 = vmul.f32 %v4614_v53, %v681_v24 }
 0x60b   :  { %v828_v28 = vrot.slane %v5164_v25, 7 }
 0x60c   :  { %v683_v26 = vpop.permute.xlu0 %682 }
 0x60d   :  { %v5166_v27 = vmul.f32 %v4616_v56, %v683_v26 }
 0x60f   :  { %v829_v30 = vrot.slane %v5166_v27, 6 }
 0x610   :  { %v554_v31 = vpop.permute.xlu1 %553 }
 0x611   :  { %v558_v33 = vmul.f32 %v4620_v61, %v554_v31  ;;  %v552_v34 = vpop.permute.xlu0 %551  ;;  %v830_v36 = vsel %vm179_vm1, %v829_v30, %v828_v28  ;;  %v928_v31 = vrot.slane %v5148_v4, 1 }
 0x612   :  { %831 = vrot.lane.b32.xlu1 %v830_v36, %s4890_s8  ;;  %v557_v38 = vmul.f32 %v4618_v60, %v552_v34 }
 0x613   :  { %v690_v37 = vrot.slane %v558_v33, 7  ;;  %v929_v33 = vrot.slane %v5151_v10, 1 }
 0x615   :  { %v691_v39 = vsel %vm179_vm1, %v690_v37, %v557_v38  ;;  %v788_v38 = vrot.slane %v5156_v18, 7 }
 0x616   :  { %692 = vrot.lane.b32.xlu0 %v691_v39, %s4890_s8 }
 0x684   :  { %v832_v40 = vpop.permute.xlu1 %831 }
 0x685   :  { %4010 = vmatmul.mubr.msk.f32.vlgmr.msra.gmra.mrb[6].mxu0 %vm67_vm0, %v832_v40 }
 0x686   :  { %4382 = vmatpush3.bf16.msra.mxu0 %v5074_v9  ;;  %4031 = vmatprep.mubr.msk.f32.mxu0 %vm4887_vm3, %v4888_v15 }
 0x687   :  { %4383 = vmatprep.subr.bf16.mxu0 %v4886_v62 }
 0x688   :  { %v5179_v41 = vpop.permute.xlu0 %692 }
 0x689   :  { %3999 = vmatmul.mubr.msk.f32.vlgmr.msra.gmra.mrb[4].mxu1 %vm67_vm0, %v5179_v41 }
 0x68a   :  { %4376 = vmatpush3.bf16.msra.mxu1 %v5072_v8  ;;  %4385 = vmatpush3.bf16.msra.mxu0 %v5096_v14 }
 0x68b   :  { %4377 = vmatprep.subr.bf16.mxu1 %v4886_v62  ;;  %4020 = vmatprep.mubr.msk.f32.mxu1 %vm4887_vm3, %v4888_v15 }
 0x68c   :  { %4392 = vmatprep.subr.bf16.mxu0 %v4886_v62 }
 0x68e   :  { %4379 = vmatpush3.bf16.msra.mxu1 %v5094_v11 }
 0x68f   :  { %4386 = vmatprep.subr.bf16.mxu1 %v4886_v62 }
 0x758   :  { %v901_v42 = vpop.f32.mrb[6].mxu0 }
 0x759   :  { %v906_v43 = vrot.slane %v901_v42, 2  ;;  %v907_v44 = vrot.slane %v901_v42, 3  ;;  %v4011_v45 = vpop.f32.mrb[7].mxu0 }
 0x75b   :  { %v910_v46 = vadd.f32 %v906_v43, %v5131_v29  ;;  %v911_v47 = vadd.f32 %v907_v44, %v5134_v32  ;;  %v789_v44 = vrot.slane %v5154_v17, 7 }
 0x75c   :  { %v762_v48 = vpop.f32.mrb[4].mxu1 }
 0x75d   :  { %4629 = vtanh.f32 %v910_v46  ;;  %v767_v49 = vrot.slane %v762_v48, 7  ;;  %v4000_v50 = vpop.f32.mrb[5].mxu1  ;;  %v771_v52 = vadd.f32 %v762_v48, %v5137_v35  ;;  %v3698_v57 = vmul.f32 -1.442695, %v910_v46 }
 0x75e   :  { %4631 = vtanh.f32 %v911_v47  ;;  %v3699_v58 = vmul.f32 -1.442695, %v911_v47 }
 0x75f   :  { %v770_v51 = vadd.f32 %v767_v49, %v5125_v21  ;;  %v3696_v60 = vmul.f32 -1.442695, %v771_v52 }
 0x761   :  { %4633 = vtanh.f32 %v770_v51  ;;  %v3695_v59 = vmul.f32 -1.442695, %v770_v51 }
 0x762   :  { %4635 = vtanh.f32 %v771_v52 }
 0x763   :  { %4637 = vpow2.f32 %v3698_v57 }
 0x764   :  { %4639 = vpow2.f32 %v3699_v58 }
 0x765   :  { %4641 = vpow2.f32 %v3695_v59 }
 0x766   :  { %4643 = vpow2.f32 %v3696_v60 }
 0x767   :  { %v4630_v53 = vpop.eup %4629 }
 0x768   :  { %v4632_v54 = vpop.eup %4631  ;;  %936 = vrot.lane.b32.xlu1 %v4630_v53, %s4889_s5 }
 0x769   :  { %938 = vrot.lane.b32.xlu0 %v4632_v54, %s4889_s5 }
 0x76b   :  { %v4634_v55 = vpop.eup %4633 }
 0x76c   :  { %796 = vrot.lane.b32.xlu1 %v4634_v55, %s4889_s5  ;;  %v4636_v56 = vpop.eup %4635 }
 0x76d   :  { %798 = vrot.lane.b32.xlu0 %v4636_v56, %s4889_s5  ;;  %v4638_v61 = vpop.eup %4637 }
 0x76e   :  { %v4640_v63 = vpop.eup %4639  ;;  %v918_v0 = vadd.f32 1.0, %v4638_v61 }
 0x76f   :  { %v4642_v1 = vpop.eup %4641  ;;  %v919_v2 = vadd.f32 1.0, %v4640_v63 }
 0x770   :  { %v4644_v3 = vpop.eup %4643  ;;  %4645 = vrcp.f32 %v918_v0  ;;  %v778_v5 = vadd.f32 1.0, %v4642_v1 }
 0x771   :  { %4647 = vrcp.f32 %v919_v2  ;;  %v779_v6 = vadd.f32 1.0, %v4644_v3 }
 0x772   :  { %4649 = vrcp.f32 %v778_v5 }
 0x773   :  { %4651 = vrcp.f32 %v779_v6 }
 0x77a   :  { %v4646_v12 = vpop.eup %4645 }
 0x77b   :  { %v4648_v7 = vpop.eup %4647  ;;  %v932_v34 = vmul.f32 %v4646_v12, %v928_v31 }
 0x77c   :  { %v4650_v22 = vpop.eup %4649  ;;  %v933_v37 = vmul.f32 %v4648_v7, %v929_v33 }
 0x77d   :  { %v4652_v26 = vpop.eup %4651  ;;  %v792_v43 = vmul.f32 %v4650_v22, %v788_v38 }
 0x77e   :  { %v793_v10 = vmul.f32 %v4652_v26, %v789_v44 }
 0x7da   :  { %v937_v13 = vpop.permute.xlu1 %936 }
 0x7db   :  { %v942_v16 = vmul.f32 %v4646_v12, %v937_v13  ;;  %v939_v19 = vpop.permute.xlu0 %938 }
 0x7dc   :  { %v943_v20 = vmul.f32 %v4648_v7, %v939_v19 }
 0x7dd   :  { %946 = vrot.lane.b32.xlu1 %v942_v16, %s4890_s8 }
 0x7de   :  { %948 = vrot.lane.b32.xlu0 %v943_v20, %s4890_s8  ;;  %v797_v23 = vpop.permute.xlu1 %796 }
 0x7df   :  { %v802_v24 = vmul.f32 %v4650_v22, %v797_v23  ;;  %v799_v28 = vpop.permute.xlu0 %798 }
 0x7e0   :  { %v803_v30 = vmul.f32 %v4652_v26, %v799_v28 }
 0x7e1   :  { %806 = vrot.lane.b32.xlu1 %v802_v24, %s4890_s8 }
 0x7e2   :  { %808 = vrot.lane.b32.xlu0 %v803_v30, %s4890_s8 }
 0x84f   :  { %v947_v36 = vpop.permute.xlu1 %946 }
 0x850   :  { %v5206_v39 = vadd.f32 %v947_v36, %v932_v34  ;;  %v949_v40 = vpop.permute.xlu0 %948 }
 0x851   :  { %v5208_v42 = vadd.f32 %v949_v40, %v933_v37 }
 0x852   :  { %4653 = vtanh.f32 %v5206_v39 }
 0x853   :  { %4655 = vtanh.f32 %v5208_v42  ;;  %v807_v4 = vpop.permute.xlu1 %806 }
 0x854   :  { %v5213_v45 = vadd.f32 %v807_v4, %v792_v43  ;;  %v809_v46 = vpop.permute.xlu0 %808 }
 0x855   :  { %v5216_v18 = vadd.f32 %v809_v46, %v793_v10 }
 0x856   :  { %4657 = vtanh.f32 %v5213_v45 }
 0x857   :  { %4659 = vtanh.f32 %v5216_v18 }
 0x85c   :  { %v4654_v47 = vpop.eup %4653 }
 0x85d   :  { %v4656_v48 = vpop.eup %4655  ;;  %958 = vrot.lane.b32.xlu1 %v4654_v47, %s4889_s5 }
 0x85e   :  { %960 = vrot.lane.b32.xlu0 %v4656_v48, %s4889_s5 }
 0x860   :  { %v4658_v17 = vpop.eup %4657 }
 0x861   :  { %818 = vrot.lane.b32.xlu1 %v4658_v17, %s4889_s5  ;;  %v4660_v49 = vpop.eup %4659 }
 0x862   :  { %820 = vrot.lane.b32.xlu0 %v4660_v49, %s4889_s5 }
 0x8cf   :  { %v959_v50 = vpop.permute.xlu1 %958 }
 0x8d0   :  { %v964_v51 = vmul.f32 %v4646_v12, %v959_v50  ;;  %v961_v52 = vpop.permute.xlu0 %960 }
 0x8d1   :  { %v965_v53 = vmul.f32 %v4648_v7, %v961_v52 }
 0x8d2   :  { %v1107_v54 = vrot.slane %v964_v51, 6 }
 0x8d3   :  { %v1108_v55 = vrot.slane %v965_v53, 5  ;;  %v2717_v56 = vrot.slane %v965_v53, 7  ;;  %v819_v57 = vpop.permute.xlu1 %818 }
 0x8d4   :  { %v824_v58 = vmul.f32 %v4650_v22, %v819_v57  ;;  %v821_v63 = vpop.permute.xlu0 %820 }
 0x8d5   :  { %v1109_v59 = vsel %vm179_vm1, %v1108_v55, %v1107_v54  ;;  %v5225_v60 = vsel %vm2712_vm4, %v2717_v56, %v964_v51  ;;  %v825_v0 = vmul.f32 %v4652_v26, %v821_v63 }
 0x8d6   :  { %v968_v61 = vrot.slane %v824_v58, 1  ;;  %1110 = vrot.lane.b32.xlu1 %v1109_v59, %s4890_s8 }
 0x8d7   :  { %v2651_v1 = vrot.slane %v825_v0, 7 }
 0x8d8   :  { %v969_v2 = vsel %vm179_vm1, %v825_v0, %v968_v61  ;;  %v1207_v0 = vrot.slane %v5206_v39, 1 }
 0x8d9   :  { %970 = vrot.lane.b32.xlu0 %v969_v2, %s4890_s8  ;;  %v5231_v3 = vsel %vm2652_vm5, %v2651_v1, %v824_v58  ;;  %v1208_v1 = vrot.slane %v5208_v42, 1 }
 0x948   :  { %v1111_v5 = vpop.permute.xlu1 %1110 }
 0x949   :  { %4032 = vmatmul.mubr.msk.f32.vlgmr.msra.gmra.mrb[8].mxu0 %vm67_vm0, %v1111_v5 }
 0x94a   :  { %4394 = vmatpush3.bf16.msra.mxu0 %v5074_v9  ;;  %4053 = vmatprep.mubr.msk.f32.mxu0 %vm4887_vm3, %v4888_v15 }
 0x94b   :  { %4395 = vmatprep.subr.bf16.mxu0 %v4886_v62  ;;  %v971_v6 = vpop.permute.xlu0 %970 }
 0x94c   :  { %4021 = vmatmul.mubr.msk.f32.vlgmr.msra.gmra.mrb[6].mxu1 %vm67_vm0, %v971_v6 }
 0x94d   :  { %4388 = vmatpush3.bf16.msra.mxu1 %v5072_v8  ;;  %4042 = vmatprep.mubr.msk.f32.mxu1 %vm4887_vm3, %v4888_v15 }
 0x94e   :  { %4397 = vmatpush3.bf16.msra.mxu0 %v5096_v14  ;;  %4389 = vmatprep.subr.bf16.mxu1 %v4886_v62 }
 0x94f   :  { %4404 = vmatprep.subr.bf16.mxu0 %v4886_v62 }
 0x951   :  { %4391 = vmatpush3.bf16.msra.mxu1 %v5094_v11 }
 0x952   :  { %4398 = vmatprep.subr.bf16.mxu1 %v4886_v62 }
 0xa1c   :  { %v1180_v12 = vpop.f32.mrb[8].mxu0 }
 0xa1d   :  { %v1185_v13 = vrot.slane %v1180_v12, 3  ;;  %v1186_v7 = vrot.slane %v1180_v12, 4  ;;  %v4033_v16 = vpop.f32.mrb[9].mxu0  ;;  %v1067_v12 = vrot.slane %v5213_v45, 7 }
 0xa1e   :  { %v1068_v16 = vrot.slane %v5216_v18, 7 }
 0xa1f   :  { %v1189_v19 = vadd.f32 %v1185_v13, %v5131_v29  ;;  %v1190_v20 = vadd.f32 %v1186_v7, %v5134_v32  ;;  %v1040_v22 = vpop.f32.mrb[6].mxu1 }
 0xa20   :  { %v1045_v23 = vrot.slane %v1040_v22, 6  ;;  %v4022_v24 = vpop.f32.mrb[7].mxu1  ;;  %v1046_v26 = vrot.slane %v1040_v22, 7 }
 0xa21   :  { %4661 = vtanh.f32 %v1189_v19  ;;  %v3704_v37 = vmul.f32 -1.442695, %v1189_v19  ;;  %v3705_v38 = vmul.f32 -1.442695, %v1190_v20 }
 0xa22   :  { %4663 = vtanh.f32 %v1190_v20  ;;  %v1049_v28 = vadd.f32 %v1045_v23, %v5125_v21  ;;  %v1050_v30 = vadd.f32 %v1046_v26, %v5137_v35 }
 0xa24   :  { %4665 = vtanh.f32 %v1049_v28  ;;  %v3701_v40 = vmul.f32 -1.442695, %v1049_v28  ;;  %v3702_v43 = vmul.f32 -1.442695, %v1050_v30 }
 0xa25   :  { %4667 = vtanh.f32 %v1050_v30 }
 0xa26   :  { %4669 = vpow2.f32 %v3704_v37 }
 0xa27   :  { %4671 = vpow2.f32 %v3705_v38 }
 0xa28   :  { %4673 = vpow2.f32 %v3701_v40 }
 0xa29   :  { %4675 = vpow2.f32 %v3702_v43 }
 0xa2b   :  { %v4662_v31 = vpop.eup %4661 }
 0xa2c   :  { %v4664_v33 = vpop.eup %4663  ;;  %1215 = vrot.lane.b32.xlu1 %v4662_v31, %s4889_s5 }
 0xa2d   :  { %1217 = vrot.lane.b32.xlu0 %v4664_v33, %s4889_s5 }
 0xa2e   :  { %v4666_v34 = vpop.eup %4665 }
 0xa2f   :  { %v4668_v36 = vpop.eup %4667 }
 0xa30   :  { %1075 = vrot.lane.b32.xlu1 %v4666_v34, %s4889_s5  ;;  %v4670_v44 = vpop.eup %4669 }
 0xa31   :  { %1077 = vrot.lane.b32.xlu0 %v4668_v36, %s4889_s5  ;;  %v4672_v4 = vpop.eup %4671  ;;  %v1197_v10 = vadd.f32 1.0, %v4670_v44 }
 0xa32   :  { %v4674_v46 = vpop.eup %4673  ;;  %v1198_v47 = vadd.f32 1.0, %v4672_v4 }
 0xa33   :  { %v4676_v48 = vpop.eup %4675  ;;  %4677 = vrcp.f32 %v1197_v10  ;;  %v1057_v17 = vadd.f32 1.0, %v4674_v46 }
 0xa34   :  { %4679 = vrcp.f32 %v1198_v47  ;;  %v1058_v49 = vadd.f32 1.0, %v4676_v48 }
 0xa35   :  { %4681 = vrcp.f32 %v1057_v17 }
 0xa36   :  { %4683 = vrcp.f32 %v1058_v49 }
 0xa3d   :  { %v4678_v50 = vpop.eup %4677 }
 0xa3e   :  { %v4680_v52 = vpop.eup %4679  ;;  %v1211_v2 = vmul.f32 %v4678_v50, %v1207_v0 }
 0xa3f   :  { %v4682_v56 = vpop.eup %4681  ;;  %v1212_v6 = vmul.f32 %v4680_v52, %v1208_v1 }
 0xa40   :  { %v4684_v58 = vpop.eup %4683  ;;  %v1071_v20 = vmul.f32 %v4682_v56, %v1067_v12 }
 0xa41   :  { %v1072_v22 = vmul.f32 %v4684_v58, %v1068_v16 }
 0xa9e   :  { %v1216_v51 = vpop.permute.xlu1 %1215 }
 0xa9f   :  { %v1221_v53 = vmul.f32 %v4678_v50, %v1216_v51  ;;  %v1218_v54 = vpop.permute.xlu0 %1217 }
 0xaa0   :  { %v1222_v55 = vmul.f32 %v4680_v52, %v1218_v54 }
 0xaa1   :  { %1225 = vrot.lane.b32.xlu1 %v1221_v53, %s4890_s8 }
 0xaa2   :  { %1227 = vrot.lane.b32.xlu0 %v1222_v55, %s4890_s8  ;;  %v1076_v57 = vpop.permute.xlu1 %1075 }
 0xaa3   :  { %v1081_v59 = vmul.f32 %v4682_v56, %v1076_v57  ;;  %v1078_v61 = vpop.permute.xlu0 %1077 }
 0xaa4   :  { %v1082_v63 = vmul.f32 %v4684_v58, %v1078_v61 }
 0xaa5   :  { %1085 = vrot.lane.b32.xlu1 %v1081_v59, %s4890_s8 }
 0xaa6   :  { %1087 = vrot.lane.b32.xlu0 %v1082_v63, %s4890_s8 }
 0xb13   :  { %v1226_v5 = vpop.permute.xlu1 %1225 }
 0xb14   :  { %v5262_v13 = vadd.f32 %v1226_v5, %v1211_v2  ;;  %v1228_v7 = vpop.permute.xlu0 %1227 }
 0xb15   :  { %v5265_v19 = vadd.f32 %v1228_v7, %v1212_v6 }
 0xb16   :  { %4685 = vtanh.f32 %v5262_v13 }
 0xb17   :  { %4687 = vtanh.f32 %v5265_v19  ;;  %v1086_v39 = vpop.permute.xlu1 %1085 }
 0xb18   :  { %v5269_v42 = vadd.f32 %v1086_v39, %v1071_v20  ;;  %v1088_v23 = vpop.permute.xlu0 %1087 }
 0xb19   :  { %v5271_v24 = vadd.f32 %v1088_v23, %v1072_v22 }
 0xb1a   :  { %4689 = vtanh.f32 %v5269_v42 }
 0xb1b   :  { %4691 = vtanh.f32 %v5271_v24 }
 0xb20   :  { %v4686_v45 = vpop.eup %4685 }
 0xb21   :  { %v4688_v18 = vpop.eup %4687  ;;  %1237 = vrot.lane.b32.xlu1 %v4686_v45, %s4889_s5 }
 0xb22   :  { %1239 = vrot.lane.b32.xlu0 %v4688_v18, %s4889_s5 }
 0xb24   :  { %v4690_v26 = vpop.eup %4689 }
 0xb25   :  { %v4692_v28 = vpop.eup %4691  ;;  %1097 = vrot.lane.b32.xlu1 %v4690_v26, %s4889_s5 }
 0xb26   :  { %1099 = vrot.lane.b32.xlu0 %v4692_v28, %s4889_s5 }
 0xb93   :  { %v1238_v30 = vpop.permute.xlu1 %1237 }
 0xb94   :  { %v1243_v31 = vmul.f32 %v4678_v50, %v1238_v30  ;;  %v1240_v33 = vpop.permute.xlu0 %1239 }
 0xb95   :  { %v1244_v34 = vmul.f32 %v4680_v52, %v1240_v33 }
 0xb96   :  { %v1387_v36 = vrot.slane %v1243_v31, 5 }
 0xb97   :  { %v1388_v37 = vrot.slane %v1244_v34, 4  ;;  %v2705_v38 = vrot.slane %v1244_v34, 7  ;;  %v1098_v40 = vpop.permute.xlu1 %1097 }
 0xb98   :  { %v1103_v43 = vmul.f32 %v4682_v56, %v1098_v40  ;;  %v1100_v44 = vpop.permute.xlu0 %1099 }
 0xb99   :  { %v1104_v4 = vmul.f32 %v4684_v58, %v1100_v44  ;;  %v1389_v10 = vsel %vm179_vm1, %v1388_v37, %v1387_v36  ;;  %v5281_v46 = vsel %vm2700_vm6, %v2705_v38, %v1243_v31 }
 0xb9a   :  { %v1247_v47 = vrot.slane %v1103_v43, 2  ;;  %1390 = vrot.lane.b32.xlu1 %v1389_v10, %s4890_s8 }
 0xb9b   :  { %v1248_v48 = vrot.slane %v1104_v4, 1  ;;  %v2663_v17 = vrot.slane %v1104_v4, 7 }
 0xb9d   :  { %v1249_v49 = vsel %vm179_vm1, %v1248_v48, %v1247_v47  ;;  %v5286_v50 = vsel %vm2664_vm7, %v2663_v17, %v1103_v43 }
 0xb9e   :  { %1250 = vrot.lane.b32.xlu0 %v1249_v49, %s4890_s8  ;;  %v1487_v49 = vrot.slane %v5262_v13, 1 }
 0xc0c   :  { %v1391_v51 = vpop.permute.xlu1 %1390 }
 0xc0d   :  { %4054 = vmatmul.mubr.msk.f32.vlgmr.msra.gmra.mrb[10].mxu0 %vm67_vm0, %v1391_v51  ;;  %v1488_v51 = vrot.slane %v5265_v19, 1 }
 0xc0e   :  { %4406 = vmatpush3.bf16.msra.mxu0 %v5074_v9  ;;  %4075 = vmatprep.mubr.msk.f32.mxu0 %vm4887_vm3, %v4888_v15 }
 0xc0f   :  { %4407 = vmatprep.subr.bf16.mxu0 %v4886_v62 }
 0xc10   :  { %v1251_v52 = vpop.permute.xlu0 %1250 }
 0xc11   :  { %4043 = vmatmul.mubr.msk.f32.vlgmr.msra.gmra.mrb[8].mxu1 %vm67_vm0, %v1251_v52 }
 0xc12   :  { %4400 = vmatpush3.bf16.msra.mxu1 %v5072_v8  ;;  %4409 = vmatpush3.bf16.msra.mxu0 %v5096_v14 }
 0xc13   :  { %4401 = vmatprep.subr.bf16.mxu1 %v4886_v62  ;;  %4064 = vmatprep.mubr.msk.f32.mxu1 %vm4887_vm3, %v4888_v15 }
 0xc14   :  { %4416 = vmatprep.subr.bf16.mxu0 %v4886_v62 }
 0xc16   :  { %4403 = vmatpush3.bf16.msra.mxu1 %v5094_v11 }
 0xc17   :  { %4410 = vmatprep.subr.bf16.mxu1 %v4886_v62 }
 0xce0   :  { %v1460_v53 = vpop.f32.mrb[10].mxu0 }
 0xce1   :  { %v1465_v54 = vrot.slane %v1460_v53, 4  ;;  %v1466_v55 = vrot.slane %v1460_v53, 5  ;;  %v4055_v56 = vpop.f32.mrb[11].mxu0 }
 0xce3   :  { %v1469_v57 = vadd.f32 %v1465_v54, %v5131_v29  ;;  %v1470_v58 = vadd.f32 %v1466_v55, %v5134_v32  ;;  %v1347_v55 = vrot.slane %v5269_v42, 7 }
 0xce4   :  { %v1320_v59 = vpop.f32.mrb[8].mxu1 }
 0xce5   :  { %4693 = vtanh.f32 %v1469_v57  ;;  %v1325_v61 = vrot.slane %v1320_v59, 5  ;;  %v4044_v63 = vpop.f32.mrb[9].mxu1  ;;  %v1326_v0 = vrot.slane %v1320_v59, 6  ;;  %v3710_v16 = vmul.f32 -1.442695, %v1469_v57 }
 0xce6   :  { %4695 = vtanh.f32 %v1470_v58  ;;  %v3711_v20 = vmul.f32 -1.442695, %v1470_v58  ;;  %v1348_v58 = vrot.slane %v5271_v24, 7 }
 0xce7   :  { %v1329_v1 = vadd.f32 %v1325_v61, %v5125_v21  ;;  %v1330_v2 = vadd.f32 %v1326_v0, %v5137_v35 }
 0xce9   :  { %4697 = vtanh.f32 %v1329_v1  ;;  %v3707_v39 = vmul.f32 -1.442695, %v1329_v1  ;;  %v3708_v22 = vmul.f32 -1.442695, %v1330_v2 }
 0xcea   :  { %4699 = vtanh.f32 %v1330_v2 }
 0xceb   :  { %4701 = vpow2.f32 %v3710_v16 }
 0xcec   :  { %4703 = vpow2.f32 %v3711_v20 }
 0xced   :  { %4705 = vpow2.f32 %v3707_v39 }
 0xcee   :  { %4707 = vpow2.f32 %v3708_v22 }
 0xcef   :  { %v4694_v5 = vpop.eup %4693 }
 0xcf0   :  { %v4696_v6 = vpop.eup %4695  ;;  %1495 = vrot.lane.b32.xlu1 %v4694_v5, %s4889_s5 }
 0xcf1   :  { %1497 = vrot.lane.b32.xlu0 %v4696_v6, %s4889_s5 }
 0xcf3   :  { %v4698_v12 = vpop.eup %4697 }
 0xcf4   :  { %v4700_v7 = vpop.eup %4699  ;;  %1355 = vrot.lane.b32.xlu1 %v4698_v12, %s4889_s5 }
 0xcf5   :  { %1357 = vrot.lane.b32.xlu0 %v4700_v7, %s4889_s5  ;;  %v4702_v23 = vpop.eup %4701 }
 0xcf6   :  { %v4704_v45 = vpop.eup %4703  ;;  %v1477_v18 = vadd.f32 1.0, %v4702_v23 }
 0xcf7   :  { %v4706_v26 = vpop.eup %4705  ;;  %v1478_v28 = vadd.f32 1.0, %v4704_v45 }
 0xcf8   :  { %v4708_v30 = vpop.eup %4707  ;;  %4709 = vrcp.f32 %v1477_v18  ;;  %v1337_v31 = vadd.f32 1.0, %v4706_v26 }
 0xcf9   :  { %4711 = vrcp.f32 %v1478_v28  ;;  %v1338_v33 = vadd.f32 1.0, %v4708_v30 }
 0xcfa   :  { %4713 = vrcp.f32 %v1337_v31 }
 0xcfb   :  { %4715 = vrcp.f32 %v1338_v33 }
 0xd02   :  { %v4710_v34 = vpop.eup %4709 }
 0xd03   :  { %v4712_v37 = vpop.eup %4711  ;;  %v1491_v52 = vmul.f32 %v4710_v34, %v1487_v49 }
 0xd04   :  { %v4714_v44 = vpop.eup %4713  ;;  %v1492_v54 = vmul.f32 %v4712_v37, %v1488_v51 }
 0xd05   :  { %v4716_v10 = vpop.eup %4715  ;;  %v1351_v61 = vmul.f32 %v4714_v44, %v1347_v55 }
 0xd06   :  { %v1352_v63 = vmul.f32 %v4716_v10, %v1348_v58 }
 0xd62   :  { %v1496_v36 = vpop.permute.xlu1 %1495 }
 0xd63   :  { %v1501_v38 = vmul.f32 %v4710_v34, %v1496_v36  ;;  %v1498_v40 = vpop.permute.xlu0 %1497 }
 0xd64   :  { %v1502_v43 = vmul.f32 %v4712_v37, %v1498_v40 }
 0xd65   :  { %1505 = vrot.lane.b32.xlu1 %v1501_v38, %s4890_s8 }
 0xd66   :  { %1507 = vrot.lane.b32.xlu0 %v1502_v43, %s4890_s8  ;;  %v1356_v4 = vpop.permute.xlu1 %1355 }
 0xd67   :  { %v1361_v47 = vmul.f32 %v4714_v44, %v1356_v4  ;;  %v1358_v48 = vpop.permute.xlu0 %1357 }
 0xd68   :  { %v1362_v17 = vmul.f32 %v4716_v10, %v1358_v48 }
 0xd69   :  { %1365 = vrot.lane.b32.xlu1 %v1361_v47, %s4890_s8 }
 0xd6a   :  { %1367 = vrot.lane.b32.xlu0 %v1362_v17, %s4890_s8 }
 0xdd7   :  { %v1506_v53 = vpop.permute.xlu1 %1505 }
 0xdd8   :  { %v5318_v56 = vadd.f32 %v1506_v53, %v1491_v52  ;;  %v1508_v57 = vpop.permute.xlu0 %1507 }
 0xdd9   :  { %v5321_v59 = vadd.f32 %v1508_v57, %v1492_v54 }
 0xdda   :  { %4717 = vtanh.f32 %v5318_v56 }
 0xddb   :  { %4719 = vtanh.f32 %v5321_v59  ;;  %v1366_v13 = vpop.permute.xlu1 %1365 }
 0xddc   :  { %v5325_v19 = vadd.f32 %v1366_v13, %v1351_v61  ;;  %v1368_v0 = vpop.permute.xlu0 %1367 }
 0xddd   :  { %v5327_v1 = vadd.f32 %v1368_v0, %v1352_v63 }
 0xdde   :  { %4721 = vtanh.f32 %v5325_v19 }
 0xddf   :  { %4723 = vtanh.f32 %v5327_v1 }
 0xde4   :  { %v4718_v42 = vpop.eup %4717 }
 0xde5   :  { %v4720_v24 = vpop.eup %4719  ;;  %1517 = vrot.lane.b32.xlu1 %v4718_v42, %s4889_s5 }
 0xde6   :  { %1519 = vrot.lane.b32.xlu0 %v4720_v24, %s4889_s5 }
 0xde8   :  { %v4722_v2 = vpop.eup %4721 }
 0xde9   :  { %v4724_v5 = vpop.eup %4723  ;;  %1377 = vrot.lane.b32.xlu1 %v4722_v2, %s4889_s5 }
 0xdea   :  { %1379 = vrot.lane.b32.xlu0 %v4724_v5, %s4889_s5 }
 0xe57   :  { %v1518_v6 = vpop.permute.xlu1 %1517 }
 0xe58   :  { %v1523_v12 = vmul.f32 %v4710_v34, %v1518_v6  ;;  %v1520_v7 = vpop.permute.xlu0 %1519 }
 0xe59   :  { %v1524_v16 = vmul.f32 %v4712_v37, %v1520_v7 }
 0xe5a   :  { %v1667_v20 = vrot.slane %v1523_v12, 4 }
 0xe5b   :  { %v1668_v39 = vrot.slane %v1524_v16, 3  ;;  %v2693_v22 = vrot.slane %v1524_v16, 7  ;;  %v1378_v23 = vpop.permute.xlu1 %1377 }
 0xe5c   :  { %v1383_v45 = vmul.f32 %v4714_v44, %v1378_v23  ;;  %v1380_v18 = vpop.permute.xlu0 %1379 }
 0xe5d   :  { %v1384_v26 = vmul.f32 %v4716_v10, %v1380_v18  ;;  %v1669_v28 = vsel %vm179_vm1, %v1668_v39, %v1667_v20  ;;  %v5337_v30 = vsel %vm2688_vm8, %v2693_v22, %v1523_v12 }
 0xe5e   :  { %v1527_v31 = vrot.slane %v1383_v45, 3  ;;  %1670 = vrot.lane.b32.xlu1 %v1669_v28, %s4890_s8 }
 0xe5f   :  { %v1528_v33 = vrot.slane %v1384_v26, 2  ;;  %v2675_v34 = vrot.slane %v1384_v26, 7 }
 0xe61   :  { %v1529_v36 = vsel %vm179_vm1, %v1528_v33, %v1527_v31  ;;  %v5342_v37 = vsel %vm2676_vm9, %v2675_v34, %v1383_v45 }
 0xe62   :  { %1530 = vrot.lane.b32.xlu0 %v1529_v36, %s4890_s8 }
 0xed0   :  { %v1671_v38 = vpop.permute.xlu1 %1670 }
 0xed1   :  { %4076 = vmatmul.mubr.msk.f32.vlgmr.msra.gmra.mrb[12].mxu0 %vm67_vm0, %v1671_v38 }
 0xed2   :  { %4418 = vmatpush3.bf16.msra.mxu0 %v5074_v9  ;;  %4097 = vmatprep.mubr.msk.f32.mxu0 %vm4887_vm3, %v4888_v15 }
 0xed3   :  { %4419 = vmatprep.subr.bf16.mxu0 %v4886_v62 }
 0xed4   :  { %v1531_v40 = vpop.permute.xlu0 %1530 }
 0xed5   :  { %4065 = vmatmul.mubr.msk.f32.vlgmr.msra.gmra.mrb[10].mxu1 %vm67_vm0, %v1531_v40  ;;  %v1767_v40 = vrot.slane %v5318_v56, 1 }
 0xed6   :  { %4412 = vmatpush3.bf16.msra.mxu1 %v5072_v8  ;;  %4421 = vmatpush3.bf16.msra.mxu0 %v5096_v14 }
 0xed7   :  { %4413 = vmatprep.subr.bf16.mxu1 %v4886_v62  ;;  %4086 = vmatprep.mubr.msk.f32.mxu1 %vm4887_vm3, %v4888_v15 }
 0xed8   :  { %4428 = vmatprep.subr.bf16.mxu0 %v4886_v62 }
 0xeda   :  { %4415 = vmatpush3.bf16.msra.mxu1 %v5094_v11 }
 0xedb   :  { %4422 = vmatprep.subr.bf16.mxu1 %v4886_v62 }
 0xfa4   :  { %v1740_v43 = vpop.f32.mrb[12].mxu0 }
 0xfa5   :  { %v1745_v44 = vrot.slane %v1740_v43, 5  ;;  %v1746_v4 = vrot.slane %v1740_v43, 6  ;;  %v4077_v10 = vpop.f32.mrb[13].mxu0  ;;  %v1768_v43 = vrot.slane %v5321_v59, 1 }
 0xfa7   :  { %v1749_v47 = vadd.f32 %v1745_v44, %v5131_v29  ;;  %v1750_v48 = vadd.f32 %v1746_v4, %v5134_v32 }
 0xfa8   :  { %v1600_v17 = vpop.f32.mrb[10].mxu1 }
 0xfa9   :  { %4725 = vtanh.f32 %v1749_v47  ;;  %v1605_v49 = vrot.slane %v1600_v17, 4  ;;  %v4066_v51 = vpop.f32.mrb[11].mxu1  ;;  %v1606_v52 = vrot.slane %v1600_v17, 5  ;;  %v3716_v13 = vmul.f32 -1.442695, %v1749_v47 }
 0xfaa   :  { %4727 = vtanh.f32 %v1750_v48  ;;  %v3717_v63 = vmul.f32 -1.442695, %v1750_v48  ;;  %v1627_v47 = vrot.slane %v5325_v19, 7 }
 0xfab   :  { %v1609_v53 = vadd.f32 %v1605_v49, %v5125_v21  ;;  %v1610_v54 = vadd.f32 %v1606_v52, %v5137_v35  ;;  %v1628_v49 = vrot.slane %v5327_v1, 7 }
 0xfad   :  { %4729 = vtanh.f32 %v1609_v53  ;;  %v3713_v0 = vmul.f32 -1.442695, %v1609_v53  ;;  %v3714_v42 = vmul.f32 -1.442695, %v1610_v54 }
 0xfae   :  { %4731 = vtanh.f32 %v1610_v54 }
 0xfaf   :  { %4733 = vpow2.f32 %v3716_v13 }
 0xfb0   :  { %4735 = vpow2.f32 %v3717_v63 }
 0xfb1   :  { %4737 = vpow2.f32 %v3713_v0 }
 0xfb2   :  { %4739 = vpow2.f32 %v3714_v42 }
 0xfb3   :  { %v4726_v55 = vpop.eup %4725 }
 0xfb4   :  { %v4728_v57 = vpop.eup %4727  ;;  %1775 = vrot.lane.b32.xlu1 %v4726_v55, %s4889_s5 }
 0xfb5   :  { %1777 = vrot.lane.b32.xlu0 %v4728_v57, %s4889_s5 }
 0xfb7   :  { %v4730_v58 = vpop.eup %4729 }
 0xfb8   :  { %v4732_v61 = vpop.eup %4731  ;;  %1635 = vrot.lane.b32.xlu1 %v4730_v58, %s4889_s5 }
 0xfb9   :  { %1637 = vrot.lane.b32.xlu0 %v4732_v61, %s4889_s5  ;;  %v4734_v24 = vpop.eup %4733 }
 0xfba   :  { %v4736_v2 = vpop.eup %4735  ;;  %v1757_v5 = vadd.f32 1.0, %v4734_v24 }
 0xfbb   :  { %v4738_v6 = vpop.eup %4737  ;;  %v1758_v12 = vadd.f32 1.0, %v4736_v2 }
 0xfbc   :  { %v4740_v7 = vpop.eup %4739  ;;  %4741 = vrcp.f32 %v1757_v5  ;;  %v1617_v16 = vadd.f32 1.0, %v4738_v6 }
 0xfbd   :  { %4743 = vrcp.f32 %v1758_v12  ;;  %v1618_v20 = vadd.f32 1.0, %v4740_v7 }
 0xfbe   :  { %4745 = vrcp.f32 %v1617_v16 }
 0xfbf   :  { %4747 = vrcp.f32 %v1618_v20 }
 0xfc6   :  { %v4742_v39 = vpop.eup %4741 }
 0xfc7   :  { %v4744_v23 = vpop.eup %4743  ;;  %v1771_v44 = vmul.f32 %v4742_v39, %v1767_v40 }
 0xfc8   :  { %v4746_v28 = vpop.eup %4745  ;;  %v1772_v10 = vmul.f32 %v4744_v23, %v1768_v43 }
 0xfc9   :  { %v4748_v33 = vpop.eup %4747  ;;  %v1631_v52 = vmul.f32 %v4746_v28, %v1627_v47 }
 0xfca   :  { %v1632_v53 = vmul.f32 %v4748_v33, %v1628_v49 }
0x1026   :  { %v1776_v22 = vpop.permute.xlu1 %1775 }
0x1027   :  { %v1781_v45 = vmul.f32 %v4742_v39, %v1776_v22  ;;  %v1778_v18 = vpop.permute.xlu0 %1777 }
0x1028   :  { %v1782_v26 = vmul.f32 %v4744_v23, %v1778_v18 }
0x1029   :  { %1785 = vrot.lane.b32.xlu1 %v1781_v45, %s4890_s8 }
0x102a   :  { %1787 = vrot.lane.b32.xlu0 %v1782_v26, %s4890_s8  ;;  %v1636_v31 = vpop.permute.xlu1 %1635 }
0x102b   :  { %v1641_v34 = vmul.f32 %v4746_v28, %v1636_v31  ;;  %v1638_v36 = vpop.permute.xlu0 %1637 }
0x102c   :  { %v1642_v38 = vmul.f32 %v4748_v33, %v1638_v36 }
0x102d   :  { %1645 = vrot.lane.b32.xlu1 %v1641_v34, %s4890_s8 }
0x102e   :  { %1647 = vrot.lane.b32.xlu0 %v1642_v38, %s4890_s8 }
0x109b   :  { %v1786_v4 = vpop.permute.xlu1 %1785 }
0x109c   :  { %v5374_v48 = vadd.f32 %v1786_v4, %v1771_v44  ;;  %v1788_v17 = vpop.permute.xlu0 %1787 }
0x109d   :  { %v5377_v51 = vadd.f32 %v1788_v17, %v1772_v10 }
0x109e   :  { %4749 = vtanh.f32 %v5374_v48 }
0x109f   :  { %4751 = vtanh.f32 %v5377_v51  ;;  %v1646_v56 = vpop.permute.xlu1 %1645 }
0x10a0   :  { %v5381_v59 = vadd.f32 %v1646_v56, %v1631_v52  ;;  %v1648_v54 = vpop.permute.xlu0 %1647 }
0x10a1   :  { %v5383_v55 = vadd.f32 %v1648_v54, %v1632_v53 }
0x10a2   :  { %4753 = vtanh.f32 %v5381_v59 }
0x10a3   :  { %4755 = vtanh.f32 %v5383_v55 }
0x10a8   :  { %v4750_v19 = vpop.eup %4749 }
0x10a9   :  { %v4752_v1 = vpop.eup %4751  ;;  %1797 = vrot.lane.b32.xlu1 %v4750_v19, %s4889_s5 }
0x10aa   :  { %1799 = vrot.lane.b32.xlu0 %v4752_v1, %s4889_s5 }
0x10ac   :  { %v4754_v57 = vpop.eup %4753 }
0x10ad   :  { %v4756_v58 = vpop.eup %4755  ;;  %1657 = vrot.lane.b32.xlu1 %v4754_v57, %s4889_s5 }
0x10ae   :  { %1659 = vrot.lane.b32.xlu0 %v4756_v58, %s4889_s5 }
0x111b   :  { %v1798_v61 = vpop.permute.xlu1 %1797 }
0x111c   :  { %v1803_v13 = vmul.f32 %v4742_v39, %v1798_v61  ;;  %v1800_v63 = vpop.permute.xlu0 %1799 }
0x111d   :  { %v1804_v0 = vmul.f32 %v4744_v23, %v1800_v63 }
0x111e   :  { %v1947_v42 = vrot.slane %v1803_v13, 3 }
0x111f   :  { %v1948_v24 = vrot.slane %v1804_v0, 2  ;;  %v2681_v2 = vrot.slane %v1804_v0, 7  ;;  %v1658_v5 = vpop.permute.xlu1 %1657 }
0x1120   :  { %v1663_v6 = vmul.f32 %v4746_v28, %v1658_v5  ;;  %v1660_v12 = vpop.permute.xlu0 %1659 }
0x1121   :  { %v1664_v7 = vmul.f32 %v4748_v33, %v1660_v12  ;;  %v1949_v16 = vsel %vm179_vm1, %v1948_v24, %v1947_v42  ;;  %v5393_v20 = vsel %vm2676_vm9, %v2681_v2, %v1803_v13 }
0x1122   :  { %v1807_v22 = vrot.slane %v1663_v6, 4  ;;  %1950 = vrot.lane.b32.xlu1 %v1949_v16, %s4890_s8 }
0x1123   :  { %v1808_v45 = vrot.slane %v1664_v7, 3  ;;  %v2687_v18 = vrot.slane %v1664_v7, 7 }
0x1125   :  { %v1809_v39 = vsel %vm179_vm1, %v1808_v45, %v1807_v22  ;;  %v5398_v23 = vsel %vm2688_vm8, %v2687_v18, %v1663_v6 }
0x1126   :  { %1810 = vrot.lane.b32.xlu0 %v1809_v39, %s4890_s8 }
0x1194   :  { %v1951_v26 = vpop.permute.xlu1 %1950 }
0x1195   :  { %4098 = vmatmul.mubr.msk.f32.vlgmr.msra.gmra.mrb[14].mxu0 %vm67_vm0, %v1951_v26 }
0x1196   :  { %4430 = vmatpush3.bf16.msra.mxu0 %v5074_v9  ;;  %4119 = vmatprep.mubr.msk.f32.mxu0 %vm4887_vm3, %v4888_v15 }
0x1197   :  { %4431 = vmatprep.subr.bf16.mxu0 %v4886_v62 }
0x1198   :  { %v1811_v28 = vpop.permute.xlu0 %1810 }
0x1199   :  { %4087 = vmatmul.mubr.msk.f32.vlgmr.msra.gmra.mrb[12].mxu1 %vm67_vm0, %v1811_v28 }
0x119a   :  { %4424 = vmatpush3.bf16.msra.mxu1 %v5072_v8  ;;  %4433 = vmatpush3.bf16.msra.mxu0 %v5096_v14 }
0x119b   :  { %4425 = vmatprep.subr.bf16.mxu1 %v4886_v62  ;;  %4108 = vmatprep.mubr.msk.f32.mxu1 %vm4887_vm3, %v4888_v15 }
0x119c   :  { %4440 = vmatprep.subr.bf16.mxu0 %v4886_v62 }
0x119e   :  { %4427 = vmatpush3.bf16.msra.mxu1 %v5094_v11 }
0x119f   :  { %4434 = vmatprep.subr.bf16.mxu1 %v4886_v62 }
0x1268   :  { %v2020_v31 = vpop.f32.mrb[14].mxu0 }
0x1269   :  { %v2025_v33 = vrot.slane %v2020_v31, 6  ;;  %v2026_v34 = vrot.slane %v2020_v31, 7  ;;  %v4099_v36 = vpop.f32.mrb[15].mxu0 }
0x126b   :  { %v2029_v38 = vadd.f32 %v2025_v33, %v5131_v29  ;;  %v2030_v40 = vadd.f32 %v2026_v34, %v5134_v32  ;;  %v2047_v33 = vrot.slane %v5374_v48, 1  ;;  %v2048_v34 = vrot.slane %v5377_v51, 1 }
0x126c   :  { %v1880_v43 = vpop.f32.mrb[12].mxu1 }
0x126d   :  { %4757 = vtanh.f32 %v2029_v38  ;;  %v1885_v44 = vrot.slane %v1880_v43, 3  ;;  %v4088_v4 = vpop.f32.mrb[13].mxu1  ;;  %v1886_v10 = vrot.slane %v1880_v43, 4  ;;  %v3722_v54 = vmul.f32 -1.442695, %v2029_v38 }
0x126e   :  { %4759 = vtanh.f32 %v2030_v40  ;;  %v3723_v19 = vmul.f32 -1.442695, %v2030_v40  ;;  %v1907_v43 = vrot.slane %v5381_v59, 7 }
0x126f   :  { %v1889_v47 = vadd.f32 %v1885_v44, %v5125_v21  ;;  %v1890_v17 = vadd.f32 %v1886_v10, %v5137_v35  ;;  %v1908_v10 = vrot.slane %v5383_v55, 7 }
0x1271   :  { %4761 = vtanh.f32 %v1889_v47  ;;  %v3719_v1 = vmul.f32 -1.442695, %v1889_v47  ;;  %v3720_v57 = vmul.f32 -1.442695, %v1890_v17 }
0x1272   :  { %4763 = vtanh.f32 %v1890_v17 }
0x1273   :  { %4765 = vpow2.f32 %v3722_v54 }
0x1274   :  { %4767 = vpow2.f32 %v3723_v19 }
0x1275   :  { %4769 = vpow2.f32 %v3719_v1 }
0x1276   :  { %4771 = vpow2.f32 %v3720_v57 }
0x1277   :  { %v4758_v49 = vpop.eup %4757 }
0x1278   :  { %v4760_v52 = vpop.eup %4759  ;;  %2055 = vrot.lane.b32.xlu1 %v4758_v49, %s4889_s5 }
0x1279   :  { %2057 = vrot.lane.b32.xlu0 %v4760_v52, %s4889_s5 }
0x127b   :  { %v4762_v56 = vpop.eup %4761 }
0x127c   :  { %v4764_v53 = vpop.eup %4763  ;;  %1915 = vrot.lane.b32.xlu1 %v4762_v56, %s4889_s5 }
0x127d   :  { %1917 = vrot.lane.b32.xlu0 %v4764_v53, %s4889_s5  ;;  %v4766_v58 = vpop.eup %4765 }
0x127e   :  { %v4768_v61 = vpop.eup %4767  ;;  %v2037_v13 = vadd.f32 1.0, %v4766_v58 }
0x127f   :  { %v4770_v63 = vpop.eup %4769  ;;  %v2038_v0 = vadd.f32 1.0, %v4768_v61 }
0x1280   :  { %v4772_v42 = vpop.eup %4771  ;;  %4773 = vrcp.f32 %v2037_v13  ;;  %v1897_v24 = vadd.f32 1.0, %v4770_v63 }
0x1281   :  { %4775 = vrcp.f32 %v2038_v0  ;;  %v1898_v2 = vadd.f32 1.0, %v4772_v42 }
0x1282   :  { %4777 = vrcp.f32 %v1897_v24 }
0x1283   :  { %4779 = vrcp.f32 %v1898_v2 }
0x128a   :  { %v4774_v5 = vpop.eup %4773 }
0x128b   :  { %v4776_v12 = vpop.eup %4775  ;;  %v2051_v36 = vmul.f32 %v4774_v5, %v2047_v33 }
0x128c   :  { %v4778_v45 = vpop.eup %4777  ;;  %v2052_v40 = vmul.f32 %v4776_v12, %v2048_v34 }
0x128d   :  { %v4780_v39 = vpop.eup %4779  ;;  %v1911_v17 = vmul.f32 %v4778_v45, %v1907_v43 }
0x128e   :  { %v1912_v49 = vmul.f32 %v4780_v39, %v1908_v10 }
0x12ea   :  { %v2056_v6 = vpop.permute.xlu1 %2055 }
0x12eb   :  { %v2061_v7 = vmul.f32 %v4774_v5, %v2056_v6  ;;  %v2058_v16 = vpop.permute.xlu0 %2057 }
0x12ec   :  { %v2062_v22 = vmul.f32 %v4776_v12, %v2058_v16 }
0x12ed   :  { %2065 = vrot.lane.b32.xlu1 %v2061_v7, %s4890_s8 }
0x12ee   :  { %2067 = vrot.lane.b32.xlu0 %v2062_v22, %s4890_s8  ;;  %v1916_v18 = vpop.permute.xlu1 %1915 }
0x12ef   :  { %v1921_v26 = vmul.f32 %v4778_v45, %v1916_v18  ;;  %v1918_v28 = vpop.permute.xlu0 %1917 }
0x12f0   :  { %v1922_v31 = vmul.f32 %v4780_v39, %v1918_v28 }
0x12f1   :  { %1925 = vrot.lane.b32.xlu1 %v1921_v26, %s4890_s8 }
0x12f2   :  { %1927 = vrot.lane.b32.xlu0 %v1922_v31, %s4890_s8 }
0x135f   :  { %v2066_v38 = vpop.permute.xlu1 %2065 }
0x1360   :  { %v5430_v44 = vadd.f32 %v2066_v38, %v2051_v36  ;;  %v2068_v4 = vpop.permute.xlu0 %2067 }
0x1361   :  { %v5433_v47 = vadd.f32 %v2068_v4, %v2052_v40 }
0x1362   :  { %4781 = vtanh.f32 %v5430_v44 }
0x1363   :  { %4783 = vtanh.f32 %v5433_v47  ;;  %v1926_v48 = vpop.permute.xlu1 %1925 }
0x1364   :  { %v5437_v51 = vadd.f32 %v1926_v48, %v1911_v17  ;;  %v1928_v52 = vpop.permute.xlu0 %1927 }
0x1365   :  { %v5439_v56 = vadd.f32 %v1928_v52, %v1912_v49 }
0x1366   :  { %4785 = vtanh.f32 %v5437_v51 }
0x1367   :  { %4787 = vtanh.f32 %v5439_v56 }
0x136c   :  { %v4782_v59 = vpop.eup %4781 }
0x136d   :  { %v4784_v55 = vpop.eup %4783  ;;  %2077 = vrot.lane.b32.xlu1 %v4782_v59, %s4889_s5 }
0x136e   :  { %2079 = vrot.lane.b32.xlu0 %v4784_v55, %s4889_s5 }
0x1370   :  { %v4786_v53 = vpop.eup %4785 }
0x1371   :  { %v4788_v54 = vpop.eup %4787  ;;  %1937 = vrot.lane.b32.xlu1 %v4786_v53, %s4889_s5 }
0x1372   :  { %1939 = vrot.lane.b32.xlu0 %v4788_v54, %s4889_s5 }
0x13df   :  { %v2078_v19 = vpop.permute.xlu1 %2077 }
0x13e0   :  { %v2083_v1 = vmul.f32 %v4774_v5, %v2078_v19  ;;  %v2080_v57 = vpop.permute.xlu0 %2079 }
0x13e1   :  { %v2084_v58 = vmul.f32 %v4776_v12, %v2080_v57 }
0x13e2   :  { %v2227_v61 = vrot.slane %v2083_v1, 2 }
0x13e3   :  { %v2228_v13 = vrot.slane %v2084_v58, 1  ;;  %v2669_v63 = vrot.slane %v2084_v58, 7  ;;  %v1938_v0 = vpop.permute.xlu1 %1937 }
0x13e4   :  { %v1943_v42 = vmul.f32 %v4778_v45, %v1938_v0  ;;  %v1940_v24 = vpop.permute.xlu0 %1939 }
0x13e5   :  { %v1944_v2 = vmul.f32 %v4780_v39, %v1940_v24  ;;  %v2229_v6 = vsel %vm179_vm1, %v2228_v13, %v2227_v61  ;;  %v5449_v7 = vsel %vm2664_vm7, %v2669_v63, %v2083_v1 }
0x13e6   :  { %v2087_v16 = vrot.slane %v1943_v42, 5  ;;  %2230 = vrot.lane.b32.xlu1 %v2229_v6, %s4890_s8 }
0x13e7   :  { %v2088_v22 = vrot.slane %v1944_v2, 4  ;;  %v2699_v18 = vrot.slane %v1944_v2, 7 }
0x13e9   :  { %v2089_v5 = vsel %vm179_vm1, %v2088_v22, %v2087_v16  ;;  %v5454_v12 = vsel %vm2700_vm6, %v2699_v18, %v1943_v42 }
0x13ea   :  { %2090 = vrot.lane.b32.xlu0 %v2089_v5, %s4890_s8 }
0x1458   :  { %v2231_v45 = vpop.permute.xlu1 %2230 }
0x1459   :  { %4120 = vmatmul.mubr.msk.f32.vlgmr.msra.gmra.mrb[16].mxu0 %vm67_vm0, %v2231_v45  ;;  %v2327_v45 = vrot.slane %v5433_v47, 1 }
0x145a   :  { %4442 = vmatpush3.bf16.msra.mxu0 %v5074_v9  ;;  %4141 = vmatprep.mubr.msk.f32.mxu0 %vm4887_vm3, %v4888_v15 }
0x145b   :  { %4443 = vmatprep.subr.bf16.mxu0 %v4886_v62 }
0x145c   :  { %v2091_v39 = vpop.permute.xlu0 %2090 }
0x145d   :  { %4109 = vmatmul.mubr.msk.f32.vlgmr.msra.gmra.mrb[14].mxu1 %vm67_vm0, %v2091_v39 }
0x145e   :  { %4436 = vmatpush3.bf16.msra.mxu1 %v5072_v8  ;;  %4445 = vmatpush3.bf16.msra.mxu0 %v5096_v14 }
0x145f   :  { %4437 = vmatprep.subr.bf16.mxu1 %v4886_v62  ;;  %4130 = vmatprep.mubr.msk.f32.mxu1 %vm4887_vm3, %v4888_v15 }
0x1460   :  { %4458 = vmatprep.subr.bf16.mxu0 %v4886_v62 }
0x1462   :  { %4439 = vmatpush3.bf16.msra.mxu1 %v5094_v11 }
0x1463   :  { %4446 = vmatprep.subr.bf16.mxu1 %v4886_v62 }
0x152c   :  { %v2300_v9 = vpop.f32.mrb[16].mxu0 }
0x152d   :  { %v2305_v26 = vrot.slane %v2300_v9, 7  ;;  %v2309_v28 = vadd.f32 %v2300_v9, %v5134_v32  ;;  %v4121_v31 = vpop.f32.mrb[17].mxu0  ;;  %v2326_v9 = vrot.slane %v5430_v44, 1 }
0x152f   :  { %v2308_v8 = vadd.f32 %v2305_v26, %v5131_v29  ;;  %4789 = vtanh.f32 %v2309_v28  ;;  %v3729_v17 = vmul.f32 -1.442695, %v2309_v28 }
0x1530   :  { %v2160_v14 = vpop.f32.mrb[14].mxu1 }
0x1531   :  { %v2165_v33 = vrot.slane %v2160_v14, 2  ;;  %v2166_v34 = vrot.slane %v2160_v14, 3  ;;  %v4110_v36 = vpop.f32.mrb[15].mxu1  ;;  %4791 = vtanh.f32 %v2308_v8  ;;  %v3728_v48 = vmul.f32 -1.442695, %v2308_v8 }
0x1532   :  { %v2187_v14 = vrot.slane %v5437_v51, 7 }
0x1533   :  { %v2169_v38 = vadd.f32 %v2165_v33, %v5125_v21  ;;  %v2170_v40 = vadd.f32 %v2166_v34, %v5137_v35  ;;  %v2188_v33 = vrot.slane %v5439_v56, 7 }
0x1535   :  { %4793 = vtanh.f32 %v2169_v38  ;;  %v3725_v49 = vmul.f32 -1.442695, %v2169_v38  ;;  %v3726_v52 = vmul.f32 -1.442695, %v2170_v40 }
0x1536   :  { %4795 = vtanh.f32 %v2170_v40 }
0x1537   :  { %4797 = vpow2.f32 %v3729_v17 }
0x1538   :  { %4799 = vpow2.f32 %v3728_v48 }
0x1539   :  { %v4790_v11 = vpop.eup %4789  ;;  %4801 = vpow2.f32 %v3725_v49 }
0x153a   :  { %2336 = vrot.lane.b32.xlu0 %v4790_v11, %s4889_s5  ;;  %4803 = vpow2.f32 %v3726_v52 }
0x153b   :  { %v4792_v43 = vpop.eup %4791 }
0x153c   :  { %2334 = vrot.lane.b32.xlu1 %v4792_v43, %s4889_s5 }
0x153f   :  { %v4794_v4 = vpop.eup %4793 }
0x1540   :  { %v4796_v10 = vpop.eup %4795  ;;  %2195 = vrot.lane.b32.xlu1 %v4794_v4, %s4889_s5 }
0x1541   :  { %2197 = vrot.lane.b32.xlu0 %v4796_v10, %s4889_s5  ;;  %v4798_v59 = vpop.eup %4797 }
0x1542   :  { %v4800_v55 = vpop.eup %4799  ;;  %v2317_v53 = vadd.f32 1.0, %v4798_v59 }
0x1543   :  { %v4802_v54 = vpop.eup %4801  ;;  %v2316_v19 = vadd.f32 1.0, %v4800_v55 }
0x1544   :  { %v4804_v1 = vpop.eup %4803  ;;  %4805 = vrcp.f32 %v2317_v53  ;;  %v2177_v57 = vadd.f32 1.0, %v4802_v54 }
0x1545   :  { %4807 = vrcp.f32 %v2316_v19  ;;  %v2178_v58 = vadd.f32 1.0, %v4804_v1 }
0x1546   :  { %4809 = vrcp.f32 %v2177_v57 }
0x1547   :  { %4811 = vrcp.f32 %v2178_v58 }
0x154e   :  { %v4806_v61 = vpop.eup %4805 }
0x154f   :  { %v4808_v0 = vpop.eup %4807  ;;  %v2331_v39 = vmul.f32 %v4806_v61, %v2327_v45 }
0x1550   :  { %v4810_v2 = vpop.eup %4809  ;;  %v2330_v31 = vmul.f32 %v4808_v0, %v2326_v9 }
0x1551   :  { %v4812_v6 = vpop.eup %4811  ;;  %v2191_v36 = vmul.f32 %v4810_v2, %v2187_v14 }
0x1552   :  { %v2192_v47 = vmul.f32 %v4812_v6, %v2188_v33 }
0x15ac   :  { %v2337_v13 = vpop.permute.xlu0 %2336 }
0x15ad   :  { %v2341_v63 = vmul.f32 %v4806_v61, %v2337_v13 }
0x15ae   :  { %v2335_v42 = vpop.permute.xlu1 %2334 }
0x15af   :  { %2346 = vrot.lane.b32.xlu0 %v2341_v63, %s4890_s8  ;;  %v2340_v24 = vmul.f32 %v4808_v0, %v2335_v42 }
0x15b1   :  { %2344 = vrot.lane.b32.xlu1 %v2340_v24, %s4890_s8 }
0x15b2   :  { %v2196_v16 = vpop.permute.xlu1 %2195 }
0x15b3   :  { %v2198_v22 = vpop.permute.xlu0 %2197  ;;  %v2201_v18 = vmul.f32 %v4810_v2, %v2196_v16 }
0x15b4   :  { %v2202_v5 = vmul.f32 %v4812_v6, %v2198_v22 }
0x15b5   :  { %2205 = vrot.lane.b32.xlu1 %v2201_v18, %s4890_s8 }
0x15b6   :  { %2207 = vrot.lane.b32.xlu0 %v2202_v5, %s4890_s8 }
0x1621   :  { %v2347_v26 = vpop.permute.xlu0 %2346 }
0x1622   :  { %v5485_v28 = vadd.f32 %v2347_v26, %v2331_v39 }
0x1623   :  { %v2345_v8 = vpop.permute.xlu1 %2344 }
0x1624   :  { %4813 = vtanh.f32 %v5485_v28  ;;  %v5490_v34 = vadd.f32 %v2345_v8, %v2330_v31 }
0x1626   :  { %4815 = vtanh.f32 %v5490_v34 }
0x1627   :  { %v2206_v38 = vpop.permute.xlu1 %2205 }
0x1628   :  { %v2208_v40 = vpop.permute.xlu0 %2207  ;;  %v5493_v44 = vadd.f32 %v2206_v38, %v2191_v36 }
0x1629   :  { %v5495_v11 = vadd.f32 %v2208_v40, %v2192_v47 }
0x162a   :  { %4817 = vtanh.f32 %v5493_v44 }
0x162b   :  { %4819 = vtanh.f32 %v5495_v11 }
0x162e   :  { %v4814_v43 = vpop.eup %4813 }
0x162f   :  { %2358 = vrot.lane.b32.xlu0 %v4814_v43, %s4889_s5 }
0x1630   :  { %v4816_v51 = vpop.eup %4815 }
0x1631   :  { %2356 = vrot.lane.b32.xlu1 %v4816_v51, %s4889_s5 }
0x1634   :  { %v4818_v56 = vpop.eup %4817 }
0x1635   :  { %v4820_v4 = vpop.eup %4819  ;;  %2217 = vrot.lane.b32.xlu1 %v4818_v56, %s4889_s5 }
0x1636   :  { %2219 = vrot.lane.b32.xlu0 %v4820_v4, %s4889_s5 }
0x16a1   :  { %v2359_v10 = vpop.permute.xlu0 %2358 }
0x16a2   :  { %v2363_v17 = vmul.f32 %v4806_v61, %v2359_v10 }
0x16a3   :  { %v2357_v49 = vpop.permute.xlu1 %2356 }
0x16a4   :  { %v2657_v48 = vrot.slane %v2363_v17, 7  ;;  %v2362_v52 = vmul.f32 %v4808_v0, %v2357_v49 }
0x16a6   :  { %v2506_v59 = vrot.slane %v2362_v52, 1  ;;  %v5504_v55 = vsel %vm2652_vm5, %v2657_v48, %v2362_v52 }
0x16a7   :  { %v2218_v53 = vpop.permute.xlu1 %2217 }
0x16a8   :  { %v2223_v54 = vmul.f32 %v4810_v2, %v2218_v53  ;;  %v2220_v19 = vpop.permute.xlu0 %2219  ;;  %v2507_v1 = vsel %vm179_vm1, %v2363_v17, %v2506_v59 }
0x16a9   :  { %v2224_v57 = vmul.f32 %v4812_v6, %v2220_v19  ;;  %2508 = vrot.lane.b32.xlu1 %v2507_v1, %s4890_s8 }
0x16aa   :  { %v2366_v58 = vrot.slane %v2223_v54, 6 }
0x16ab   :  { %v2367_v13 = vrot.slane %v2224_v57, 5  ;;  %v2711_v63 = vrot.slane %v2224_v57, 7 }
0x16ad   :  { %v2368_v61 = vsel %vm179_vm1, %v2367_v13, %v2366_v58  ;;  %v5510_v42 = vsel %vm2712_vm4, %v2711_v63, %v2223_v54  ;;  %v2741_v63 = vld [vmem:[%s5851_s9] sm:$0xff]  ;;  %vm3385_vm4 = vcmask 56320  }
0x16ae   :  { %2369 = vrot.lane.b32.xlu0 %v2368_v61, %s4890_s8  ;;  %v2742_v61 = vld [vmem:[%s5851_s9 + $0x8] sm:$0xff] }
0x171b   :  { %v2509_v0 = vpop.permute.xlu1 %2508 }
0x171c   :  { %4142 = vmatmul.mubr.msk.f32.vlgmr.msra.gmra.mrb[18].mxu0 %vm67_vm0, %v2509_v0  ;;  %v5549_v0 = vpack.c.bf16 %v2742_v61, %v2741_v63 }
0x171d   :  { %4179 = vmatprep.mubr.msk.f32.mxu0 %vm4887_vm3, %v4888_v15 }
0x171e   :  { %4460 = vmatpush3.bf16.msra.mxu0 %v5549_v0 }
0x171f   :  { %4461 = vmatprep.subr.bf16.mxu0 %v4886_v62 }
0x1720   :  { %v2370_v24 = vpop.permute.xlu0 %2369 }
0x1721   :  { %4131 = vmatmul.mubr.msk.f32.vlgmr.msra.gmra.mrb[16].mxu1 %vm67_vm0, %v2370_v24  ;;  %v2604_v24 = vrot.slane %v5490_v34, 1  ;;  %v2466_v34 = vrot.slane %v5493_v44, 7  ;;  %v2746_v44 = vld [vmem:[%s5851_s9 + $0x28] sm:$0xff] }
0x1722   :  { %4160 = vmatprep.mubr.msk.f32.mxu1 %vm4887_vm3, %v4888_v15  ;;  %4448 = vmatpush3.bf16.msra.mxu1 %v5549_v0 }
0x1723   :  { %4449 = vmatprep.subr.bf16.mxu1 %v4886_v62 }
0x17ef   :  { %v2578_v2 = vpop.f32.mrb[18].mxu0 }
0x17f0   :  { %v2583_v6 = vrot.slane %v2578_v2, 1  ;;  %v2586_v16 = vadd.f32 %v2578_v2, %v5131_v29  ;;  %v4143_v22 = vpop.f32.mrb[19].mxu0 }
0x17f2   :  { %v2587_v18 = vadd.f32 %v2583_v6, %v5134_v32  ;;  %4821 = vtanh.f32 %v2586_v16  ;;  %v3734_v33 = vmul.f32 -1.442695, %v2586_v16  ;;  %v2605_v6 = vrot.slane %v5485_v28, 1 }
0x17f3   :  { %v2467_v28 = vrot.slane %v5495_v11, 7 }
0x17f4   :  { %v2439_v5 = vpop.f32.mrb[16].mxu1  ;;  %4823 = vtanh.f32 %v2587_v18  ;;  %v3735_v36 = vmul.f32 -1.442695, %v2587_v18 }
0x17f5   :  { %v2444_v45 = vrot.slane %v2439_v5, 1  ;;  %v2445_v39 = vrot.slane %v2439_v5, 2  ;;  %v4132_v9 = vpop.f32.mrb[17].mxu1  ;;  %v2743_v5 = vld [vmem:[%s5851_s9 + $0x10] sm:$0xff] }
0x17f7   :  { %v2448_v26 = vadd.f32 %v2444_v45, %v5125_v21  ;;  %v2449_v31 = vadd.f32 %v2445_v39, %v5137_v35  ;;  %v2744_v45 = vld [vmem:[%s5851_s9 + $0x18] sm:$0xff] }
0x17f8   :  { %v5565_v9 = vpack.c.bf16 %v2744_v45, %v2743_v5 }
0x17f9   :  { %4825 = vtanh.f32 %v2448_v26  ;;  %v3731_v21 = vmul.f32 -1.442695, %v2448_v26  ;;  %v3732_v35 = vmul.f32 -1.442695, %v2449_v31 }
0x17fa   :  { %4827 = vtanh.f32 %v2449_v31  ;;  %4463 = vmatpush3.bf16.msra.mxu0 %v5565_v9  ;;  %4451 = vmatpush3.bf16.msra.mxu1 %v5565_v9 }
0x17fb   :  { %4829 = vpow2.f32 %v3734_v33  ;;  %4464 = vmatprep.subr.bf16.mxu0 %v4886_v62  ;;  %4452 = vmatprep.subr.bf16.mxu1 %v4886_v62 }
0x17fc   :  { %v4822_v8 = vpop.eup %4821  ;;  %4831 = vpow2.f32 %v3735_v36 }
0x17fd   :  { %2612 = vrot.lane.b32.xlu0 %v4822_v8, %s4889_s5  ;;  %4833 = vpow2.f32 %v3731_v21  ;;  %v2745_v8 = vld [vmem:[%s5851_s9 + $0x20] sm:$0xff]  ;;  %v2747_v21 = vld [vmem:[%s5851_s9 + $0x30] sm:$0xff] }
0x17fe   :  { %v4824_v14 = vpop.eup %4823  ;;  %4835 = vpow2.f32 %v3732_v35  ;;  %v2748_v35 = vld [vmem:[%s5851_s9 + $0x38] sm:$0xff]  ;;  %s4891_s9 = smov 1  }
0x17ff   :  { %2614 = vrot.lane.b32.xlu1 %v4824_v14, %s4889_s5 }
0x1803   :  { %v4826_v29 = vpop.eup %4825 }
0x1804   :  { %v4828_v32 = vpop.eup %4827  ;;  %2474 = vrot.lane.b32.xlu0 %v4826_v29, %s4889_s5  ;;  %v5581_v29 = vpack.c.bf16 %v2746_v44, %v2745_v8 }
0x1805   :  { %2476 = vrot.lane.b32.xlu1 %v4828_v32, %s4889_s5  ;;  %v4830_v47 = vpop.eup %4829 }
0x1806   :  { %v4832_v38 = vpop.eup %4831  ;;  %v2594_v40 = vadd.f32 1.0, %v4830_v47  ;;  %4466 = vmatpush3.bf16.msra.mxu0 %v5581_v29  ;;  %4454 = vmatpush3.bf16.msra.mxu1 %v5581_v29  ;;  %v5593_v47 = vpack.c.bf16 %v2748_v35, %v2747_v21 }
0x1807   :  { %v2595_v43 = vadd.f32 1.0, %v4832_v38  ;;  %v4834_v51 = vpop.eup %4833  ;;  %4467 = vmatprep.subr.bf16.mxu0 %v4886_v62  ;;  %4455 = vmatprep.subr.bf16.mxu1 %v4886_v62 }
0x1808   :  { %4837 = vrcp.f32 %v2594_v40  ;;  %v4836_v56 = vpop.eup %4835  ;;  %v2456_v4 = vadd.f32 1.0, %v4834_v51 }
0x1809   :  { %4839 = vrcp.f32 %v2595_v43  ;;  %v2457_v10 = vadd.f32 1.0, %v4836_v56 }
0x180a   :  { %4841 = vrcp.f32 %v2456_v4  ;;  %4469 = vmatpush3.bf16.msra.mxu0 %v5593_v47  ;;  %4457 = vmatpush3.bf16.msra.mxu1 %v5593_v47 }
0x180b   :  { %4843 = vrcp.f32 %v2457_v10  ;;  %4482 = vmatprep.subr.bf16.mxu0 %v4886_v62  ;;  %4470 = vmatprep.subr.bf16.mxu1 %v4886_v62 }
0x1812   :  { %v5527_v17 = vpop.eup %4837 }
0x1813   :  { %v5530_v52 = vpop.eup %4839  ;;  %v2608_v2 = vmul.f32 %v5527_v17, %v2604_v24 }
0x1814   :  { %v5535_v54 = vpop.eup %4841  ;;  %v2609_v18 = vmul.f32 %v5530_v52, %v2605_v6 }
0x1815   :  { %v5537_v1 = vpop.eup %4843  ;;  %v2470_v31 = vmul.f32 %v5535_v54, %v2466_v34 }
0x1816   :  { %v2471_v11 = vmul.f32 %v5537_v1, %v2467_v28 }
0x186f   :  { %v2613_v48 = vpop.permute.xlu0 %2612 }
0x1870   :  { %v2618_v49 = vmul.f32 %v5527_v17, %v2613_v48 }
0x1871   :  { %v2615_v59 = vpop.permute.xlu1 %2614 }
0x1872   :  { %2622 = vrot.lane.b32.xlu0 %v2618_v49, %s4890_s8  ;;  %v2619_v53 = vmul.f32 %v5530_v52, %v2615_v59 }
0x1874   :  { %2624 = vrot.lane.b32.xlu1 %v2619_v53, %s4890_s8 }
0x1876   :  { %v2475_v19 = vpop.permute.xlu0 %2474 }
0x1877   :  { %v2477_v57 = vpop.permute.xlu1 %2476  ;;  %v2480_v58 = vmul.f32 %v5535_v54, %v2475_v19 }
0x1878   :  { %v2481_v13 = vmul.f32 %v5537_v1, %v2477_v57 }
0x1879   :  { %2484 = vrot.lane.b32.xlu0 %v2480_v58, %s4890_s8 }
0x187a   :  { %2486 = vrot.lane.b32.xlu1 %v2481_v13, %s4890_s8 }
0x18e4   :  { %v2623_v16 = vpop.permute.xlu0 %2622 }
0x18e5   :  { %v2628_v22 = vadd.f32 %v2623_v16, %v2608_v2 }
0x18e6   :  { %v2625_v39 = vpop.permute.xlu1 %2624 }
0x18e7   :  { %4845 = vtanh.f32 %v2628_v22  ;;  %v2629_v26 = vadd.f32 %v2625_v39, %v2609_v18 }
0x18e9   :  { %4847 = vtanh.f32 %v2629_v26 }
0x18eb   :  { %v2485_v14 = vpop.permute.xlu0 %2484 }
0x18ec   :  { %v2487_v32 = vpop.permute.xlu1 %2486  ;;  %v2490_v33 = vadd.f32 %v2485_v14, %v2470_v31 }
0x18ed   :  { %v2491_v36 = vadd.f32 %v2487_v32, %v2471_v11 }
0x18ee   :  { %4849 = vtanh.f32 %v2490_v33 }
0x18ef   :  { %4851 = vtanh.f32 %v2491_v36 }
0x18f1   :  { %v4846_v38 = vpop.eup %4845 }
0x18f2   :  { %2634 = vrot.lane.b32.xlu0 %v4846_v38, %s4889_s5 }
0x18f3   :  { %v4848_v40 = vpop.eup %4847 }
0x18f4   :  { %2636 = vrot.lane.b32.xlu1 %v4848_v40, %s4889_s5 }
0x18f8   :  { %v4850_v43 = vpop.eup %4849 }
0x18f9   :  { %v4852_v51 = vpop.eup %4851  ;;  %2496 = vrot.lane.b32.xlu0 %v4850_v43, %s4889_s5 }
0x18fa   :  { %2498 = vrot.lane.b32.xlu1 %v4852_v51, %s4889_s5 }
0x18fd   :  { %2659 = vrot.lane.b32.xlu0 %v5504_v55, %s4889_s5 }
0x18fe   :  { %2654 = vrot.lane.b32.xlu1 %v5231_v3, %s4890_s8 }
0x1901   :  { %2666 = vrot.lane.b32.xlu0 %v5286_v50, %s4890_s8 }
0x1905   :  { %2678 = vrot.lane.b32.xlu0 %v5342_v37, %s4890_s8 }
0x1909   :  { %2690 = vrot.lane.b32.xlu0 %v5398_v23, %s4890_s8 }
0x190d   :  { %2702 = vrot.lane.b32.xlu0 %v5454_v12, %s4890_s8 }
0x1911   :  { %2714 = vrot.lane.b32.xlu0 %v5510_v42, %s4890_s8 }
0x1964   :  { %v2635_v56 = vpop.permute.xlu0 %2634 }
0x1965   :  { %v2640_v3 = vmul.f32 %v5527_v17, %v2635_v56 }
0x1966   :  { %v2637_v55 = vpop.permute.xlu1 %2636 }
0x1967   :  { %v2641_v4 = vmul.f32 %v5530_v52, %v2637_v55 }
0x1969   :  { %v2645_v10 = vrot.slane %v2641_v4, 7 }
0x196b   :  { %v2497_v50 = vpop.permute.xlu0 %2496  ;;  %v2646_v49 = vsel %vm179_vm1, %v2645_v10, %v2640_v3  ;;  %vm3381_vm1 = vcmask 39936  }
0x196c   :  { %v2499_v48 = vpop.permute.xlu1 %2498  ;;  %v2502_v37 = vmul.f32 %v5535_v54, %v2497_v50  ;;  %2647 = vrot.lane.b32.xlu1 %v2646_v49, %s4889_s5 }
0x196e   :  { %2726 = vrot.lane.b32.xlu0 %v2502_v37, %s4890_s8 }
0x196f   :  { %v2660_v23 = vpop.permute.xlu0 %2659 }
0x1970   :  { %v2655_v12 = vpop.permute.xlu1 %2654  ;;  %2671 = vrot.lane.b32.xlu1 %v5449_v7, %s4889_s5 }
0x1971   :  { %v5624_v42 = vsel %vm67_vm0, %v2655_v12, %v2660_v23 }
0x1972   :  { %v2824_v17 = vrot.slane %v5624_v42, 1  ;;  %2733 = vrot.lane.b32.xlu0 %v5164_v25, %s4889_s5  ;;  %v2503_v25 = vmul.f32 %v5537_v1, %v2499_v48 }
0x1973   :  { %v2667_v52 = vpop.permute.xlu0 %2666 }
0x1974   :  { %4180 = vmatmul.mubr.msk.f32.vlgmr.msra.gmra.mrb[20].mxu0 %vm2749_vm10, %v2824_v17  ;;  %2683 = vrot.lane.b32.xlu1 %v5393_v20, %s4889_s5  ;;  %v2732_v20 = vrot.slane %v5166_v27, 7 }
0x1975   :  { %4484 = vmatpush3.bf16.msra.mxu0 %v5549_v0  ;;  %4217 = vmatprep.mubr.msk.f32.mxu0 %vm4887_vm3, %v4888_v15 }
0x1976   :  { %4485 = vmatprep.subr.bf16.mxu0 %v4886_v62 }
0x1977   :  { %v2679_v27 = vpop.permute.xlu0 %2678 }
0x1978   :  { %2695 = vrot.lane.b32.xlu1 %v5337_v30, %s4889_s5  ;;  %v2725_v30 = vrot.slane %v2503_v25, 7 }
0x1979   :  { %4487 = vmatpush3.bf16.msra.mxu0 %v5565_v9 }
0x197a   :  { %4488 = vmatprep.subr.bf16.mxu0 %v4886_v62 }
0x197b   :  { %v2691_v1 = vpop.permute.xlu0 %2690 }
0x197c   :  { %2707 = vrot.lane.b32.xlu1 %v5281_v46, %s4889_s5  ;;  %v3744_v46 = vld [vmem:[#allocation3] ss:$0 sm:$0xff] }
0x197d   :  { %4490 = vmatpush3.bf16.msra.mxu0 %v5581_v29 }
0x197e   :  { %4491 = vmatprep.subr.bf16.mxu0 %v4886_v62 }
0x197f   :  { %v2703_v63 = vpop.permute.xlu0 %2702 }
0x1980   :  { %2719 = vrot.lane.b32.xlu1 %v5225_v60, %s4889_s5 }
0x1981   :  { %4493 = vmatpush3.bf16.msra.mxu0 %v5593_v47 }
0x1982   :  { %4506 = vmatprep.subr.bf16.mxu0 %v4886_v62 }
0x1983   :  { %v2715_v2 = vpop.permute.xlu0 %2714 }
0x1984   :  { %2728 = vrot.lane.b32.xlu1 %v2725_v30, %s4890_s8 }
0x1988   :  { %2735 = vrot.lane.b32.xlu1 %v2732_v20, %s4889_s5  ;;  %s4897_s5 = smov 6  }
0x198c   :  { %3394 = vperm.xlu1 %4582, %v3744_v46  }
0x19de   :  { %v2648_v7 = vpop.permute.xlu1 %2647 }
0x19df   :  { %v5658_v59 = vsel %vm67_vm0, %v5179_v41, %v2648_v7 }
0x19e0   :  { %4161 = vmatmul.mubr.msk.f32.vlgmr.msra.gmra.mrb[18].mxu1 %vm2749_vm10, %v5658_v59  ;;  %v2727_v22 = vpop.permute.xlu0 %2726 }
0x19e1   :  { %4472 = vmatpush3.bf16.msra.mxu1 %v5549_v0  ;;  %4198 = vmatprep.mubr.msk.f32.mxu1 %vm4887_vm3, %v4888_v15 }
0x19e2   :  { %v2672_v60 = vpop.permute.xlu1 %2671  ;;  %4473 = vmatprep.subr.bf16.mxu1 %v4886_v62 }
0x19e3   :  { %v5678_v57 = vsel %vm67_vm0, %v2667_v52, %v2672_v60 }
0x19e4   :  { %v2898_v58 = vrot.slane %v5678_v57, 2  ;;  %v2734_v39 = vpop.permute.xlu0 %2733 }
0x19e5   :  { %4475 = vmatpush3.bf16.msra.mxu1 %v5565_v9  ;;  %v2739_v26 = vsel %vm67_vm0, %v2727_v22, %v2734_v39  ;;  %v4899_v22 = vmov 3   ;;  %v3465_v39 = vld [vmem:[%s5852_s11] sm:$0xff] }
0x19e6   :  { %v2684_v53 = vpop.permute.xlu1 %2683  ;;  %4476 = vmatprep.subr.bf16.mxu1 %v4886_v62 }
0x19e7   :  { %v5669_v41 = vsel %vm67_vm0, %v2679_v27, %v2684_v53 }
0x19e8   :  { %v2972_v54 = vrot.slane %v5669_v41, 3 }
0x19e9   :  { %4478 = vmatpush3.bf16.msra.mxu1 %v5581_v29 }
0x19ea   :  { %v2696_v19 = vpop.permute.xlu1 %2695  ;;  %4218 = vmatmul.mubr.msk.f32.vlgmr.msra.gmra.mrb[22].mxu0 %vm2749_vm10, %v2972_v54  ;;  %4479 = vmatprep.subr.bf16.mxu1 %v4886_v62 }
0x19eb   :  { %4508 = vmatpush3.bf16.msra.mxu0 %v5549_v0  ;;  %4255 = vmatprep.mubr.msk.f32.mxu0 %vm4887_vm3, %v4888_v15  ;;  %v5712_v18 = vsel %vm67_vm0, %v2691_v1, %v2696_v19 }
0x19ec   :  { %4509 = vmatprep.subr.bf16.mxu0 %v4886_v62  ;;  %v3046_v5 = vrot.slane %v5712_v18, 4  ;;  %v3570_v18 = vld [vmem:[%s5856_s15] sm:$0xff] }
0x19ed   :  { %4481 = vmatpush3.bf16.msra.mxu1 %v5593_v47 }
0x19ee   :  { %v2708_v13 = vpop.permute.xlu1 %2707  ;;  %4494 = vmatprep.subr.bf16.mxu1 %v4886_v62 }
0x19ef   :  { %4511 = vmatpush3.bf16.msra.mxu0 %v5565_v9  ;;  %v5699_v24 = vsel %vm67_vm0, %v2703_v63, %v2708_v13  ;;  %v4898_v63 = vmov 1  }
0x19f0   :  { %4199 = vmatmul.mubr.msk.f32.vlgmr.msra.gmra.mrb[20].mxu1 %vm2749_vm10, %v2898_v58  ;;  %4512 = vmatprep.subr.bf16.mxu0 %v4886_v62  ;;  %v3120_v6 = vrot.slane %v5699_v24, 5  ;;  %v3571_v24 = vld [vmem:[%s5856_s15 + $0x8] sm:$0xff] }
0x19f1   :  { %4496 = vmatpush3.bf16.msra.mxu1 %v5549_v0  ;;  %4236 = vmatprep.mubr.msk.f32.mxu1 %vm4887_vm3, %v4888_v15 }
0x19f2   :  { %4497 = vmatprep.subr.bf16.mxu1 %v4886_v62  ;;  %v2720_v61 = vpop.permute.xlu1 %2719  ;;  %4583 = vset.pattern.permute.xlu1 %v4898_v63 }
0x19f3   :  { %4514 = vmatpush3.bf16.msra.mxu0 %v5581_v29  ;;  %v5745_v8 = vsel %vm67_vm0, %v2715_v2, %v2720_v61 }
0x19f4   :  { %4515 = vmatprep.subr.bf16.mxu0 %v4886_v62 }
0x19f5   :  { %4499 = vmatpush3.bf16.msra.mxu1 %v5565_v9 }
0x19f6   :  { %4500 = vmatprep.subr.bf16.mxu1 %v4886_v62  ;;  %v2729_v16 = vpop.permute.xlu1 %2728 }
0x19f7   :  { %4517 = vmatpush3.bf16.msra.mxu0 %v5593_v47 }
0x19f8   :  { %4530 = vmatprep.subr.bf16.mxu0 %v4886_v62 }
0x19f9   :  { %4502 = vmatpush3.bf16.msra.mxu1 %v5581_v29 }
0x19fa   :  { %4256 = vmatmul.mubr.msk.f32.vlgmr.msra.gmra.mrb[24].mxu0 %vm2749_vm10, %v3120_v6  ;;  %4503 = vmatprep.subr.bf16.mxu1 %v4886_v62  ;;  %v2736_v45 = vpop.permute.xlu1 %2735 }
0x19fb   :  { %4532 = vmatpush3.bf16.msra.mxu0 %v5549_v0  ;;  %4293 = vmatprep.mubr.msk.f32.mxu0 %vm4887_vm3, %v4888_v15  ;;  %v2740_v34 = vsel %vm67_vm0, %v2729_v16, %v2736_v45  ;;  %v4900_v45 = vmov 2  }
0x19fc   :  { %4533 = vmatprep.subr.bf16.mxu0 %v4886_v62  ;;  %v3271_v28 = vrot.slane %v2740_v34, 7  ;;  %v3466_v34 = vld [vmem:[%s5852_s11 + $0x8] sm:$0xff] }
0x19fd   :  { %4505 = vmatpush3.bf16.msra.mxu1 %v5593_v47 }
0x19fe   :  { %4518 = vmatprep.subr.bf16.mxu1 %v4886_v62 }
0x19ff   :  { %4535 = vmatpush3.bf16.msra.mxu0 %v5565_v9 }
0x1a00   :  { %4237 = vmatmul.mubr.msk.f32.vlgmr.msra.gmra.mrb[22].mxu1 %vm2749_vm10, %v3046_v5  ;;  %4536 = vmatprep.subr.bf16.mxu0 %v4886_v62 }
0x1a01   :  { %4520 = vmatpush3.bf16.msra.mxu1 %v5549_v0  ;;  %4274 = vmatprep.mubr.msk.f32.mxu1 %vm4887_vm3, %v4888_v15  ;;  %v3270_v0 = vrot.slane %v2739_v26, 7  ;;  %v4543_v26 = vpack.c.bf16 %v3466_v34, %v3465_v39 }
0x1a02   :  { %4521 = vmatprep.subr.bf16.mxu1 %v4886_v62 }
0x1a03   :  { %4538 = vmatpush3.bf16.msra.mxu0 %v5581_v29  ;;  %v5739_v31 = vsel %vm3269_vm11, %v3270_v0, %v3271_v28  ;;  %v4901_v28 = vmov 4   ;;  %v4902_v0 = vmov 5  }
0x1a04   :  { %4539 = vmatprep.subr.bf16.mxu0 %v4886_v62 }
0x1a05   :  { %4523 = vmatpush3.bf16.msra.mxu1 %v5565_v9  ;;  %v3194_v9 = vrot.slane %v5745_v8, 6 }
0x1a06   :  { %4524 = vmatprep.subr.bf16.mxu1 %v4886_v62 }
0x1a07   :  { %4541 = vmatpush3.bf16.msra.mxu0 %v5593_v47 }
0x1a08   :  { %4554 = vmatprep.subr.bf16.mxu0 %v4886_v62 }
0x1a09   :  { %4526 = vmatpush3.bf16.msra.mxu1 %v5581_v29 }
0x1a0a   :  { %4294 = vmatmul.mubr.msk.f32.vlgmr.msra.gmra.mrb[26].mxu0 %vm2749_vm10, %v5739_v31  ;;  %4527 = vmatprep.subr.bf16.mxu1 %v4886_v62 }
0x1a0b   :  { %4323 = vmatprep.mubr.msk.f32.mxu0 %vm4887_vm3, %v4888_v15  ;;  %v3395_v4 = vpop.permute.xlu1 %3394 }
0x1a0d   :  { %4529 = vmatpush3.bf16.msra.mxu1 %v5593_v47 }
0x1a0e   :  { %4542 = vmatprep.subr.bf16.mxu1 %v4886_v62 }
0x1a10   :  { %4275 = vmatmul.mubr.msk.f32.vlgmr.msra.gmra.mrb[24].mxu1 %vm2749_vm10, %v3194_v9 }
0x1a11   :  { %4312 = vmatprep.mubr.msk.f32.mxu1 %vm4887_vm3, %v4888_v15  ;;  %vm3383_vm3 = vcmask 48128   ;;  %4544 = vmatpush3.bf16.msra.mxu1 %v4543_v26 }
0x1a12   :  { %4545 = vmatprep.subr.bf16.mxu1 %v4886_v62 }
0x1a47   :  { %v2893_v44 = vpop.f32.mrb[20].mxu0 }
0x1a48   :  { %3346 = vrot.lane.b32.xlu0 %v2893_v44, %s4891_s9  ;;  %v4181_v11 = vpop.f32.mrb[21].mxu0  ;;  %v3467_v44 = vld [vmem:[%s5852_s11 + $0x10] sm:$0xff] }
0x1a49   :  { %v3468_v11 = vld [vmem:[%s5852_s11 + $0x18] sm:$0xff] }
0x1ab3   :  { %v2819_v14 = vpop.f32.mrb[18].mxu1 }
0x1ab4   :  { %v4162_v29 = vpop.f32.mrb[19].mxu1 }
0x1ab5   :  { %v4903_v29 = vmov 6  }
0x1aba   :  { %v3347_v55 = vpop.permute.xlu0 %3346 }
0x1abb   :  { %v3374_v10 = vsel %vm3373_vm12, %v2819_v14, %v3347_v55  ;;  %v4546_v14 = vpack.c.bf16 %v3468_v11, %v3467_v44 }
0x1abd   :  { %v3041_v32 = vpop.f32.mrb[22].mxu0  ;;  %4547 = vmatpush3.bf16.msra.mxu1 %v4546_v14 }
0x1abe   :  { %3354 = vrot.lane.b32.xlu1 %v3041_v32, %s4892_s10  ;;  %v4219_v33 = vpop.f32.mrb[23].mxu0  ;;  %v3469_v32 = vld [vmem:[%s5852_s11 + $0x20] sm:$0xff]  ;;  %4548 = vmatprep.subr.bf16.mxu1 %v4886_v62 }
0x1abf   :  { %v3470_v33 = vld [vmem:[%s5852_s11 + $0x28] sm:$0xff] }
0x1ac3   :  { %v2967_v36 = vpop.f32.mrb[20].mxu1 }
0x1ac4   :  { %3350 = vrot.lane.b32.xlu0 %v2967_v36, %s4893_s4  ;;  %v4200_v21 = vpop.f32.mrb[21].mxu1  ;;  %v4904_v36 = vmov 7  }
0x1ac5   :  { %v4549_v21 = vpack.c.bf16 %v3470_v33, %v3469_v32 }
0x1ac7   :  { %4550 = vmatpush3.bf16.msra.mxu1 %v4549_v21 }
0x1ac8   :  { %4551 = vmatprep.subr.bf16.mxu1 %v4886_v62 }
0x1acd   :  { %v3189_v35 = vpop.f32.mrb[24].mxu0 }
0x1ace   :  { %3362 = vrot.lane.b32.xlu1 %v3189_v35, %s4894_s7  ;;  %v4257_v47 = vpop.f32.mrb[25].mxu0  ;;  %v3471_v35 = vld [vmem:[%s5852_s11 + $0x30] sm:$0xff] }
0x1acf   :  { %v3472_v47 = vld [vmem:[%s5852_s11 + $0x38] sm:$0xff] }
0x1ad3   :  { %v3115_v38 = vpop.f32.mrb[22].mxu1 }
0x1ad4   :  { %3358 = vrot.lane.b32.xlu0 %v3115_v38, %s4895_s21  ;;  %v4238_v15 = vpop.f32.mrb[23].mxu1  ;;  %v4552_v38 = vpack.c.bf16 %v3472_v47, %v3471_v35 }
0x1ad6   :  { %4553 = vmatpush3.bf16.msra.mxu1 %v4552_v38 }
0x1add   :  { %v3341_v40 = vpop.f32.mrb[26].mxu0 }
0x1ade   :  { %3370 = vrot.lane.b32.xlu1 %v3341_v40, %s4896_s22  ;;  %v4295_v43 = vpop.f32.mrb[27].mxu0 }
0x1ae3   :  { %v3263_v51 = vpop.f32.mrb[24].mxu1 }
0x1ae4   :  { %3366 = vrot.lane.b32.xlu0 %v3263_v51, %s4897_s5  ;;  %v4276_v56 = vpop.f32.mrb[25].mxu1 }
0x1b30   :  { %v3355_v50 = vpop.permute.xlu1 %3354 }
0x1b36   :  { %v3351_v3 = vpop.permute.xlu0 %3350 }
0x1b37   :  { %v3376_v48 = vsel %vm3375_vm13, %v3374_v10, %v3351_v3 }
0x1b38   :  { %v3378_v49 = vsel %vm3377_vm14, %v3376_v48, %v3355_v50 }
0x1b40   :  { %v3363_v23 = vpop.permute.xlu1 %3362 }
0x1b46   :  { %v3359_v37 = vpop.permute.xlu0 %3358 }
0x1b47   :  { %v3380_v12 = vsel %vm3379_vm15, %v3378_v49, %v3359_v37 }
0x1b48   :  { %v3382_v25 = vsel %vm3381_vm1, %v3380_v12, %v3363_v23 }
0x1b50   :  { %v3371_v20 = vpop.permute.xlu1 %3370 }
0x1b56   :  { %v3367_v30 = vpop.permute.xlu0 %3366 }
0x1b57   :  { %v3384_v46 = vsel %vm3383_vm3, %v3382_v25, %v3367_v30 }
0x1b58   :  { %v3386_v7 = vsel %vm3385_vm4, %v3384_v46, %v3371_v20  ;;  %v3747_v20 = vld [vmem:[%s5854_s13] ss:$0 sm:$0xff] }
0x1b59   :  { %v3397_v52 = vadd.f32 %v3395_v4, %v3386_v7  ;;  %v3748_v7 = vld [vmem:[%s5855_s14] ss:$0 sm:$0xff] }
0x1b5b   :  { %v3398_v60 = vsel %vm182_vm2, %v3397_v52, -inf }
0x1b5c   :  { %3399 = vmax.xlane.f32.xlu0 %v3398_v60 }
0x1be9   :  { %v3400_v27 = vpop.xlane.xlu0 %3399 }
0x1bea   :  { %v3401_v53 = vsub.f32 %v3397_v52, %v3400_v27 }
0x1bec   :  { %v3402_v19 = vmul.f32 1.442695, %v3401_v53  ;;  %v3749_v53 = vld [vmem:[%s5857_s16] ss:$0 sm:$0xff] }
0x1bee   :  { %4853 = vpow2.f32 %v3402_v19 }
0x1bf8   :  { %v4854_v1 = vpop.eup %4853 }
0x1bf9   :  { %v3404_v13 = vsel %vm182_vm2, %v4854_v1, 0.0  ;;  %vm3654_vm2 = vcmask 74752  }
0x1bfa   :  { %3405 = vadd.xlane.f32.xlu1 %v3404_v13 }
0x1c87   :  { %v3406_v61 = vpop.xlane.xlu1 %3405 }
0x1c88   :  { %4855 = vrcp.f32 %v3406_v61 }
0x1c92   :  { %v4856_v2 = vpop.eup %4855 }
0x1c93   :  { %v3408_v16 = vmul.f32 %v4856_v2, %v4854_v1 }
0x1c95   :  { %3417 = vperm.xlu1 %4583, %v3408_v16   ;;  %3411 = vperm.xlu0 %4581, %v3408_v16  }
0x1c99   :  { %4585 = vset.pattern.permute.xlu1 %v4899_v22  ;;  %4584 = vset.pattern.permute.xlu0 %v4900_v45 }
0x1c9a   :  { %3431 = vperm.xlu1 %4585, %v3408_v16   ;;  %3424 = vperm.xlu0 %4584, %v3408_v16  }
0x1c9e   :  { %4586 = vset.pattern.permute.xlu1 %v4901_v28  ;;  %4587 = vset.pattern.permute.xlu0 %v4902_v0 }
0x1c9f   :  { %3438 = vperm.xlu1 %4586, %v3408_v16   ;;  %3445 = vperm.xlu0 %4587, %v3408_v16  }
0x1ca3   :  { %4588 = vset.pattern.permute.xlu1 %v4903_v29  ;;  %4590 = vset.pattern.permute.xlu0 %v4904_v36 }
0x1ca4   :  { %3452 = vperm.xlu1 %4588, %v3408_v16  }
0x1ca8   :  { %4589 = vset.pattern.permute.xlu1 %v4904_v36 }
0x1ca9   :  { %3459 = vperm.xlu1 %4589, %v3408_v16  }
0x1d14   :  { %v3418_v15 = vpop.permute.xlu1 %3417  ;;  %v3412_v40 = vpop.permute.xlu0 %3411 }
0x1d15   :  { %v3421_v43 = vmul.f32 %v3418_v15, %v2824_v17  ;;  %v3414_v51 = vmul.f32 %v3412_v40, %v5658_v59 }
0x1d17   :  { %v3422_v4 = vadd.f32 %v3421_v43, %v3414_v51 }
0x1d19   :  { %v3432_v56 = vpop.permute.xlu1 %3431  ;;  %v3425_v55 = vpop.permute.xlu0 %3424 }
0x1d1a   :  { %v3428_v3 = vmul.f32 %v3425_v55, %v2898_v58  ;;  %v3435_v10 = vmul.f32 %v3432_v56, %v2972_v54 }
0x1d1c   :  { %v3429_v50 = vadd.f32 %v3428_v3, %v3422_v4 }
0x1d1e   :  { %v3439_v48 = vpop.permute.xlu1 %3438  ;;  %v3436_v37 = vadd.f32 %v3435_v10, %v3429_v50  ;;  %v3446_v23 = vpop.permute.xlu0 %3445 }
0x1d1f   :  { %v3442_v49 = vmul.f32 %v3439_v48, %v3046_v5  ;;  %v3449_v17 = vmul.f32 %v3446_v23, %v3120_v6  ;;  %v4555_v6 = vpack.c.bf16 %v3571_v24, %v3570_v18  ;;  %v3572_v5 = vld [vmem:[%s5856_s15 + $0x10] sm:$0xff] }
0x1d21   :  { %v3443_v42 = vadd.f32 %v3442_v49, %v3436_v37  ;;  %4556 = vmatpush3.bf16.msra.mxu0 %v4555_v6 }
0x1d22   :  { %4557 = vmatprep.subr.bf16.mxu0 %v4886_v62 }
0x1d23   :  { %v3453_v59 = vpop.permute.xlu1 %3452  ;;  %v3450_v12 = vadd.f32 %v3449_v17, %v3443_v42 }
0x1d24   :  { %v3456_v57 = vmul.f32 %v3453_v59, %v3194_v9  ;;  %v3745_v9 = vld [vmem:[%s5853_s12] ss:$0 sm:$0xff]  ;;  %s4905_s12 = smov [#allocation4]  }
0x1d25   :  { %s3673_s13 = sshll.u32 %s4905_s12, 4  ;;  %s3674_s13 = int_to_ptr.vmem [resolvable:$true] %s3673_s13 }
0x1d26   :  { %v3457_v25 = vadd.f32 %v3456_v57, %v3450_v12  ;;  %s4861_s14 = scalar_lea.vmem %s3674_s13, 32  ;;  %p4866_p1 = scmp.lt.s32.totalorder %s3674_s13, %s3674_s13 }
0x1d27   :  { %p4862_p0 = scmp.ne.s32.totalorder %s3674_s13, %s4861_s14  ;;  %p4867_p2 = scmp.lt.s32.totalorder %s4861_s14, %s4861_s14 }
0x1d28   :  { %v3460_v58 = vpop.permute.xlu1 %3459 }
0x1d29   :  { %v3463_v41 = vmul.f32 %v3460_v58, %v5739_v31  ;;  %v3573_v31 = vld [vmem:[%s5856_s15 + $0x18] sm:$0xff]  ;;  %p4868_p3 = por %p4867_p2, %p4866_p1 }
0x1d2a   :  { %v4558_v8 = vpack.c.bf16 %v3573_v31, %v3572_v5 }
0x1d2b   :  { %v3464_v54 = vadd.f32 %v3463_v41, %v3457_v25  ;;  %p4869_p4 = pnand %p4868_p3, %p4862_p0 }
0x1d2c   :  { %4559 = vmatpush3.bf16.msra.mxu0 %v4558_v8 }
0x1d2d   :  { %4313 = vmatmul.mubr.msk.f32.vlgmr.msra.gmra.mrb[26].mxu1 %vm2749_vm10, %v3464_v54 }
0x1e00   :  { %v3549_v30 = vpop.f32.mrb[26].mxu1 }
0x1e01   :  { %v3550_v62 = vadd.f32 %v3745_v9, %v3549_v30  ;;  %v4314_v46 = vpop.f32.mrb[27].mxu1 }
0x1e03   :  { %v3560_v52 = vmul.f32 %v3747_v20, %v3550_v62 }
0x1e05   :  { %v3568_v60 = vadd.f32 %v3748_v7, %v3560_v52 }
0x1e07   :  { %v3569_v27 = vmax.f32 %v3568_v60, 0.0 }
0x1e09   :  { %4324 = vmatmul.mubr.msk.f32.vlgmr.msra.gmra.mrb[28].mxu0 %vm67_vm0, %v3569_v27 }
0x1edc   :  { %v3650_v19 = vpop.f32.mrb[28].mxu0 }
0x1edd   :  { %v3651_v1 = vadd.f32 %v3749_v53, %v3650_v19  ;;  %v4325_v13 = vpop.f32.mrb[29].mxu0 }
0x1edf   :  { %v3655_v63 = vsel %vm3654_vm2, %v3651_v1, -inf }
0x1ee0   :  { %3656 = vmax.xlane.f32.xlu0 %v3655_v63 }
0x1f6d   :  { %v3657_v61 = vpop.xlane.xlu0 %3656 }
0x1f6e   :  { %v3658_v2 = vsub.f32 %v3651_v1, %v3657_v61 }
0x1f70   :  { %v3659_v16 = vmul.f32 1.442695, %v3658_v2 }
0x1f72   :  { %4857 = vpow2.f32 %v3659_v16 }
0x1f7c   :  { %v4858_v22 = vpop.eup %4857 }
0x1f7d   :  { %v3661_v45 = vsel %vm3654_vm2, %v4858_v22, 0.0 }
0x1f7e   :  { %3662 = vadd.xlane.f32.xlu1 %v3661_v45 }
0x200b   :  { %v3663_v39 = vpop.xlane.xlu1 %3662 }
0x200c   :  { %4859 = vrcp.f32 %v3663_v39 }
0x2016   :  { %v4860_v34 = vpop.eup %4859 }
0x2017   :  { %v3665_v26 = vmul.f32 %v4860_v34, %v4858_v22 }
0x2019   :  { %3666 = vst.msk [vmem:[#allocation4] sm:$0x3] %vm3654_vm2, %v3665_v26 }
0x201a   :  { %4872 = shalt.err (!%p4869_p4)
}
0x201b   :  { %s4873_s27 = scalar_lea.hbm %s5858_s17, 32 }
0x201c   :  { %p4874_p5 = scmp.ne.s32.totalorder %s5858_s17, %s4873_s27  ;;  %p4877_p6 = scmp.lt.u32.totalorder %s4873_s27, %s5858_s17 }
0x201e   :  { %p4879_p7 = pnand %p4877_p6, %p4874_p5 }
0x2020   :  { %4882 = shalt.err (!%p4879_p7)
}
0x2021   :  { %3676 = dma.vmem_to_hbm [thread:$0]  %s3674_s13, 32, %s5858_s17, [#allocation5]  }
0x2022   :  { %4883 = dma.done.wait [#allocation5], 32  }
0x2023   :  { %4884 = vsyncadd [#allocation5], 4294967264 }
0x2024   :  { %3680 = vsyncpa [#allocation5], 1 }

</bundles_post_ra>
